<compile_context>
chip_gen: v5e
topology: v5e:2x2
jax: 0.10.0
libtpu: 0.0.40
codegen_flags: <defaults>
</compile_context>

<pallas_src>
import jax
import jax.numpy as jnp
from jax.experimental import pallas as pl
from jax.experimental.pallas import tpu as pltpu


# ---------------------------------------------------------------------------
# Hardware-aware configuration
# ---------------------------------------------------------------------------
def _device_config():
    ncores, vmem_limit = 1, 64 << 20              # v5e / v6e: 1 TC, 128 MiB physical VMEM
    try:
        kind = jax.devices()[0].device_kind.lower()
        if "v7" in kind:
            ncores, vmem_limit = 2, 44 << 20      # v7x: 2 TCs, 64 MiB physical VMEM per TC
        elif ("v4" in kind) or ("v5p" in kind) or ("v5 p" in kind):
            ncores = 2                            # megacore
    except Exception:
        pass
    return ncores, vmem_limit


NCORES, VMEM_LIMIT = _device_config()
VMEM_BUDGET = VMEM_LIMIT - (6 << 20)   # headroom for compiler-internal scratch
MAX_ROW_BLK = 512


def _ceil_to(x, m):
    return ((x + m - 1) // m) * m


def _pick_row_block(n, per_row_bytes, resident_bytes):
    """Largest 16-row-aligned tile fitting the VMEM budget; on megacore chips keep
    >=2 grid steps so both TensorCores get work, on 1-TC chips use one full block."""
    avail = max(VMEM_BUDGET - resident_bytes, 2 << 20)
    blk = max(16, min(MAX_ROW_BLK, avail // max(per_row_bytes, 1)))
    blk = (blk // 16) * 16
    if NCORES >= 2 and n > 16:
        blk = min(blk, _ceil_to(pl.cdiv(n, 2), 16))   # even split across the 2 TCs
    if blk >= n:
        return n                                      # full-dim block is always legal
    return blk


def _const_spec(shape):
    """Weight/bias block fetched once per kernel; single-buffered (no pipelining win)."""
    zeros = (0,) * len(shape)
    return pl.BlockSpec(shape, lambda *_: zeros, pipeline_mode=pl.Buffered(1))


# ---------------------------------------------------------------------------
# Small in-kernel math helpers (f32)
# ---------------------------------------------------------------------------
def _layer_norm(x, gamma, beta, eps=1e-5):
    mu = jnp.mean(x, axis=-1, keepdims=True)
    var = jnp.mean(jnp.square(x - mu), axis=-1, keepdims=True)
    return (x - mu) * jax.lax.rsqrt(var + eps) * gamma + beta


def _log_softmax(x):
    z = x - jnp.max(x, axis=-1, keepdims=True)
    return z - jnp.log(jnp.sum(jnp.exp(z), axis=-1, keepdims=True))


# ---------------------------------------------------------------------------
# Kernel 1 ("stem"): frontend Linears + codebook lookup + ling_projection
#   lip  = lip_raw @ Wl + bl
#   hand = hand_raw @ Wh + bh + pos broadcast-MAC
#   x    = stack(lip, hand)                      (one long MXU chain)
#   ling = softmax(x @ cb^T) @ cb ; LayerNorm ; Swish ; Linear(D, D/2)
# ---------------------------------------------------------------------------
def _stem_kernel(lip_ref, hand_ref, pos_ref,
                 flw_ref, flb_ref, fhw_ref, fhb_ref, pw_ref, pb_ref,
                 cb_ref, g_ref, be_ref, pjw_ref, pjb_ref,
                 lip2d_ref, hand2d_ref, lipling_ref, handling_ref):
    f32 = jnp.float32
    blk = lip_ref.shape[0]

    lip = (jnp.dot(lip_ref[...], flw_ref[...], preferred_element_type=f32)
           + flb_ref[...].astype(f32))
    hand = (jnp.dot(hand_ref[...], fhw_ref[...], preferred_element_type=f32)
            + fhb_ref[...].astype(f32))
    hp = pos_ref[...].astype(f32)                      # (blk, 2)
    pw = pw_ref[...].astype(f32)                       # (2, D)
    # K=2 "matmul" as VPU broadcast multiply-adds (don't starve the MXU)
    hand = hand + hp[:, 0:1] * pw[0:1, :] + hp[:, 1:2] * pw[1:2, :] + pb_ref[...].astype(f32)

    lip2d_ref[...] = lip.astype(lip2d_ref.dtype)
    hand2d_ref[...] = hand.astype(hand2d_ref.dtype)

    # codebook lookup: lip & hand stacked -> one long MXU chain
    cb = cb_ref[...]
    x = jnp.concatenate([lip.astype(cb.dtype), hand.astype(cb.dtype)], axis=0)  # (2blk, D)
    s = jax.lax.dot_general(x, cb, (((1,), (1,)), ((), ())),                    # x @ cb.T
                            preferred_element_type=f32)
    s = s - jnp.max(s, axis=-1, keepdims=True)
    e = jnp.exp(s)
    p = e * pl.reciprocal(jnp.sum(e, axis=-1, keepdims=True), approx=True)      # EUP slot
    ling = jnp.dot(p.astype(cb.dtype), cb, preferred_element_type=f32)
    xn = _layer_norm(ling, g_ref[...].astype(f32), be_ref[...].astype(f32))
    xs = xn * jax.nn.sigmoid(xn)                                                # Swish
    proj = (jnp.dot(xs.astype(pjw_ref.dtype), pjw_ref[...], preferred_element_type=f32)
            + pjb_ref[...].astype(f32))
    lipling_ref[...] = proj[:blk].astype(lipling_ref.dtype)
    handling_ref[...] = proj[blk:].astype(handling_ref.dtype)


def stem_pallas(lip2d, hand2d, pos2d, fe_lip_w, fe_lip_b, fe_hand_w, fe_hand_b,
                pos_w, pos_b, code_book, lp_gamma, lp_beta, lp_w, lp_b):
    n, fin = lip2d.shape
    d = fe_lip_w.shape[1]
    v = code_book.shape[0]
    dh = lp_w.shape[1]

    resident = 2 * (2 * fin * d + v * d + d * dh + 2 * d + 6 * d + 2 * dh)  # bf16, 1-buffered
    per_row = (2 * 2 * (2 * fin + 2)            # bf16 input blocks, double-buffered
               + 2 * (2 * 2 * d + 4 * 2 * dh)   # output blocks (bf16 feats + f32 lings), x2
               + 4 * 2 * v + 2 * 2 * v          # f32 codebook scores + bf16 probs (both streams)
               + 4 * (10 * d + 2 * dh))         # f32 frontend / lookup / LN temporaries
    blk = _pick_row_block(n, per_row, resident)

    row = lambda i: (i, 0)
    return pl.pallas_call(
        _stem_kernel,
        out_shape=(jax.ShapeDtypeStruct((n, d), jnp.bfloat16),
                   jax.ShapeDtypeStruct((n, d), jnp.bfloat16),
                   jax.ShapeDtypeStruct((n, dh), jnp.float32),
                   jax.ShapeDtypeStruct((n, dh), jnp.float32)),
        grid=(pl.cdiv(n, blk),),
        in_specs=[pl.BlockSpec((blk, fin), row),
                  pl.BlockSpec((blk, fin), row),
                  pl.BlockSpec((blk, 2), row),
                  _const_spec((fin, d)), _const_spec((1, d)),
                  _const_spec((fin, d)), _const_spec((1, d)),
                  _const_spec((2, d)), _const_spec((1, d)),
                  _const_spec((v, d)),
                  _const_spec((1, d)), _const_spec((1, d)),
                  _const_spec((d, dh)), _const_spec((1, dh))],
        out_specs=(pl.BlockSpec((blk, d), row),
                   pl.BlockSpec((blk, d), row),
                   pl.BlockSpec((blk, dh), row),
                   pl.BlockSpec((blk, dh), row)),
        compiler_params=pltpu.CompilerParams(dimension_semantics=("parallel",),
                                             vmem_limit_bytes=VMEM_LIMIT),
    )(lip2d, hand2d, pos2d, fe_lip_w, fe_lip_b, fe_hand_w, fe_hand_b,
      pos_w, pos_b, code_book, lp_gamma, lp_beta, lp_w, lp_b)


# ---------------------------------------------------------------------------
# Kernel 2 ("heads"): ling_recover + modal fusion + BOTH vocab heads, V-tiled.
#   rec  = LayerNorm(Swish(fl @ Wr + br))            (once per row block)
#   feat = log_softmax(rec)                          (over D, fully resident)
#   fm   = dec_lip @ W1 + dec_hand @ W2 + b          (split-weight fusion, no concat)
#   per V-tile: logits_{ling,post} = {rec,fm} @ Wlin[:, tile] + blin[tile]
#               -> raw logits written, online logsumexp carried in scratch,
#                  per-row LSE emitted at the last tile.
# ---------------------------------------------------------------------------
def _heads_kernel(fl_ref, dlip_ref, dhand_ref,
                  lrw_ref, lrb_ref, lrg_ref, lrbe_ref,
                  fw1_ref, fw2_ref, fb_ref,
                  linw_ref, linb_ref,
                  feat_ref, lgl_ref, lgp_ref, lsel_ref, lsep_ref,
                  rec_sc, fm_sc, ml_sc, ll_sc, mp_sc, lp_sc):
    f32 = jnp.float32
    j = pl.program_id(1)
    nv = pl.num_programs(1)

    @pl.when(j == 0)
    def _():
        z = (jnp.dot(fl_ref[...], lrw_ref[...], preferred_element_type=f32)
             + lrb_ref[...].astype(f32))
        z = z * jax.nn.sigmoid(z)                                        # Swish
        rec = _layer_norm(z, lrg_ref[...].astype(f32), lrbe_ref[...].astype(f32))
        feat_ref[...] = _log_softmax(rec).astype(feat_ref.dtype)
        rec_sc[...] = rec.astype(rec_sc.dtype)
        fm = (jnp.dot(dlip_ref[...], fw1_ref[...], preferred_element_type=f32)
              + jnp.dot(dhand_ref[...], fw2_ref[...], preferred_element_type=f32)
              + fb_ref[...].astype(f32))
        fm_sc[...] = fm.astype(fm_sc.dtype)
        neg = jnp.full(ml_sc.shape, -1e30, f32)
        zero = jnp.zeros(ll_sc.shape, f32)
        ml_sc[...] = neg
        mp_sc[...] = neg
        ll_sc[...] = zero
        lp_sc[...] = zero

    w = linw_ref[...]
    b = linb_ref[...].astype(f32)
    lg_l = jnp.dot(rec_sc[...], w, preferred_element_type=f32) + b
    lg_p = jnp.dot(fm_sc[...], w, preferred_element_type=f32) + b
    lgl_ref[...] = lg_l.astype(lgl_ref.dtype)
    lgp_ref[...] = lg_p.astype(lgp_ref.dtype)

    def _update(m_sc, l_sc, lg):          # online logsumexp accumulator
        m_new = jnp.maximum(m_sc[...], jnp.max(lg, axis=-1, keepdims=True))
        l_sc[...] = (l_sc[...] * jnp.exp(m_sc[...] - m_new)
                     + jnp.sum(jnp.exp(lg - m_new), axis=-1, keepdims=True))
        m_sc[...] = m_new

    _update(ml_sc, ll_sc, lg_l)
    _update(mp_sc, lp_sc, lg_p)

    @pl.when(j == nv - 1)
    def _():
        lsel_ref[...] = ml_sc[...] + jnp.log(ll_sc[...])
        lsep_ref[...] = mp_sc[...] + jnp.log(lp_sc[...])


def heads_pallas(fl, dlip, dhand, lr_w, lr_b, lr_g, lr_be, fu_w1, fu_w2, fu_b,
                 lin_w, lin_b):
    n, dh = fl.shape
    d = lr_w.shape[1]
    vp = lin_w.shape[1]                     # padded to a multiple of 128 by the caller

    vblk = min(vp, 1024)                    # V tile; pick a 128-multiple divisor of vp
    while vp % vblk:
        vblk -= 128
    nv = vp // vblk

    resident = (2 * (dh * d + 2 * d * d + 10 * d)   # recover + fusion weights (bf16, 1-buf)
                + 2 * 2 * (d * vblk + vblk))        # lin_w / lin_b tile (bf16, double-buffered)
    per_row = (2 * 2 * (dh + 2 * d)                 # bf16 activation blocks, double-buffered
               + 2 * 4 * d                          # f32 ling_feature block, double-buffered
               + 2 * 2 * 4 * vblk                   # two f32 logit blocks, double-buffered
               + 2 * 2 * d + 4 * 4                  # bf16 rec/fm scratch + lse scratch
               + 4 * (6 * d + 6 * vblk))            # f32 temporaries (recover/fusion/logits/exp)
    blk = _pick_row_block(n, per_row, resident)

    row0 = lambda i, j: (i, 0)
    vcol = lambda i, j: (0, j)
    rowv = lambda i, j: (i, j)
    return pl.pallas_call(
        _heads_kernel,
        out_shape=(jax.ShapeDtypeStruct((n, d), jnp.float32),    # ling feature log-probs
                   jax.ShapeDtypeStruct((n, vp), jnp.float32),   # raw logits (ling head)
                   jax.ShapeDtypeStruct((n, vp), jnp.float32),   # raw logits (post head)
                   jax.ShapeDtypeStruct((n, 1), jnp.float32),    # per-row LSE (ling)
                   jax.ShapeDtypeStruct((n, 1), jnp.float32)),   # per-row LSE (post)
        grid=(pl.cdiv(n, blk), nv),
        in_specs=[pl.BlockSpec((blk, dh), row0),
                  pl.BlockSpec((blk, d), row0),
                  pl.BlockSpec((blk, d), row0),
                  _const_spec((dh, d)), _const_spec((1, d)),
                  _const_spec((1, d)), _const_spec((1, d)),
                  _const_spec((d, d)), _const_spec((d, d)), _const_spec((1, d)),
                  pl.BlockSpec((d, vblk), vcol),
                  pl.BlockSpec((1, vblk), vcol)],
        out_specs=(pl.BlockSpec((blk, d), row0),
                   pl.BlockSpec((blk, vblk), rowv),
                   pl.BlockSpec((blk, vblk), rowv),
                   pl.BlockSpec((blk, 1), row0),
                   pl.BlockSpec((blk, 1), row0)),
        scratch_shapes=[pltpu.VMEM((blk, d), jnp.bfloat16),
                        pltpu.VMEM((blk, d), jnp.bfloat16),
                        pltpu.VMEM((blk, 1), jnp.float32),
                        pltpu.VMEM((blk, 1), jnp.float32),
                        pltpu.VMEM((blk, 1), jnp.float32),
                        pltpu.VMEM((blk, 1), jnp.float32)],
        compiler_params=pltpu.CompilerParams(
            dimension_semantics=("parallel", "arbitrary"),
            vmem_limit_bytes=VMEM_LIMIT),
    )(fl, dlip, dhand, lr_w, lr_b, lr_g, lr_be, fu_w1, fu_w2, fu_b, lin_w, lin_b)


# ---------------------------------------------------------------------------
# Parameter construction (deterministic, synthetic; weights in bf16)
# ---------------------------------------------------------------------------
def init_params(key, d_model, n_trg_vocab, feat_in, dtype=jnp.bfloat16):
    d_half = d_model // 2
    ks = jax.random.split(key, 10)
    s = 0.02

    def nrm(k, shape, scale=s):
        return (jax.random.normal(k, shape, jnp.float32) * scale).astype(dtype)

    # TODO(synk): evaluate fp8 for lin_w / fu_w1 / fu_w2 on v7x (per-column scales after
    # f32 accumulation) once an accuracy budget is agreed; bf16 kept for portability.
    return {
        # TODO(synk): VisualFrontend (3D-CNN + ResNet) definition not provided;
        # stand-in = per-frame flatten + Linear(feat_in, d_model).
        "fe_lip_w": nrm(ks[0], (feat_in, d_model)),
        "fe_lip_b": jnp.zeros((1, d_model), dtype),
        "fe_hand_w": nrm(ks[1], (feat_in, d_model)),
        "fe_hand_b": jnp.zeros((1, d_model), dtype),
        # TODO(synk): PosFrontend definition not provided; stand-in Linear(2, d_model).
        "pos_w": nrm(ks[2], (2, d_model)),
        "pos_b": jnp.zeros((1, d_model), dtype),
        # code_emb: nn.Embedding(n_trg_vocab, d_model)
        "code_emb": nrm(ks[3], (n_trg_vocab, d_model), 1.0),
        # ling_projection: LayerNorm(d_model) -> Swish -> Linear(d_model, d_half)
        "lp_gamma": jnp.ones((1, d_model), dtype),
        "lp_beta": jnp.zeros((1, d_model), dtype),
        "lp_w": nrm(ks[4], (d_model, d_half)),
        "lp_b": jnp.zeros((1, d_half), dtype),
        # ling_recover: Linear(d_half, d_model) -> Swish -> LayerNorm(d_model)
        "lr_w": nrm(ks[5], (d_half, d_model)),
        "lr_b": jnp.zeros((1, d_model), dtype),
        "lr_gamma": jnp.ones((1, d_model), dtype),
        "lr_beta": jnp.zeros((1, d_model), dtype),
        # TODO(synk): Fusion(din=2*d_model, fusion_dim=d_model) definition not provided;
        # stand-in = concat + Linear(2*d_model, d_model), stored as two (D, D) halves so
        # the kernel never materializes the (N, 2D) concatenated tensor.
        "fu_w1": nrm(ks[6], (d_model, d_model)),
        "fu_w2": nrm(ks[7], (d_model, d_model)),
        "fu_b": jnp.zeros((1, d_model), dtype),
        # final vocab projection
        "lin_w": nrm(ks[8], (d_model, n_trg_vocab)),
        "lin_b": jnp.zeros((1, n_trg_vocab), dtype),
    }


# ---------------------------------------------------------------------------
# Forward pass (mirrors CuedSpeechTransformer.forward)
# ---------------------------------------------------------------------------
def cued_speech_transformer_forward(params, lip_raw, hand_raw, hand_pos,
                                    src_length, code_book_ids,
                                    dataset="Chinese", sub_rate=4):
    B, T = lip_raw.shape[:2]
    D = params["fe_lip_w"].shape[1]
    Dh = D // 2
    V = params["lin_w"].shape[1]
    act = jnp.bfloat16

    # embedding lookup of the codebook ids (XLA glue)
    code_book = params["code_emb"][code_book_ids]

    # ---- stem: VisionBackbone + codebook lookup + ling_projection (one kernel) ----
    lip2d, hand2d, lip_ling2d, hand_ling2d = stem_pallas(
        lip_raw.reshape(B * T, -1).astype(act),
        hand_raw.reshape(B * T, -1).astype(act),
        hand_pos.reshape(B * T, -1).astype(act),
        params["fe_lip_w"], params["fe_lip_b"],
        params["fe_hand_w"], params["fe_hand_b"],
        params["pos_w"], params["pos_b"],
        code_book,
        params["lp_gamma"], params["lp_beta"], params["lp_w"], params["lp_b"])
    # TODO(synk): get_input_mask / get_attn_pad_mask not provided; masks only feed the
    # (also unprovided) encoder/decoder, so they are omitted here.

    lip_ling = lip_ling2d.reshape(B, T, Dh)
    hand_ling = hand_ling2d.reshape(B, T, Dh)

    # TODO(synk): MMEncoder (multi-modal conformer stack) definition not provided;
    # pass-through stub: encoder outputs = inputs, fused linguistic = mean of the two.
    enc_lip = lip2d.reshape(B, T, D).astype(jnp.float32)
    enc_hand = hand2d.reshape(B, T, D).astype(jnp.float32)
    fusion_ling = 0.5 * (lip_ling + hand_ling)

    if dataset in ("Chinese", "English"):
        if T % sub_rate != 0:
            Tc = T - T % sub_rate
            enc_lip = enc_lip[:, :Tc, :]
            enc_hand = enc_hand[:, :Tc, :]
            fusion_ling = fusion_ling[:, :Tc, :]
            src_length = src_length - (T % sub_rate)
        Tc = enc_lip.shape[1]
        Ts = Tc // sub_rate
        # mean over non-overlapping windows of `sub_rate` frames (f32 accumulation)
        enc_lip = enc_lip.reshape(B, Ts, sub_rate, D).mean(axis=2)
        enc_hand = enc_hand.reshape(B, Ts, sub_rate, D).mean(axis=2)
        fusion_ling = fusion_ling.reshape(B, Ts, sub_rate, Dh).mean(axis=2)
        output_lengths = src_length // sub_rate      # == src_length >> 2 for sub_rate=4
    else:
        Ts = T
        output_lengths = src_length

    # TODO(synk): Transformer Decoder definition not provided; pass-through of the
    # (subsampled) encoder memory in place of decoder(fusion_ling, memory, mask).
    dec_lip = enc_lip
    dec_hand = enc_hand

    # vocab padded to a multiple of 128 for lane-dense logit stores / full MXU lanes
    lin_w, lin_b = params["lin_w"], params["lin_b"]
    Vp = _ceil_to(V, 128)
    if Vp != V:
        lin_w = jnp.pad(lin_w, ((0, 0), (0, Vp - V)))
        lin_b = jnp.pad(lin_b, ((0, 0), (0, Vp - V)), constant_values=-1e9)

    # ---- heads: ling_recover + modal fusion + both vocab heads (one kernel) ----
    # (the torch code also log-softmaxes the raw fused features into `post_feature`
    #  but never returns it — dead code, dropped.)
    feat2d, logit_ling, logit_post, lse_ling, lse_post = heads_pallas(
        fusion_ling.reshape(B * Ts, Dh).astype(act),
        dec_lip.reshape(B * Ts, D).astype(act),
        dec_hand.reshape(B * Ts, D).astype(act),
        params["lr_w"], params["lr_b"], params["lr_gamma"], params["lr_beta"],
        params["fu_w1"], params["fu_w2"], params["fu_b"],
        lin_w, lin_b)

    # log_softmax normalization (logits - lse) fuses with the (Ts, B, V) layout pass in XLA
    ling_feature = feat2d.reshape(B, Ts, D).transpose(1, 0, 2)
    output_ling = (logit_ling - lse_ling)[:, :V].reshape(B, Ts, V).transpose(1, 0, 2)
    output_post = (logit_post - lse_post)[:, :V].reshape(B, Ts, V).transpose(1, 0, 2)

    return lip_ling, hand_ling, ling_feature, output_ling, output_post, output_lengths


# ---------------------------------------------------------------------------
if __name__ == "__main__":
    key = jax.random.PRNGKey(0)

    # small shapes: batch=2, frames=16, d_model=256, vocab=128, 8x8 crops
    B, T, D, V = 2, 16, 256, 128
    H = W = 8
    feat_in = H * W

    pk, dk = jax.random.split(key)
    params = init_params(pk, d_model=D, n_trg_vocab=V, feat_in=feat_in)

    dks = jax.random.split(dk, 3)
    lip_raw = jax.random.normal(dks[0], (B, T, H, W), jnp.float32)
    hand_raw = jax.random.normal(dks[1], (B, T, H, W), jnp.float32)
    hand_pos = jax.random.normal(dks[2], (B, T, 2), jnp.float32)
    src_length = jnp.array([16, 12], dtype=jnp.int32)
    code_book_ids = jnp.arange(V, dtype=jnp.int32)

    fwd = jax.jit(cued_speech_transformer_forward,
                  static_argnames=("dataset", "sub_rate"))
    outs = fwd(params, lip_raw, hand_raw, hand_pos, src_length, code_book_ids,
               dataset="Chinese", sub_rate=4)
    outs = jax.block_until_ready(outs)

    lip_ling, hand_ling, ling_feature, output_ling, output_post, output_lengths = outs
    assert lip_ling.shape == (B, T, D // 2)
    assert hand_ling.shape == (B, T, D // 2)
    assert ling_feature.shape == (T // 4, B, D)
    assert output_ling.shape == (T // 4, B, V)
    assert output_post.shape == (T // 4, B, V)
    assert output_lengths.shape == (B,)
    assert bool(jnp.isfinite(output_ling).all())
    assert bool(jnp.isfinite(output_post).all())
    # log-probs must normalize (the LSE path is exact f32 math)
    assert bool(jnp.allclose(jnp.exp(output_ling).sum(-1), 1.0, atol=2e-2))
    assert bool(jnp.allclose(jnp.exp(output_post).sum(-1), 1.0, atol=2e-2))

    print("KERNEL_OK")
</pallas_src>

<mosaic_0001>
module attributes {stable_mosaic.version = 11 : i64} {
  func.func @_stem_kernel(%arg0: i32, %arg1: memref<32x64xbf16, #tpu.memory_space<vmem>>, %arg2: memref<32x64xbf16, #tpu.memory_space<vmem>>, %arg3: memref<32x2xbf16, #tpu.memory_space<vmem>>, %arg4: memref<64x256xbf16, #tpu.memory_space<vmem>>, %arg5: memref<1x256xbf16, #tpu.memory_space<vmem>>, %arg6: memref<64x256xbf16, #tpu.memory_space<vmem>>, %arg7: memref<1x256xbf16, #tpu.memory_space<vmem>>, %arg8: memref<2x256xbf16, #tpu.memory_space<vmem>>, %arg9: memref<1x256xbf16, #tpu.memory_space<vmem>>, %arg10: memref<128x256xbf16, #tpu.memory_space<vmem>>, %arg11: memref<1x256xbf16, #tpu.memory_space<vmem>>, %arg12: memref<1x256xbf16, #tpu.memory_space<vmem>>, %arg13: memref<256x128xbf16, #tpu.memory_space<vmem>>, %arg14: memref<1x128xbf16, #tpu.memory_space<vmem>>, %arg15: memref<32x256xbf16, #tpu.memory_space<vmem>>, %arg16: memref<32x256xbf16, #tpu.memory_space<vmem>>, %arg17: memref<32x128xf32, #tpu.memory_space<vmem>>, %arg18: memref<32x128xf32, #tpu.memory_space<vmem>>) attributes {dimension_semantics = [#tpu.dimension_semantics<parallel>], iteration_bounds = array<i64: 1>, scalar_prefetch = 0 : i64, scratch_operands = 0 : i64, tpu.core_type = #tpu.core_type<tc>, window_params = [{transform_indices = @transform_0, window_bounds = array<i64: 32, 64>}, {transform_indices = @transform_1, window_bounds = array<i64: 32, 64>}, {transform_indices = @transform_2, window_bounds = array<i64: 32, 2>}, {pipeline_mode = #tpu.pipeline_mode<synchronous>, transform_indices = @transform_3, window_bounds = array<i64: 64, 256>}, {pipeline_mode = #tpu.pipeline_mode<synchronous>, transform_indices = @transform_4, window_bounds = array<i64: 1, 256>}, {pipeline_mode = #tpu.pipeline_mode<synchronous>, transform_indices = @transform_5, window_bounds = array<i64: 64, 256>}, {pipeline_mode = #tpu.pipeline_mode<synchronous>, transform_indices = @transform_6, window_bounds = array<i64: 1, 256>}, {pipeline_mode = #tpu.pipeline_mode<synchronous>, transform_indices = @transform_7, window_bounds = array<i64: 2, 256>}, {pipeline_mode = #tpu.pipeline_mode<synchronous>, transform_indices = @transform_8, window_bounds = array<i64: 1, 256>}, {pipeline_mode = #tpu.pipeline_mode<synchronous>, transform_indices = @transform_9, window_bounds = array<i64: 128, 256>}, {pipeline_mode = #tpu.pipeline_mode<synchronous>, transform_indices = @transform_10, window_bounds = array<i64: 1, 256>}, {pipeline_mode = #tpu.pipeline_mode<synchronous>, transform_indices = @transform_11, window_bounds = array<i64: 1, 256>}, {pipeline_mode = #tpu.pipeline_mode<synchronous>, transform_indices = @transform_12, window_bounds = array<i64: 256, 128>}, {pipeline_mode = #tpu.pipeline_mode<synchronous>, transform_indices = @transform_13, window_bounds = array<i64: 1, 128>}, {transform_indices = @transform_14, window_bounds = array<i64: 32, 256>}, {transform_indices = @transform_15, window_bounds = array<i64: 32, 256>}, {transform_indices = @transform_16, window_bounds = array<i64: 32, 128>}, {transform_indices = @transform_17, window_bounds = array<i64: 32, 128>}]} {
    %c0 = arith.constant 0 : index
    %c0_0 = arith.constant 0 : index
    %0 = vector.load %arg1[%c0, %c0_0] : memref<32x64xbf16, #tpu.memory_space<vmem>>, vector<32x64xbf16>
    %c0_1 = arith.constant 0 : index
    %c0_2 = arith.constant 0 : index
    %1 = vector.load %arg4[%c0_1, %c0_2] : memref<64x256xbf16, #tpu.memory_space<vmem>>, vector<64x256xbf16>
    %cst = arith.constant dense<0.000000e+00> : vector<32x256xf32>
    %2 = tpu.matmul %0, %1, %cst {dimension_numbers = #tpu.dot_dimension_numbers<[1], [0], [0], [1], [0, 0, 1, 1], [], []>} : vector<32x64xbf16>, vector<64x256xbf16>, vector<32x256xf32> -> vector<32x256xf32>
    %c0_3 = arith.constant 0 : index
    %c0_4 = arith.constant 0 : index
    %3 = vector.load %arg5[%c0_3, %c0_4] : memref<1x256xbf16, #tpu.memory_space<vmem>>, vector<1x256xbf16>
    %4 = arith.extf %3 : vector<1x256xbf16> to vector<1x256xf32>
    %5 = vector.broadcast %4 : vector<1x256xf32> to vector<32x256xf32>
    %6 = arith.addf %2, %5 : vector<32x256xf32>
    %c0_5 = arith.constant 0 : index
    %c0_6 = arith.constant 0 : index
    %7 = vector.load %arg2[%c0_5, %c0_6] : memref<32x64xbf16, #tpu.memory_space<vmem>>, vector<32x64xbf16>
    %c0_7 = arith.constant 0 : index
    %c0_8 = arith.constant 0 : index
    %8 = vector.load %arg6[%c0_7, %c0_8] : memref<64x256xbf16, #tpu.memory_space<vmem>>, vector<64x256xbf16>
    %cst_9 = arith.constant dense<0.000000e+00> : vector<32x256xf32>
    %9 = tpu.matmul %7, %8, %cst_9 {dimension_numbers = #tpu.dot_dimension_numbers<[1], [0], [0], [1], [0, 0, 1, 1], [], []>} : vector<32x64xbf16>, vector<64x256xbf16>, vector<32x256xf32> -> vector<32x256xf32>
    %c0_10 = arith.constant 0 : index
    %c0_11 = arith.constant 0 : index
    %10 = vector.load %arg7[%c0_10, %c0_11] : memref<1x256xbf16, #tpu.memory_space<vmem>>, vector<1x256xbf16>
    %11 = arith.extf %10 : vector<1x256xbf16> to vector<1x256xf32>
    %12 = vector.broadcast %11 : vector<1x256xf32> to vector<32x256xf32>
    %13 = arith.addf %9, %12 : vector<32x256xf32>
    %c0_12 = arith.constant 0 : index
    %c0_13 = arith.constant 0 : index
    %14 = vector.load %arg3[%c0_12, %c0_13] : memref<32x2xbf16, #tpu.memory_space<vmem>>, vector<32x2xbf16>
    %15 = arith.extf %14 : vector<32x2xbf16> to vector<32x2xf32>
    %c0_14 = arith.constant 0 : index
    %c0_15 = arith.constant 0 : index
    %16 = vector.load %arg8[%c0_14, %c0_15] : memref<2x256xbf16, #tpu.memory_space<vmem>>, vector<2x256xbf16>
    %17 = arith.extf %16 : vector<2x256xbf16> to vector<2x256xf32>
    %18 = vector.extract_strided_slice %15 {offsets = [0, 0], sizes = [32, 1], strides = [1, 1]} : vector<32x2xf32> to vector<32x1xf32>
    %19 = vector.extract_strided_slice %17 {offsets = [0, 0], sizes = [1, 256], strides = [1, 1]} : vector<2x256xf32> to vector<1x256xf32>
    %20 = vector.broadcast %18 : vector<32x1xf32> to vector<32x256xf32>
    %21 = vector.broadcast %19 : vector<1x256xf32> to vector<32x256xf32>
    %22 = arith.mulf %20, %21 : vector<32x256xf32>
    %23 = arith.addf %13, %22 : vector<32x256xf32>
    %24 = vector.extract_strided_slice %15 {offsets = [0, 1], sizes = [32, 1], strides = [1, 1]} : vector<32x2xf32> to vector<32x1xf32>
    %25 = vector.extract_strided_slice %17 {offsets = [1, 0], sizes = [1, 256], strides = [1, 1]} : vector<2x256xf32> to vector<1x256xf32>
    %26 = vector.broadcast %24 : vector<32x1xf32> to vector<32x256xf32>
    %27 = vector.broadcast %25 : vector<1x256xf32> to vector<32x256xf32>
    %28 = arith.mulf %26, %27 : vector<32x256xf32>
    %29 = arith.addf %23, %28 : vector<32x256xf32>
    %c0_16 = arith.constant 0 : index
    %c0_17 = arith.constant 0 : index
    %30 = vector.load %arg9[%c0_16, %c0_17] : memref<1x256xbf16, #tpu.memory_space<vmem>>, vector<1x256xbf16>
    %31 = arith.extf %30 : vector<1x256xbf16> to vector<1x256xf32>
    %32 = vector.broadcast %31 : vector<1x256xf32> to vector<32x256xf32>
    %33 = arith.addf %29, %32 : vector<32x256xf32>
    %34 = arith.truncf %6 : vector<32x256xf32> to vector<32x256xbf16>
    %c0_18 = arith.constant 0 : index
    %c0_19 = arith.constant 0 : index
    %35 = vector.load %arg15[%c0_18, %c0_19] : memref<32x256xbf16, #tpu.memory_space<vmem>>, vector<32x256xbf16>
    tpu.vector_store %arg15[%c0_18, %c0_19], %34 {strides = array<i32>} : memref<32x256xbf16, #tpu.memory_space<vmem>>, vector<32x256xbf16>,
    %36 = arith.truncf %33 : vector<32x256xf32> to vector<32x256xbf16>
    %c0_20 = arith.constant 0 : index
    %c0_21 = arith.constant 0 : index
    %37 = vector.load %arg16[%c0_20, %c0_21] : memref<32x256xbf16, #tpu.memory_space<vmem>>, vector<32x256xbf16>
    tpu.vector_store %arg16[%c0_20, %c0_21], %36 {strides = array<i32>} : memref<32x256xbf16, #tpu.memory_space<vmem>>, vector<32x256xbf16>,
    %c0_22 = arith.constant 0 : index
    %c0_23 = arith.constant 0 : index
    %38 = vector.load %arg10[%c0_22, %c0_23] : memref<128x256xbf16, #tpu.memory_space<vmem>>, vector<128x256xbf16>
    %39 = arith.truncf %6 : vector<32x256xf32> to vector<32x256xbf16>
    %40 = arith.truncf %33 : vector<32x256xf32> to vector<32x256xbf16>
    %41 = tpu.concatenate %39, %40 in 0 : vector<32x256xbf16>, vector<32x256xbf16> -> vector<64x256xbf16>
    %cst_24 = arith.constant dense<0.000000e+00> : vector<64x128xf32>
    %42 = tpu.matmul %41, %38, %cst_24 {dimension_numbers = #tpu.dot_dimension_numbers<[1], [1], [0], [0], [0, 0, 1, 0], [], []>} : vector<64x256xbf16>, vector<128x256xbf16>, vector<64x128xf32> -> vector<64x128xf32>
    %cst_25 = arith.constant dense<0xFF800000> : vector<64xf32>
    %43 = vector.multi_reduction <maximumf>, %42, %cst_25 [1] : vector<64x128xf32> to vector<64xf32>
    %44 = vector.shape_cast %43 : vector<64xf32> to vector<64x1xf32>
    %45 = vector.broadcast %44 : vector<64x1xf32> to vector<64x128xf32>
    %46 = arith.subf %42, %45 : vector<64x128xf32>
    %47 = math.exp %46 : vector<64x128xf32>
    %cst_26 = arith.constant dense<0.000000e+00> : vector<64xf32>
    %48 = vector.multi_reduction <add>, %47, %cst_26 [1] : vector<64x128xf32> to vector<64xf32>
    %49 = vector.shape_cast %48 : vector<64xf32> to vector<64x1xf32>
    %50 = tpu.reciprocal %49 {approx = true} : vector<64x1xf32> -> vector<64x1xf32>
    %51 = vector.broadcast %50 : vector<64x1xf32> to vector<64x128xf32>
    %52 = arith.mulf %47, %51 : vector<64x128xf32>
    %53 = arith.truncf %52 : vector<64x128xf32> to vector<64x128xbf16>
    %cst_27 = arith.constant dense<0.000000e+00> : vector<64x256xf32>
    %54 = tpu.matmul %53, %38, %cst_27 {dimension_numbers = #tpu.dot_dimension_numbers<[1], [0], [0], [1], [0, 0, 1, 1], [], []>} : vector<64x128xbf16>, vector<128x256xbf16>, vector<64x256xf32> -> vector<64x256xf32>
    %c0_28 = arith.constant 0 : index
    %c0_29 = arith.constant 0 : index
    %55 = vector.load %arg11[%c0_28, %c0_29] : memref<1x256xbf16, #tpu.memory_space<vmem>>, vector<1x256xbf16>
    %56 = arith.extf %55 : vector<1x256xbf16> to vector<1x256xf32>
    %c0_30 = arith.constant 0 : index
    %c0_31 = arith.constant 0 : index
    %57 = vector.load %arg12[%c0_30, %c0_31] : memref<1x256xbf16, #tpu.memory_space<vmem>>, vector<1x256xbf16>
    %58 = arith.extf %57 : vector<1x256xbf16> to vector<1x256xf32>
    %cst_32 = arith.constant dense<0.000000e+00> : vector<64xf32>
    %59 = vector.multi_reduction <add>, %54, %cst_32 [1] : vector<64x256xf32> to vector<64xf32>
    %60 = vector.shape_cast %59 : vector<64xf32> to vector<64x1xf32>
    %cst_33 = arith.constant 2.560000e+02 : f32
    %61 = vector.broadcast %cst_33 : f32 to vector<64x1xf32>
    %62 = arith.divf %60, %61 : vector<64x1xf32>
    %63 = vector.broadcast %62 : vector<64x1xf32> to vector<64x256xf32>
    %64 = arith.subf %54, %63 : vector<64x256xf32>
    %65 = arith.mulf %64, %64 : vector<64x256xf32>
    %cst_34 = arith.constant dense<0.000000e+00> : vector<64xf32>
    %66 = vector.multi_reduction <add>, %65, %cst_34 [1] : vector<64x256xf32> to vector<64xf32>
    %67 = vector.shape_cast %66 : vector<64xf32> to vector<64x1xf32>
    %cst_35 = arith.constant 2.560000e+02 : f32
    %68 = vector.broadcast %cst_35 : f32 to vector<64x1xf32>
    %69 = arith.divf %67, %68 : vector<64x1xf32>
    %70 = vector.broadcast %62 : vector<64x1xf32> to vector<64x256xf32>
    %71 = arith.subf %54, %70 : vector<64x256xf32>
    %cst_36 = arith.constant 9.99999974E-6 : f32
    %72 = vector.broadcast %cst_36 : f32 to vector<64x1xf32>
    %73 = arith.addf %69, %72 : vector<64x1xf32>
    %74 = math.rsqrt %73 : vector<64x1xf32>
    %75 = vector.broadcast %74 : vector<64x1xf32> to vector<64x256xf32>
    %76 = arith.mulf %71, %75 : vector<64x256xf32>
    %77 = vector.broadcast %56 : vector<1x256xf32> to vector<64x256xf32>
    %78 = arith.mulf %76, %77 : vector<64x256xf32>
    %79 = vector.broadcast %58 : vector<1x256xf32> to vector<64x256xf32>
    %80 = arith.addf %78, %79 : vector<64x256xf32>
    %81 = arith.negf %80 : vector<64x256xf32>
    %82 = math.exp %81 : vector<64x256xf32>
    %cst_37 = arith.constant 1.000000e+00 : f32
    %83 = vector.broadcast %cst_37 : f32 to vector<64x256xf32>
    %84 = arith.addf %83, %82 : vector<64x256xf32>
    %85 = arith.divf %83, %84 : vector<64x256xf32>
    %86 = arith.mulf %80, %85 : vector<64x256xf32>
    %87 = arith.truncf %86 : vector<64x256xf32> to vector<64x256xbf16>
    %c0_38 = arith.constant 0 : index
    %c0_39 = arith.constant 0 : index
    %88 = vector.load %arg13[%c0_38, %c0_39] : memref<256x128xbf16, #tpu.memory_space<vmem>>, vector<256x128xbf16>
    %cst_40 = arith.constant dense<0.000000e+00> : vector<64x128xf32>
    %89 = tpu.matmul %87, %88, %cst_40 {dimension_numbers = #tpu.dot_dimension_numbers<[1], [0], [0], [1], [0, 0, 1, 1], [], []>} : vector<64x256xbf16>, vector<256x128xbf16>, vector<64x128xf32> -> vector<64x128xf32>
    %c0_41 = arith.constant 0 : index
    %c0_42 = arith.constant 0 : index
    %90 = vector.load %arg14[%c0_41, %c0_42] : memref<1x128xbf16, #tpu.memory_space<vmem>>, vector<1x128xbf16>
    %91 = arith.extf %90 : vector<1x128xbf16> to vector<1x128xf32>
    %92 = vector.broadcast %91 : vector<1x128xf32> to vector<64x128xf32>
    %93 = arith.addf %89, %92 : vector<64x128xf32>
    %94 = vector.extract_strided_slice %93 {offsets = [0, 0], sizes = [32, 128], strides = [1, 1]} : vector<64x128xf32> to vector<32x128xf32>
    %c0_43 = arith.constant 0 : index
    %c0_44 = arith.constant 0 : index
    %95 = vector.load %arg17[%c0_43, %c0_44] : memref<32x128xf32, #tpu.memory_space<vmem>>, vector<32x128xf32>
    tpu.vector_store %arg17[%c0_43, %c0_44], %94 {strides = array<i32>} : memref<32x128xf32, #tpu.memory_space<vmem>>, vector<32x128xf32>,
    %96 = vector.extract_strided_slice %93 {offsets = [32, 0], sizes = [32, 128], strides = [1, 1]} : vector<64x128xf32> to vector<32x128xf32>
    %c0_45 = arith.constant 0 : index
    %c0_46 = arith.constant 0 : index
    %97 = vector.load %arg18[%c0_45, %c0_46] : memref<32x128xf32, #tpu.memory_space<vmem>>, vector<32x128xf32>
    tpu.vector_store %arg18[%c0_45, %c0_46], %96 {strides = array<i32>} : memref<32x128xf32, #tpu.memory_space<vmem>>, vector<32x128xf32>,
    return
  }
  func.func @transform_0(%arg0: i32) -> (i32, i32) {
    %c0_i32 = arith.constant 0 : i32
    %c0_i32_0 = arith.constant 0 : i32
    return %arg0, %c0_i32 : i32, i32
  }
  func.func @transform_1(%arg0: i32) -> (i32, i32) {
    %c0_i32 = arith.constant 0 : i32
    %c0_i32_0 = arith.constant 0 : i32
    return %arg0, %c0_i32 : i32, i32
  }
  func.func @transform_2(%arg0: i32) -> (i32, i32) {
    %c0_i32 = arith.constant 0 : i32
    %c0_i32_0 = arith.constant 0 : i32
    return %arg0, %c0_i32 : i32, i32
  }
  func.func @transform_3(%arg0: i32) -> (i32, i32) {
    %c0_i32 = arith.constant 0 : i32
    %c0_i32_0 = arith.constant 0 : i32
    %c0_i32_1 = arith.constant 0 : i32
    return %c0_i32, %c0_i32_0 : i32, i32
  }
  func.func @transform_4(%arg0: i32) -> (i32, i32) {
    %c0_i32 = arith.constant 0 : i32
    %c0_i32_0 = arith.constant 0 : i32
    %c0_i32_1 = arith.constant 0 : i32
    return %c0_i32, %c0_i32_0 : i32, i32
  }
  func.func @transform_5(%arg0: i32) -> (i32, i32) {
    %c0_i32 = arith.constant 0 : i32
    %c0_i32_0 = arith.constant 0 : i32
    %c0_i32_1 = arith.constant 0 : i32
    return %c0_i32, %c0_i32_0 : i32, i32
  }
  func.func @transform_6(%arg0: i32) -> (i32, i32) {
    %c0_i32 = arith.constant 0 : i32
    %c0_i32_0 = arith.constant 0 : i32
    %c0_i32_1 = arith.constant 0 : i32
    return %c0_i32, %c0_i32_0 : i32, i32
  }
  func.func @transform_7(%arg0: i32) -> (i32, i32) {
    %c0_i32 = arith.constant 0 : i32
    %c0_i32_0 = arith.constant 0 : i32
    %c0_i32_1 = arith.constant 0 : i32
    return %c0_i32, %c0_i32_0 : i32, i32
  }
  func.func @transform_8(%arg0: i32) -> (i32, i32) {
    %c0_i32 = arith.constant 0 : i32
    %c0_i32_0 = arith.constant 0 : i32
    %c0_i32_1 = arith.constant 0 : i32
    return %c0_i32, %c0_i32_0 : i32, i32
  }
  func.func @transform_9(%arg0: i32) -> (i32, i32) {
    %c0_i32 = arith.constant 0 : i32
    %c0_i32_0 = arith.constant 0 : i32
    %c0_i32_1 = arith.constant 0 : i32
    return %c0_i32, %c0_i32_0 : i32, i32
  }
  func.func @transform_10(%arg0: i32) -> (i32, i32) {
    %c0_i32 = arith.constant 0 : i32
    %c0_i32_0 = arith.constant 0 : i32
    %c0_i32_1 = arith.constant 0 : i32
    return %c0_i32, %c0_i32_0 : i32, i32
  }
  func.func @transform_11(%arg0: i32) -> (i32, i32) {
    %c0_i32 = arith.constant 0 : i32
    %c0_i32_0 = arith.constant 0 : i32
    %c0_i32_1 = arith.constant 0 : i32
    return %c0_i32, %c0_i32_0 : i32, i32
  }
  func.func @transform_12(%arg0: i32) -> (i32, i32) {
    %c0_i32 = arith.constant 0 : i32
    %c0_i32_0 = arith.constant 0 : i32
    %c0_i32_1 = arith.constant 0 : i32
    return %c0_i32, %c0_i32_0 : i32, i32
  }
  func.func @transform_13(%arg0: i32) -> (i32, i32) {
    %c0_i32 = arith.constant 0 : i32
    %c0_i32_0 = arith.constant 0 : i32
    %c0_i32_1 = arith.constant 0 : i32
    return %c0_i32, %c0_i32_0 : i32, i32
  }
  func.func @transform_14(%arg0: i32) -> (i32, i32) {
    %c0_i32 = arith.constant 0 : i32
    %c0_i32_0 = arith.constant 0 : i32
    return %arg0, %c0_i32 : i32, i32
  }
  func.func @transform_15(%arg0: i32) -> (i32, i32) {
    %c0_i32 = arith.constant 0 : i32
    %c0_i32_0 = arith.constant 0 : i32
    return %arg0, %c0_i32 : i32, i32
  }
  func.func @transform_16(%arg0: i32) -> (i32, i32) {
    %c0_i32 = arith.constant 0 : i32
    %c0_i32_0 = arith.constant 0 : i32
    return %arg0, %c0_i32 : i32, i32
  }
  func.func @transform_17(%arg0: i32) -> (i32, i32) {
    %c0_i32 = arith.constant 0 : i32
    %c0_i32_0 = arith.constant 0 : i32
    return %arg0, %c0_i32 : i32, i32
  }
}

module attributes {stable_mosaic.version = 11 : i64} {
  func.func @_heads_kernel(%arg0: i32, %arg1: i32, %arg2: memref<8x128xbf16, #tpu.memory_space<vmem>>, %arg3: memref<8x256xbf16, #tpu.memory_space<vmem>>, %arg4: memref<8x256xbf16, #tpu.memory_space<vmem>>, %arg5: memref<128x256xbf16, #tpu.memory_space<vmem>>, %arg6: memref<1x256xbf16, #tpu.memory_space<vmem>>, %arg7: memref<1x256xbf16, #tpu.memory_space<vmem>>, %arg8: memref<1x256xbf16, #tpu.memory_space<vmem>>, %arg9: memref<256x256xbf16, #tpu.memory_space<vmem>>, %arg10: memref<256x256xbf16, #tpu.memory_space<vmem>>, %arg11: memref<1x256xbf16, #tpu.memory_space<vmem>>, %arg12: memref<256x128xbf16, #tpu.memory_space<vmem>>, %arg13: memref<1x128xbf16, #tpu.memory_space<vmem>>, %arg14: memref<8x256xf32, #tpu.memory_space<vmem>>, %arg15: memref<8x128xf32, #tpu.memory_space<vmem>>, %arg16: memref<8x128xf32, #tpu.memory_space<vmem>>, %arg17: memref<8x1xf32, #tpu.memory_space<vmem>>, %arg18: memref<8x1xf32, #tpu.memory_space<vmem>>, %arg19: memref<8x256xbf16, #tpu.memory_space<vmem>>, %arg20: memref<8x256xbf16, #tpu.memory_space<vmem>>, %arg21: memref<8x1xf32, #tpu.memory_space<vmem>>, %arg22: memref<8x1xf32, #tpu.memory_space<vmem>>, %arg23: memref<8x1xf32, #tpu.memory_space<vmem>>, %arg24: memref<8x1xf32, #tpu.memory_space<vmem>>) attributes {dimension_semantics = [#tpu.dimension_semantics<parallel>, #tpu.dimension_semantics<arbitrary>], iteration_bounds = array<i64: 1, 1>, scalar_prefetch = 0 : i64, scratch_operands = 6 : i64, tpu.core_type = #tpu.core_type<tc>, window_params = [{transform_indices = @transform_0, window_bounds = array<i64: 8, 128>}, {transform_indices = @transform_1, window_bounds = array<i64: 8, 256>}, {transform_indices = @transform_2, window_bounds = array<i64: 8, 256>}, {pipeline_mode = #tpu.pipeline_mode<synchronous>, transform_indices = @transform_3, window_bounds = array<i64: 128, 256>}, {pipeline_mode = #tpu.pipeline_mode<synchronous>, transform_indices = @transform_4, window_bounds = array<i64: 1, 256>}, {pipeline_mode = #tpu.pipeline_mode<synchronous>, transform_indices = @transform_5, window_bounds = array<i64: 1, 256>}, {pipeline_mode = #tpu.pipeline_mode<synchronous>, transform_indices = @transform_6, window_bounds = array<i64: 1, 256>}, {pipeline_mode = #tpu.pipeline_mode<synchronous>, transform_indices = @transform_7, window_bounds = array<i64: 256, 256>}, {pipeline_mode = #tpu.pipeline_mode<synchronous>, transform_indices = @transform_8, window_bounds = array<i64: 256, 256>}, {pipeline_mode = #tpu.pipeline_mode<synchronous>, transform_indices = @transform_9, window_bounds = array<i64: 1, 256>}, {transform_indices = @transform_10, window_bounds = array<i64: 256, 128>}, {transform_indices = @transform_11, window_bounds = array<i64: 1, 128>}, {transform_indices = @transform_12, window_bounds = array<i64: 8, 256>}, {transform_indices = @transform_13, window_bounds = array<i64: 8, 128>}, {transform_indices = @transform_14, window_bounds = array<i64: 8, 128>}, {transform_indices = @transform_15, window_bounds = array<i64: 8, 1>}, {transform_indices = @transform_16, window_bounds = array<i64: 8, 1>}]} {
    %c0_i32 = arith.constant 0 : i32
    %0 = arith.cmpi eq, %arg1, %c0_i32 : i32
    %1 = arith.extui %0 : i1 to i32
    %c0_i32_0 = arith.constant 0 : i32
    %2 = arith.cmpi ne, %1, %c0_i32_0 : i32
    scf.if %2 {
      %c0_39 = arith.constant 0 : index
      %c0_40 = arith.constant 0 : index
      %53 = vector.load %arg2[%c0_39, %c0_40] : memref<8x128xbf16, #tpu.memory_space<vmem>>, vector<8x128xbf16>
      %c0_41 = arith.constant 0 : index
      %c0_42 = arith.constant 0 : index
      %54 = vector.load %arg5[%c0_41, %c0_42] : memref<128x256xbf16, #tpu.memory_space<vmem>>, vector<128x256xbf16>
      %cst_43 = arith.constant dense<0.000000e+00> : vector<8x256xf32>
      %55 = tpu.matmul %53, %54, %cst_43 {dimension_numbers = #tpu.dot_dimension_numbers<[1], [0], [0], [1], [0, 0, 1, 1], [], []>} : vector<8x128xbf16>, vector<128x256xbf16>, vector<8x256xf32> -> vector<8x256xf32>
      %c0_44 = arith.constant 0 : index
      %c0_45 = arith.constant 0 : index
      %56 = vector.load %arg6[%c0_44, %c0_45] : memref<1x256xbf16, #tpu.memory_space<vmem>>, vector<1x256xbf16>
      %57 = arith.extf %56 : vector<1x256xbf16> to vector<1x256xf32>
      %58 = vector.broadcast %57 : vector<1x256xf32> to vector<8x256xf32>
      %59 = arith.addf %55, %58 : vector<8x256xf32>
      %60 = arith.negf %59 : vector<8x256xf32>
      %61 = math.exp %60 : vector<8x256xf32>
      %cst_46 = arith.constant 1.000000e+00 : f32
      %62 = vector.broadcast %cst_46 : f32 to vector<8x256xf32>
      %63 = arith.addf %62, %61 : vector<8x256xf32>
      %64 = arith.divf %62, %63 : vector<8x256xf32>
      %65 = arith.mulf %59, %64 : vector<8x256xf32>
      %c0_47 = arith.constant 0 : index
      %c0_48 = arith.constant 0 : index
      %66 = vector.load %arg7[%c0_47, %c0_48] : memref<1x256xbf16, #tpu.memory_space<vmem>>, vector<1x256xbf16>
      %67 = arith.extf %66 : vector<1x256xbf16> to vector<1x256xf32>
      %c0_49 = arith.constant 0 : index
      %c0_50 = arith.constant 0 : index
      %68 = vector.load %arg8[%c0_49, %c0_50] : memref<1x256xbf16, #tpu.memory_space<vmem>>, vector<1x256xbf16>
      %69 = arith.extf %68 : vector<1x256xbf16> to vector<1x256xf32>
      %cst_51 = arith.constant dense<0.000000e+00> : vector<8xf32>
      %70 = vector.multi_reduction <add>, %65, %cst_51 [1] : vector<8x256xf32> to vector<8xf32>
      %71 = vector.shape_cast %70 : vector<8xf32> to vector<8x1xf32>
      %cst_52 = arith.constant 2.560000e+02 : f32
      %72 = vector.broadcast %cst_52 : f32 to vector<8x1xf32>
      %73 = arith.divf %71, %72 : vector<8x1xf32>
      %74 = vector.broadcast %73 : vector<8x1xf32> to vector<8x256xf32>
      %75 = arith.subf %65, %74 : vector<8x256xf32>
      %76 = arith.mulf %75, %75 : vector<8x256xf32>
      %cst_53 = arith.constant dense<0.000000e+00> : vector<8xf32>
      %77 = vector.multi_reduction <add>, %76, %cst_53 [1] : vector<8x256xf32> to vector<8xf32>
      %78 = vector.shape_cast %77 : vector<8xf32> to vector<8x1xf32>
      %cst_54 = arith.constant 2.560000e+02 : f32
      %79 = vector.broadcast %cst_54 : f32 to vector<8x1xf32>
      %80 = arith.divf %78, %79 : vector<8x1xf32>
      %81 = vector.broadcast %73 : vector<8x1xf32> to vector<8x256xf32>
      %82 = arith.subf %65, %81 : vector<8x256xf32>
      %cst_55 = arith.constant 9.99999974E-6 : f32
      %83 = vector.broadcast %cst_55 : f32 to vector<8x1xf32>
      %84 = arith.addf %80, %83 : vector<8x1xf32>
      %85 = math.rsqrt %84 : vector<8x1xf32>
      %86 = vector.broadcast %85 : vector<8x1xf32> to vector<8x256xf32>
      %87 = arith.mulf %82, %86 : vector<8x256xf32>
      %88 = vector.broadcast %67 : vector<1x256xf32> to vector<8x256xf32>
      %89 = arith.mulf %87, %88 : vector<8x256xf32>
      %90 = vector.broadcast %69 : vector<1x256xf32> to vector<8x256xf32>
      %91 = arith.addf %89, %90 : vector<8x256xf32>
      %cst_56 = arith.constant dense<0xFF800000> : vector<8xf32>
      %92 = vector.multi_reduction <maximumf>, %91, %cst_56 [1] : vector<8x256xf32> to vector<8xf32>
      %93 = vector.shape_cast %92 : vector<8xf32> to vector<8x1xf32>
      %94 = vector.broadcast %93 : vector<8x1xf32> to vector<8x256xf32>
      %95 = arith.subf %91, %94 : vector<8x256xf32>
      %96 = math.exp %95 : vector<8x256xf32>
      %cst_57 = arith.constant dense<0.000000e+00> : vector<8xf32>
      %97 = vector.multi_reduction <add>, %96, %cst_57 [1] : vector<8x256xf32> to vector<8xf32>
      %98 = vector.shape_cast %97 : vector<8xf32> to vector<8x1xf32>
      %99 = math.log %98 : vector<8x1xf32>
      %100 = vector.broadcast %99 : vector<8x1xf32> to vector<8x256xf32>
      %101 = arith.subf %95, %100 : vector<8x256xf32>
      %c0_58 = arith.constant 0 : index
      %c0_59 = arith.constant 0 : index
      %102 = vector.load %arg14[%c0_58, %c0_59] : memref<8x256xf32, #tpu.memory_space<vmem>>, vector<8x256xf32>
      tpu.vector_store %arg14[%c0_58, %c0_59], %101 {strides = array<i32>} : memref<8x256xf32, #tpu.memory_space<vmem>>, vector<8x256xf32>,
      %103 = arith.truncf %91 : vector<8x256xf32> to vector<8x256xbf16>
      %c0_60 = arith.constant 0 : index
      %c0_61 = arith.constant 0 : index
      %104 = vector.load %arg19[%c0_60, %c0_61] : memref<8x256xbf16, #tpu.memory_space<vmem>>, vector<8x256xbf16>
      tpu.vector_store %arg19[%c0_60, %c0_61], %103 {strides = array<i32>} : memref<8x256xbf16, #tpu.memory_space<vmem>>, vector<8x256xbf16>,
      %c0_62 = arith.constant 0 : index
      %c0_63 = arith.constant 0 : index
      %105 = vector.load %arg3[%c0_62, %c0_63] : memref<8x256xbf16, #tpu.memory_space<vmem>>, vector<8x256xbf16>
      %c0_64 = arith.constant 0 : index
      %c0_65 = arith.constant 0 : index
      %106 = vector.load %arg9[%c0_64, %c0_65] : memref<256x256xbf16, #tpu.memory_space<vmem>>, vector<256x256xbf16>
      %cst_66 = arith.constant dense<0.000000e+00> : vector<8x256xf32>
      %107 = tpu.matmul %105, %106, %cst_66 {dimension_numbers = #tpu.dot_dimension_numbers<[1], [0], [0], [1], [0, 0, 1, 1], [], []>} : vector<8x256xbf16>, vector<256x256xbf16>, vector<8x256xf32> -> vector<8x256xf32>
      %c0_67 = arith.constant 0 : index
      %c0_68 = arith.constant 0 : index
      %108 = vector.load %arg4[%c0_67, %c0_68] : memref<8x256xbf16, #tpu.memory_space<vmem>>, vector<8x256xbf16>
      %c0_69 = arith.constant 0 : index
      %c0_70 = arith.constant 0 : index
      %109 = vector.load %arg10[%c0_69, %c0_70] : memref<256x256xbf16, #tpu.memory_space<vmem>>, vector<256x256xbf16>
      %cst_71 = arith.constant dense<0.000000e+00> : vector<8x256xf32>
      %110 = tpu.matmul %108, %109, %cst_71 {dimension_numbers = #tpu.dot_dimension_numbers<[1], [0], [0], [1], [0, 0, 1, 1], [], []>} : vector<8x256xbf16>, vector<256x256xbf16>, vector<8x256xf32> -> vector<8x256xf32>
      %111 = arith.addf %107, %110 : vector<8x256xf32>
      %c0_72 = arith.constant 0 : index
      %c0_73 = arith.constant 0 : index
      %112 = vector.load %arg11[%c0_72, %c0_73] : memref<1x256xbf16, #tpu.memory_space<vmem>>, vector<1x256xbf16>
      %113 = arith.extf %112 : vector<1x256xbf16> to vector<1x256xf32>
      %114 = vector.broadcast %113 : vector<1x256xf32> to vector<8x256xf32>
      %115 = arith.addf %111, %114 : vector<8x256xf32>
      %116 = arith.truncf %115 : vector<8x256xf32> to vector<8x256xbf16>
      %c0_74 = arith.constant 0 : index
      %c0_75 = arith.constant 0 : index
      %117 = vector.load %arg20[%c0_74, %c0_75] : memref<8x256xbf16, #tpu.memory_space<vmem>>, vector<8x256xbf16>
      tpu.vector_store %arg20[%c0_74, %c0_75], %116 {strides = array<i32>} : memref<8x256xbf16, #tpu.memory_space<vmem>>, vector<8x256xbf16>,
      %cst_76 = arith.constant -1.000000e+30 : f32
      %118 = vector.broadcast %cst_76 : f32 to vector<8x1xf32>
      %cst_77 = arith.constant 0.000000e+00 : f32
      %119 = vector.broadcast %cst_77 : f32 to vector<8x1xf32>
      %c0_78 = arith.constant 0 : index
      %c0_79 = arith.constant 0 : index
      %120 = vector.load %arg21[%c0_78, %c0_79] : memref<8x1xf32, #tpu.memory_space<vmem>>, vector<8x1xf32>
      tpu.vector_store %arg21[%c0_78, %c0_79], %118 {strides = array<i32>} : memref<8x1xf32, #tpu.memory_space<vmem>>, vector<8x1xf32>,
      %c0_80 = arith.constant 0 : index
      %c0_81 = arith.constant 0 : index
      %121 = vector.load %arg23[%c0_80, %c0_81] : memref<8x1xf32, #tpu.memory_space<vmem>>, vector<8x1xf32>
      tpu.vector_store %arg23[%c0_80, %c0_81], %118 {strides = array<i32>} : memref<8x1xf32, #tpu.memory_space<vmem>>, vector<8x1xf32>,
      %c0_82 = arith.constant 0 : index
      %c0_83 = arith.constant 0 : index
      %122 = vector.load %arg22[%c0_82, %c0_83] : memref<8x1xf32, #tpu.memory_space<vmem>>, vector<8x1xf32>
      tpu.vector_store %arg22[%c0_82, %c0_83], %119 {strides = array<i32>} : memref<8x1xf32, #tpu.memory_space<vmem>>, vector<8x1xf32>,
      %c0_84 = arith.constant 0 : index
      %c0_85 = arith.constant 0 : index
      %123 = vector.load %arg24[%c0_84, %c0_85] : memref<8x1xf32, #tpu.memory_space<vmem>>, vector<8x1xf32>
      tpu.vector_store %arg24[%c0_84, %c0_85], %119 {strides = array<i32>} : memref<8x1xf32, #tpu.memory_space<vmem>>, vector<8x1xf32>,
    } else {
    }
    %c0 = arith.constant 0 : index
    %c0_1 = arith.constant 0 : index
    %3 = vector.load %arg12[%c0, %c0_1] : memref<256x128xbf16, #tpu.memory_space<vmem>>, vector<256x128xbf16>
    %c0_2 = arith.constant 0 : index
    %c0_3 = arith.constant 0 : index
    %4 = vector.load %arg13[%c0_2, %c0_3] : memref<1x128xbf16, #tpu.memory_space<vmem>>, vector<1x128xbf16>
    %5 = arith.extf %4 : vector<1x128xbf16> to vector<1x128xf32>
    %c0_4 = arith.constant 0 : index
    %c0_5 = arith.constant 0 : index
    %6 = vector.load %arg19[%c0_4, %c0_5] : memref<8x256xbf16, #tpu.memory_space<vmem>>, vector<8x256xbf16>
    %cst = arith.constant dense<0.000000e+00> : vector<8x128xf32>
    %7 = tpu.matmul %6, %3, %cst {dimension_numbers = #tpu.dot_dimension_numbers<[1], [0], [0], [1], [0, 0, 1, 1], [], []>} : vector<8x256xbf16>, vector<256x128xbf16>, vector<8x128xf32> -> vector<8x128xf32>
    %8 = vector.broadcast %5 : vector<1x128xf32> to vector<8x128xf32>
    %9 = arith.addf %7, %8 : vector<8x128xf32>
    %c0_6 = arith.constant 0 : index
    %c0_7 = arith.constant 0 : index
    %10 = vector.load %arg20[%c0_6, %c0_7] : memref<8x256xbf16, #tpu.memory_space<vmem>>, vector<8x256xbf16>
    %cst_8 = arith.constant dense<0.000000e+00> : vector<8x128xf32>
    %11 = tpu.matmul %10, %3, %cst_8 {dimension_numbers = #tpu.dot_dimension_numbers<[1], [0], [0], [1], [0, 0, 1, 1], [], []>} : vector<8x256xbf16>, vector<256x128xbf16>, vector<8x128xf32> -> vector<8x128xf32>
    %12 = vector.broadcast %5 : vector<1x128xf32> to vector<8x128xf32>
    %13 = arith.addf %11, %12 : vector<8x128xf32>
    %c0_9 = arith.constant 0 : index
    %c0_10 = arith.constant 0 : index
    %14 = vector.load %arg15[%c0_9, %c0_10] : memref<8x128xf32, #tpu.memory_space<vmem>>, vector<8x128xf32>
    tpu.vector_store %arg15[%c0_9, %c0_10], %9 {strides = array<i32>} : memref<8x128xf32, #tpu.memory_space<vmem>>, vector<8x128xf32>,
    %c0_11 = arith.constant 0 : index
    %c0_12 = arith.constant 0 : index
    %15 = vector.load %arg16[%c0_11, %c0_12] : memref<8x128xf32, #tpu.memory_space<vmem>>, vector<8x128xf32>
    tpu.vector_store %arg16[%c0_11, %c0_12], %13 {strides = array<i32>} : memref<8x128xf32, #tpu.memory_space<vmem>>, vector<8x128xf32>,
    %c0_13 = arith.constant 0 : index
    %c0_14 = arith.constant 0 : index
    %16 = vector.load %arg21[%c0_13, %c0_14] : memref<8x1xf32, #tpu.memory_space<vmem>>, vector<8x1xf32>
    %cst_15 = arith.constant dense<0xFF800000> : vector<8xf32>
    %17 = vector.multi_reduction <maximumf>, %9, %cst_15 [1] : vector<8x128xf32> to vector<8xf32>
    %18 = vector.shape_cast %17 : vector<8xf32> to vector<8x1xf32>
    %19 = arith.maximumf %16, %18 : vector<8x1xf32>
    %c0_16 = arith.constant 0 : index
    %c0_17 = arith.constant 0 : index
    %20 = vector.load %arg22[%c0_16, %c0_17] : memref<8x1xf32, #tpu.memory_space<vmem>>, vector<8x1xf32>
    %c0_18 = arith.constant 0 : index
    %c0_19 = arith.constant 0 : index
    %21 = vector.load %arg21[%c0_18, %c0_19] : memref<8x1xf32, #tpu.memory_space<vmem>>, vector<8x1xf32>
    %22 = arith.subf %21, %19 : vector<8x1xf32>
    %23 = math.exp %22 : vector<8x1xf32>
    %24 = arith.mulf %20, %23 : vector<8x1xf32>
    %25 = vector.broadcast %19 : vector<8x1xf32> to vector<8x128xf32>
    %26 = arith.subf %9, %25 : vector<8x128xf32>
    %27 = math.exp %26 : vector<8x128xf32>
    %cst_20 = arith.constant dense<0.000000e+00> : vector<8xf32>
    %28 = vector.multi_reduction <add>, %27, %cst_20 [1] : vector<8x128xf32> to vector<8xf32>
    %29 = vector.shape_cast %28 : vector<8xf32> to vector<8x1xf32>
    %30 = arith.addf %24, %29 : vector<8x1xf32>
    %c0_21 = arith.constant 0 : index
    %c0_22 = arith.constant 0 : index
    %31 = vector.load %arg22[%c0_21, %c0_22] : memref<8x1xf32, #tpu.memory_space<vmem>>, vector<8x1xf32>
    tpu.vector_store %arg22[%c0_21, %c0_22], %30 {strides = array<i32>} : memref<8x1xf32, #tpu.memory_space<vmem>>, vector<8x1xf32>,
    %c0_23 = arith.constant 0 : index
    %c0_24 = arith.constant 0 : index
    %32 = vector.load %arg21[%c0_23, %c0_24] : memref<8x1xf32, #tpu.memory_space<vmem>>, vector<8x1xf32>
    tpu.vector_store %arg21[%c0_23, %c0_24], %19 {strides = array<i32>} : memref<8x1xf32, #tpu.memory_space<vmem>>, vector<8x1xf32>,
    %c0_25 = arith.constant 0 : index
    %c0_26 = arith.constant 0 : index
    %33 = vector.load %arg23[%c0_25, %c0_26] : memref<8x1xf32, #tpu.memory_space<vmem>>, vector<8x1xf32>
    %cst_27 = arith.constant dense<0xFF800000> : vector<8xf32>
    %34 = vector.multi_reduction <maximumf>, %13, %cst_27 [1] : vector<8x128xf32> to vector<8xf32>
    %35 = vector.shape_cast %34 : vector<8xf32> to vector<8x1xf32>
    %36 = arith.maximumf %33, %35 : vector<8x1xf32>
    %c0_28 = arith.constant 0 : index
    %c0_29 = arith.constant 0 : index
    %37 = vector.load %arg24[%c0_28, %c0_29] : memref<8x1xf32, #tpu.memory_space<vmem>>, vector<8x1xf32>
    %c0_30 = arith.constant 0 : index
    %c0_31 = arith.constant 0 : index
    %38 = vector.load %arg23[%c0_30, %c0_31] : memref<8x1xf32, #tpu.memory_space<vmem>>, vector<8x1xf32>
    %39 = arith.subf %38, %36 : vector<8x1xf32>
    %40 = math.exp %39 : vector<8x1xf32>
    %41 = arith.mulf %37, %40 : vector<8x1xf32>
    %42 = vector.broadcast %36 : vector<8x1xf32> to vector<8x128xf32>
    %43 = arith.subf %13, %42 : vector<8x128xf32>
    %44 = math.exp %43 : vector<8x128xf32>
    %cst_32 = arith.constant dense<0.000000e+00> : vector<8xf32>
    %45 = vector.multi_reduction <add>, %44, %cst_32 [1] : vector<8x128xf32> to vector<8xf32>
    %46 = vector.shape_cast %45 : vector<8xf32> to vector<8x1xf32>
    %47 = arith.addf %41, %46 : vector<8x1xf32>
    %c0_33 = arith.constant 0 : index
    %c0_34 = arith.constant 0 : index
    %48 = vector.load %arg24[%c0_33, %c0_34] : memref<8x1xf32, #tpu.memory_space<vmem>>, vector<8x1xf32>
    tpu.vector_store %arg24[%c0_33, %c0_34], %47 {strides = array<i32>} : memref<8x1xf32, #tpu.memory_space<vmem>>, vector<8x1xf32>,
    %c0_35 = arith.constant 0 : index
    %c0_36 = arith.constant 0 : index
    %49 = vector.load %arg23[%c0_35, %c0_36] : memref<8x1xf32, #tpu.memory_space<vmem>>, vector<8x1xf32>
    tpu.vector_store %arg23[%c0_35, %c0_36], %36 {strides = array<i32>} : memref<8x1xf32, #tpu.memory_space<vmem>>, vector<8x1xf32>,
    %c0_i32_37 = arith.constant 0 : i32
    %50 = arith.cmpi eq, %arg1, %c0_i32_37 : i32
    %51 = arith.extui %50 : i1 to i32
    %c0_i32_38 = arith.constant 0 : i32
    %52 = arith.cmpi ne, %51, %c0_i32_38 : i32
    scf.if %52 {
      %c0_39 = arith.constant 0 : index
      %c0_40 = arith.constant 0 : index
      %53 = vector.load %arg21[%c0_39, %c0_40] : memref<8x1xf32, #tpu.memory_space<vmem>>, vector<8x1xf32>
      %c0_41 = arith.constant 0 : index
      %c0_42 = arith.constant 0 : index
      %54 = vector.load %arg22[%c0_41, %c0_42] : memref<8x1xf32, #tpu.memory_space<vmem>>, vector<8x1xf32>
      %55 = math.log %54 : vector<8x1xf32>
      %56 = arith.addf %53, %55 : vector<8x1xf32>
      %c0_43 = arith.constant 0 : index
      %c0_44 = arith.constant 0 : index
      %57 = vector.load %arg17[%c0_43, %c0_44] : memref<8x1xf32, #tpu.memory_space<vmem>>, vector<8x1xf32>
      tpu.vector_store %arg17[%c0_43, %c0_44], %56 {strides = array<i32>} : memref<8x1xf32, #tpu.memory_space<vmem>>, vector<8x1xf32>,
      %c0_45 = arith.constant 0 : index
      %c0_46 = arith.constant 0 : index
      %58 = vector.load %arg23[%c0_45, %c0_46] : memref<8x1xf32, #tpu.memory_space<vmem>>, vector<8x1xf32>
      %c0_47 = arith.constant 0 : index
      %c0_48 = arith.constant 0 : index
      %59 = vector.load %arg24[%c0_47, %c0_48] : memref<8x1xf32, #tpu.memory_space<vmem>>, vector<8x1xf32>
      %60 = math.log %59 : vector<8x1xf32>
      %61 = arith.addf %58, %60 : vector<8x1xf32>
      %c0_49 = arith.constant 0 : index
      %c0_50 = arith.constant 0 : index
      %62 = vector.load %arg18[%c0_49, %c0_50] : memref<8x1xf32, #tpu.memory_space<vmem>>, vector<8x1xf32>
      tpu.vector_store %arg18[%c0_49, %c0_50], %61 {strides = array<i32>} : memref<8x1xf32, #tpu.memory_space<vmem>>, vector<8x1xf32>,
    } else {
    }
    return
  }
  func.func @transform_0(%arg0: i32, %arg1: i32) -> (i32, i32) {
    %c0_i32 = arith.constant 0 : i32
    %c0_i32_0 = arith.constant 0 : i32
    return %arg0, %c0_i32 : i32, i32
  }
  func.func @transform_1(%arg0: i32, %arg1: i32) -> (i32, i32) {
    %c0_i32 = arith.constant 0 : i32
    %c0_i32_0 = arith.constant 0 : i32
    return %arg0, %c0_i32 : i32, i32
  }
  func.func @transform_2(%arg0: i32, %arg1: i32) -> (i32, i32) {
    %c0_i32 = arith.constant 0 : i32
    %c0_i32_0 = arith.constant 0 : i32
    return %arg0, %c0_i32 : i32, i32
  }
  func.func @transform_3(%arg0: i32, %arg1: i32) -> (i32, i32) {
    %c0_i32 = arith.constant 0 : i32
    %c0_i32_0 = arith.constant 0 : i32
    %c0_i32_1 = arith.constant 0 : i32
    return %c0_i32, %c0_i32_0 : i32, i32
  }
  func.func @transform_4(%arg0: i32, %arg1: i32) -> (i32, i32) {
    %c0_i32 = arith.constant 0 : i32
    %c0_i32_0 = arith.constant 0 : i32
    %c0_i32_1 = arith.constant 0 : i32
    return %c0_i32, %c0_i32_0 : i32, i32
  }
  func.func @transform_5(%arg0: i32, %arg1: i32) -> (i32, i32) {
    %c0_i32 = arith.constant 0 : i32
    %c0_i32_0 = arith.constant 0 : i32
    %c0_i32_1 = arith.constant 0 : i32
    return %c0_i32, %c0_i32_0 : i32, i32
  }
  func.func @transform_6(%arg0: i32, %arg1: i32) -> (i32, i32) {
    %c0_i32 = arith.constant 0 : i32
    %c0_i32_0 = arith.constant 0 : i32
    %c0_i32_1 = arith.constant 0 : i32
    return %c0_i32, %c0_i32_0 : i32, i32
  }
  func.func @transform_7(%arg0: i32, %arg1: i32) -> (i32, i32) {
    %c0_i32 = arith.constant 0 : i32
    %c0_i32_0 = arith.constant 0 : i32
    %c0_i32_1 = arith.constant 0 : i32
    return %c0_i32, %c0_i32_0 : i32, i32
  }
  func.func @transform_8(%arg0: i32, %arg1: i32) -> (i32, i32) {
    %c0_i32 = arith.constant 0 : i32
    %c0_i32_0 = arith.constant 0 : i32
    %c0_i32_1 = arith.constant 0 : i32
    return %c0_i32, %c0_i32_0 : i32, i32
  }
  func.func @transform_9(%arg0: i32, %arg1: i32) -> (i32, i32) {
    %c0_i32 = arith.constant 0 : i32
    %c0_i32_0 = arith.constant 0 : i32
    %c0_i32_1 = arith.constant 0 : i32
    return %c0_i32, %c0_i32_0 : i32, i32
  }
  func.func @transform_10(%arg0: i32, %arg1: i32) -> (i32, i32) {
    %c0_i32 = arith.constant 0 : i32
    %c0_i32_0 = arith.constant 0 : i32
    return %c0_i32, %arg1 : i32, i32
  }
  func.func @transform_11(%arg0: i32, %arg1: i32) -> (i32, i32) {
    %c0_i32 = arith.constant 0 : i32
    %c0_i32_0 = arith.constant 0 : i32
    return %c0_i32, %arg1 : i32, i32
  }
  func.func @transform_12(%arg0: i32, %arg1: i32) -> (i32, i32) {
    %c0_i32 = arith.constant 0 : i32
    %c0_i32_0 = arith.constant 0 : i32
    return %arg0, %c0_i32 : i32, i32
  }
  func.func @transform_13(%arg0: i32, %arg1: i32) -> (i32, i32) {
    %c0_i32 = arith.constant 0 : i32
    return %arg0, %arg1 : i32, i32
  }
  func.func @transform_14(%arg0: i32, %arg1: i32) -> (i32, i32) {
    %c0_i32 = arith.constant 0 : i32
    return %arg0, %arg1 : i32, i32
  }
  func.func @transform_15(%arg0: i32, %arg1: i32) -> (i32, i32) {
    %c0_i32 = arith.constant 0 : i32
    %c0_i32_0 = arith.constant 0 : i32
    return %arg0, %c0_i32 : i32, i32
  }
  func.func @transform_16(%arg0: i32, %arg1: i32) -> (i32, i32) {
    %c0_i32 = arith.constant 0 : i32
    %c0_i32_0 = arith.constant 0 : i32
    return %arg0, %c0_i32 : i32, i32
  }
}

</mosaic_0001>

<bundles_post_ra>
// kernel: cued_speech_transformer_forward.2
= control target key start
LH: loop header
LB: loop body
LE: loop exit
PB: predicated region body
PF: predicated region fallthrough
CT: control target
= control target key end

     0   :  { %v1983_v27 = vmov 0   ;;  %vm123_vm0 = vcmask 523264   ;;  %s3003_s3 = inlined_call_operand.vmem [shape: bf16[64,256], index: 3, kind: input, shape index: {}]   ;;  %s3004_s5 = inlined_call_operand.vmem [shape: bf16[64,256], index: 5, kind: input, shape index: {}]   ;;  %s3005_s2 = inlined_call_operand.vmem [shape: bf16[32,2], index: 2, kind: input, shape index: {}]   ;;  %s3006_s9 = inlined_call_operand.vmem [shape: bf16[128,256], index: 9, kind: input, shape index: {}]   ;;  %s3007_s0 = inlined_call_operand.vmem [shape: bf16[32,64], index: 0, kind: input, shape index: {}]   ;;  %s3008_s1 = inlined_call_operand.vmem [shape: bf16[32,64], index: 1, kind: input, shape index: {}]   ;;  %s3009_s4 = inlined_call_operand.vmem [shape: bf16[1,256], index: 4, kind: input, shape index: {}]   ;;  %s3010_s7 = inlined_call_operand.vmem [shape: bf16[2,256], index: 7, kind: input, shape index: {}]   ;;  %s3011_s6 = inlined_call_operand.vmem [shape: bf16[1,256], index: 6, kind: input, shape index: {}]   ;;  %s3012_s8 = inlined_call_operand.vmem [shape: bf16[1,256], index: 8, kind: input, shape index: {}]   ;;  %s3013_s14 = inlined_call_operand.vmem [shape: bf16[32,256], index: 14, kind: output, shape index: {0}]   ;;  %s3014_s15 = inlined_call_operand.vmem [shape: bf16[32,256], index: 15, kind: output, shape index: {1}]   ;;  %s3015_s12 = inlined_call_operand.vmem [shape: bf16[256,128], index: 12, kind: input, shape index: {}]   ;;  %s3016_s10 = inlined_call_operand.vmem [shape: bf16[1,256], index: 10, kind: input, shape index: {}]   ;;  %s3017_s11 = inlined_call_operand.vmem [shape: bf16[1,256], index: 11, kind: input, shape index: {}]   ;;  %s3018_s13 = inlined_call_operand.vmem [shape: bf16[1,128], index: 13, kind: input, shape index: {}]   ;;  %s3019_s16 = inlined_call_operand.vmem [shape: f32[32,128], index: 16, kind: output, shape index: {2}]   ;;  %s3020_s17 = inlined_call_operand.vmem [shape: f32[32,128], index: 17, kind: output, shape index: {3}]  }
   0x1   :  { %3023 = sst [smem:[#allocation2_spill]] %s3003_s3  ;;  %1845 = vset.pattern.permute.xlu0 %v1983_v27  ;;  %1857 = vset.pattern.permute.xlu1 %v1983_v27  ;;  %v1818_v41 = vld [vmem:[%s3005_s2] sm:$0xff]   ;;  %v1825_v47 = vld [vmem:[%s3005_s2 + $0x8] sm:$0xff]   ;;  %v1679_v48 = vld [vmem:[%s3006_s9 + $0x70] sm:$0xf] }
   0x2   :  { %3024 = sst [smem:[#allocation3_spill]] %s3004_s5  ;;  %v1819_v45 = vunpack.c.l.bf16 %v1818_v41  ;;  %v1820_v46 = vunpack.c.h.bf16 %v1818_v41  ;;  %v1823_v50 = vunpack.c.l.bf16 %v1825_v47  ;;  %v1824_v51 = vunpack.c.h.bf16 %v1825_v47  ;;  %v1800_v52 = vld [vmem:[%s3006_s9 + $0x74] sm:$0xf0]  ;;  %v1799_v53 = vld [vmem:[%s3006_s9 + $0x74] sm:$0xf]  ;;  %v1765_v55 = vld [vmem:[%s3007_s0] sm:$0xff] }
   0x3   :  { %s3025_s26 = sld [smem:[#allocation2_spill]]  ;;  %v1681_v54 = vld [vmem:[%s3006_s9 + $0x78] sm:$0xf0]  ;;  %v2193_v60 = vor.u32 %v1800_v52, %v1679_v48  ;;  %v1639_v27 = vld [vmem:[%s3006_s9 + $0x20] sm:$0xf] }
   0x4   :  { %s3026_s22 = sld [smem:[#allocation3_spill]]  ;;  %v1846_v58 = vpack.i.bf16 %v1820_v46, %v1819_v45  ;;  %v1858_v59 = vpack.i.bf16 %v1824_v51, %v1823_v50  ;;  %v2195_v62 = vor.u32 %v1799_v53, %v1681_v54  ;;  %v1786_v41 = vld [vmem:[%s3006_s9 + $0x4] sm:$0xf0]  ;;  %v64_v46 = vld [vmem:[%s3009_s4] sm:$0x3] }
   0x5   :  { %v65_v47 = vunpack.c.l.bf16 %v64_v46  ;;  %v291_v50 = vld [vmem:[%s3010_s7] sm:$0x3] }
   0x6   :  { %1847 = vperm.xlu0 %1845, %v1846_v58   ;;  %1859 = vperm.xlu1 %1857, %v1858_v59   ;;  %v180_v53 = vld [vmem:[%s3011_s6] sm:$0x3] }
   0x7   :  { %v67_v48 = vperm.slane %v65_v47, 0 }
   0x9   :  { %v1567_v0 = vld [vmem:[%s3025_s26 + $0x30] sm:$0xf]  ;;  %v1774_v1 = vld [vmem:[%s3025_s26 + $0x34] sm:$0xf0]  ;;  %v1773_v2 = vld [vmem:[%s3025_s26 + $0x34] sm:$0xf] }
   0xa   :  { %v1568_v3 = vor.u32 %v1774_v1, %v1567_v0  ;;  %v1569_v4 = vld [vmem:[%s3025_s26 + $0x38] sm:$0xf0]  ;;  %v1559_v5 = vld [vmem:[%s3025_s26 + $0x20] sm:$0xf]  ;;  %v1772_v6 = vld [vmem:[%s3025_s26 + $0x24] sm:$0xf0] }
   0xb   :  { %v1572_v7 = vor.u32 %v1773_v2, %v1569_v4  ;;  %v1771_v8 = vld [vmem:[%s3025_s26 + $0x24] sm:$0xf]  ;;  %v1561_v9 = vld [vmem:[%s3025_s26 + $0x28] sm:$0xf0]  ;;  %v1560_v10 = vor.u32 %v1772_v6, %v1559_v5  ;;  %v1551_v12 = vld [vmem:[%s3025_s26 + $0x10] sm:$0xf] }
   0xc   :  { %134 = vmatpush.bf16.msra.mxu0 %v1568_v3  ;;  %v1564_v11 = vor.u32 %v1771_v8, %v1561_v9  ;;  %v1770_v13 = vld [vmem:[%s3025_s26 + $0x14] sm:$0xf0]  ;;  %v1769_v14 = vld [vmem:[%s3025_s26 + $0x14] sm:$0xf]  ;;  %v1553_v15 = vld [vmem:[%s3025_s26 + $0x18] sm:$0xf0] }
   0xd   :  { %153 = vmatpush.bf16.msra.mxu1 %v1572_v7  ;;  %v1611_v16 = vld [vmem:[%s3026_s22 + $0x30] sm:$0xf]  ;;  %v1784_v17 = vld [vmem:[%s3026_s22 + $0x34] sm:$0xf0]  ;;  %v1543_v18 = vld [vmem:[%s3025_s26] sm:$0xf]  ;;  %v1552_v22 = vor.u32 %v1770_v13, %v1551_v12  ;;  %v1556_v28 = vor.u32 %v1769_v14, %v1553_v15 }
   0xe   :  { %v1612_v19 = vor.u32 %v1784_v17, %v1611_v16  ;;  %v1783_v20 = vld [vmem:[%s3026_s22 + $0x34] sm:$0xf]  ;;  %v1613_v21 = vld [vmem:[%s3026_s22 + $0x38] sm:$0xf0]  ;;  %v1603_v24 = vld [vmem:[%s3026_s22 + $0x20] sm:$0xf] }
   0xf   :  { %v1616_v23 = vor.u32 %v1783_v20, %v1613_v21  ;;  %v1782_v25 = vld [vmem:[%s3026_s22 + $0x24] sm:$0xf0]  ;;  %v1781_v26 = vld [vmem:[%s3026_s22 + $0x24] sm:$0xf]  ;;  %v1605_v32 = vld [vmem:[%s3026_s22 + $0x28] sm:$0xf0] }
  0x10   :  { %135 = vmatpush.bf16.msra.mxu0 %v1560_v10  ;;  %v1768_v29 = vld [vmem:[%s3025_s26 + $0x4] sm:$0xf0]  ;;  %v1767_v30 = vld [vmem:[%s3025_s26 + $0x4] sm:$0xf]  ;;  %249 = vmatpush.bf16.msra.mxu2 %v1612_v19  ;;  %v1604_v31 = vor.u32 %v1782_v25, %v1603_v24  ;;  %v1545_v33 = vld [vmem:[%s3025_s26 + $0x8] sm:$0xf0]  ;;  %v1608_v34 = vor.u32 %v1781_v26, %v1605_v32 }
  0x11   :  { %154 = vmatpush.bf16.msra.mxu1 %v1564_v11  ;;  %268 = vmatpush.bf16.msra.mxu3 %v1616_v23  ;;  %v1595_v35 = vld [vmem:[%s3026_s22 + $0x10] sm:$0xf]  ;;  %v1780_v36 = vld [vmem:[%s3026_s22 + $0x14] sm:$0xf0]  ;;  %v1779_v37 = vld [vmem:[%s3026_s22 + $0x14] sm:$0xf]  ;;  %v1544_v39 = vor.u32 %v1768_v29, %v1543_v18  ;;  %v1548_v42 = vor.u32 %v1767_v30, %v1545_v33 }
  0x12   :  { %v1597_v38 = vld [vmem:[%s3026_s22 + $0x18] sm:$0xf0]  ;;  %v1587_v40 = vld [vmem:[%s3026_s22] sm:$0xf]  ;;  %v1596_v43 = vor.u32 %v1780_v36, %v1595_v35  ;;  %v1778_v44 = vld [vmem:[%s3026_s22 + $0x4] sm:$0xf0] }
  0x13   :  { %v1600_v49 = vor.u32 %v1779_v37, %v1597_v38  ;;  %v1777_v56 = vld [vmem:[%s3026_s22 + $0x4] sm:$0xf]  ;;  %v1589_v57 = vld [vmem:[%s3026_s22 + $0x8] sm:$0xf0]  ;;  %v1588_v61 = vor.u32 %v1778_v44, %v1587_v40  ;;  %v1671_v1 = vld [vmem:[%s3006_s9 + $0x60] sm:$0xf] }
  0x14   :  { %136 = vmatpush.bf16.msra.mxu0 %v1552_v22  ;;  %250 = vmatpush.bf16.msra.mxu2 %v1604_v31  ;;  %v1592_v63 = vor.u32 %v1777_v56, %v1589_v57  ;;  %v1775_v0 = vld [vmem:[%s3008_s1] sm:$0xff]  ;;  %v1798_v2 = vld [vmem:[%s3006_s9 + $0x64] sm:$0xf0]  ;;  %v1673_v4 = vld [vmem:[%s3006_s9 + $0x68] sm:$0xf0]  ;;  %v1984_v9 = vmov 1   ;;  %v181_v57 = vunpack.c.l.bf16 %v180_v53 }
  0x15   :  { %155 = vmatpush.bf16.msra.mxu1 %v1556_v28  ;;  %269 = vmatpush.bf16.msra.mxu3 %v1608_v34  ;;  %v1797_v3 = vld [vmem:[%s3006_s9 + $0x64] sm:$0xf]  ;;  %v2219_v5 = vor.u32 %v1798_v2, %v1671_v1  ;;  %v1663_v7 = vld [vmem:[%s3006_s9 + $0x50] sm:$0xf]  ;;  %v1796_v8 = vld [vmem:[%s3006_s9 + $0x54] sm:$0xf0] }
  0x16   :  { %v2222_v6 = vor.u32 %v1797_v3, %v1673_v4  ;;  %1851 = vset.pattern.permute.xlu0 %v1984_v9  ;;  %1863 = vset.pattern.permute.xlu1 %v1984_v9  ;;  %v2232_v10 = vor.u32 %v1796_v8, %v1663_v7  ;;  %v1795_v11 = vld [vmem:[%s3006_s9 + $0x54] sm:$0xf]  ;;  %v1665_v12 = vld [vmem:[%s3006_s9 + $0x58] sm:$0xf0]  ;;  %v1655_v13 = vld [vmem:[%s3006_s9 + $0x40] sm:$0xf] }
  0x17   :  { %1853 = vperm.xlu0 %1851, %v1846_v58   ;;  %1865 = vperm.xlu1 %1863, %v1858_v59   ;;  %v1794_v14 = vld [vmem:[%s3006_s9 + $0x44] sm:$0xf0]  ;;  %v2252_v16 = vor.u32 %v1795_v11, %v1665_v12  ;;  %v1793_v18 = vld [vmem:[%s3006_s9 + $0x44] sm:$0xf]  ;;  %v1657_v19 = vld [vmem:[%s3006_s9 + $0x48] sm:$0xf0] }
  0x18   :  { %137 = vmatpush.bf16.msra.mxu0 %v1544_v39  ;;  %251 = vmatpush.bf16.msra.mxu2 %v1596_v43  ;;  %v1766_v15 = vld [vmem:[%s3007_s0 + $0x8] sm:$0xff]  ;;  %v2254_v17 = vor.u32 %v1794_v14, %v1655_v13  ;;  %v1647_v20 = vld [vmem:[%s3006_s9 + $0x30] sm:$0xf]  ;;  %v1792_v21 = vld [vmem:[%s3006_s9 + $0x34] sm:$0xf0]  ;;  %v1660_v22 = vor.u32 %v1793_v18, %v1657_v19  ;;  %v2337_v52 = vperm.slane %v67_v48, 0 }
  0x19   :  { %156 = vmatpush.bf16.msra.mxu1 %v1548_v42  ;;  %270 = vmatpush.bf16.msra.mxu3 %v1600_v49  ;;  %v1776_v23 = vld [vmem:[%s3008_s1 + $0x8] sm:$0xff]  ;;  %v1648_v24 = vor.u32 %v1792_v21, %v1647_v20  ;;  %v1791_v25 = vld [vmem:[%s3006_s9 + $0x34] sm:$0xf]  ;;  %v1649_v26 = vld [vmem:[%s3006_s9 + $0x38] sm:$0xf0]  ;;  %v68_v49 = vperm.slane %v65_v47, 2 }
  0x1a   :  { %v1790_v28 = vld [vmem:[%s3006_s9 + $0x24] sm:$0xf0]  ;;  %v1652_v29 = vor.u32 %v1791_v25, %v1649_v26  ;;  %v1789_v31 = vld [vmem:[%s3006_s9 + $0x24] sm:$0xf]  ;;  %v1641_v32 = vld [vmem:[%s3006_s9 + $0x28] sm:$0xf0] }
  0x1b   :  { %1573 = vmatmul.msk.bf16.vlgmr.msra.gmra.mxu0 %vm123_vm0, %v1765_v55  ;;  %v1640_v30 = vor.u32 %v1790_v28, %v1639_v27  ;;  %v1644_v33 = vor.u32 %v1789_v31, %v1641_v32  ;;  %v1631_v34 = vld [vmem:[%s3006_s9 + $0x10] sm:$0xf]  ;;  %v1788_v35 = vld [vmem:[%s3006_s9 + $0x14] sm:$0xf0]  ;;  %v1787_v37 = vld [vmem:[%s3006_s9 + $0x14] sm:$0xf] }
  0x1c   :  { %1575 = vmatmul.msk.bf16.vlgmr.msra.gmra.mxu1 %vm123_vm0, %v1765_v55  ;;  %543 = vmatpush.bf16.xpose.msrb.mxu0 %v2193_v60  ;;  %v1632_v36 = vor.u32 %v1788_v35, %v1631_v34  ;;  %v1633_v38 = vld [vmem:[%s3006_s9 + $0x18] sm:$0xf0]  ;;  %v1623_v40 = vld [vmem:[%s3006_s9] sm:$0xf]  ;;  %v1785_v42 = vld [vmem:[%s3006_s9 + $0x4] sm:$0xf]  ;;  %v292_v55 = vunpack.c.l.bf16 %v291_v50 }
  0x1d   :  { %252 = vmatpush.bf16.msra.mxu2 %v1588_v61  ;;  %572 = vmatpush.bf16.xpose.msrb.mxu1 %v2195_v62  ;;  %v1636_v39 = vor.u32 %v1787_v37, %v1633_v38  ;;  %v1624_v43 = vor.u32 %v1786_v41, %v1623_v40  ;;  %v1625_v44 = vld [vmem:[%s3006_s9 + $0x8] sm:$0xf0]  ;;  %v2342_v54 = vperm.slane %v68_v49, 0  ;;  %v183_v1 = vperm.slane %v181_v57, 0 }
  0x1e   :  { %271 = vmatpush.bf16.msra.mxu3 %v1592_v63  ;;  %v1628_v45 = vor.u32 %v1785_v42, %v1625_v44  ;;  %v314_v61 = vperm.slane %v292_v55, 0  ;;  %v315_v63 = vperm.slane %v292_v55, 2  ;;  %v352_v2 = vperm.slane %v292_v55, 1 }
  0x1f   :  { %v184_v3 = vperm.slane %v181_v57, 2  ;;  %v353_v4 = vperm.slane %v292_v55, 3  ;;  %v2357_v11 = vperm.slane %v183_v1, 0 }
  0x20   :  { %1617 = vmatmul.msk.bf16.vlgmr.msra.gmra.mxu2 %vm123_vm0, %v1775_v0  ;;  %v2352_v7 = vperm.slane %v314_v61, 0  ;;  %v2355_v9 = vperm.slane %v315_v63, 0  ;;  %v2359_v12 = vperm.slane %v352_v2, 1 }
  0x21   :  { %1826 = vmatpush.bf16.msrb.mxu2 %v2193_v60  ;;  %1619 = vmatmul.msk.bf16.vlgmr.msra.gmra.mxu3 %vm123_vm0, %v1775_v0 }
  0x22   :  { %1834 = vmatpush.bf16.msrb.mxu3 %v2195_v62 }
  0x24   :  { %544 = vmatpush.bf16.xpose.msrb.mxu0 %v2219_v5 }
  0x25   :  { %1827 = vmatpush.bf16.msrb.mxu2 %v2219_v5  ;;  %573 = vmatpush.bf16.xpose.msrb.mxu1 %v2222_v6 }
  0x26   :  { %1835 = vmatpush.bf16.msrb.mxu3 %v2222_v6 }
  0x29   :  { %1828 = vmatpush.bf16.msrb.mxu2 %v2232_v10 }
  0x2a   :  { %1836 = vmatpush.bf16.msrb.mxu3 %v2252_v16 }
  0x2b   :  { %1574 = vmatmul.msk.bf16.gmra.mxu0 %vm123_vm0, %v1766_v15 }
  0x2c   :  { %1576 = vmatmul.msk.bf16.gmra.mxu1 %vm123_vm0, %v1766_v15  ;;  %545 = vmatpush.bf16.xpose.msrb.mxu0 %v2232_v10 }
  0x2d   :  { %1829 = vmatpush.bf16.msrb.mxu2 %v2254_v17  ;;  %574 = vmatpush.bf16.xpose.msrb.mxu1 %v2252_v16 }
  0x2e   :  { %1837 = vmatpush.bf16.msrb.mxu3 %v1660_v22 }
  0x30   :  { %1618 = vmatmul.msk.bf16.gmra.mxu2 %vm123_vm0, %v1776_v23 }
  0x31   :  { %1830 = vmatpush.bf16.msrb.mxu2 %v1648_v24  ;;  %1620 = vmatmul.msk.bf16.gmra.mxu3 %vm123_vm0, %v1776_v23 }
  0x32   :  { %1838 = vmatpush.bf16.msrb.mxu3 %v1652_v29 }
  0x34   :  { %546 = vmatpush.bf16.xpose.msrb.mxu0 %v2254_v17 }
  0x35   :  { %1831 = vmatpush.bf16.msrb.mxu2 %v1640_v30  ;;  %575 = vmatpush.bf16.xpose.msrb.mxu1 %v1660_v22 }
  0x36   :  { %1839 = vmatpush.bf16.msrb.mxu3 %v1644_v33 }
  0x39   :  { %1832 = vmatpush.bf16.msrb.mxu2 %v1632_v36 }
  0x3a   :  { %1840 = vmatpush.bf16.msrb.mxu3 %v1636_v39 }
  0x3c   :  { %547 = vmatpush.bf16.xpose.msrb.mxu0 %v1648_v24 }
  0x3d   :  { %576 = vmatpush.bf16.xpose.msrb.mxu1 %v1652_v29  ;;  %1833 = vmatpush.bf16.msrb.mxu2 %v1624_v43 }
  0x3e   :  { %1841 = vmatpush.bf16.msrb.mxu3 %v1628_v45 }
  0x44   :  { %548 = vmatpush.bf16.xpose.msrb.mxu0 %v1640_v30 }
  0x45   :  { %577 = vmatpush.bf16.xpose.msrb.mxu1 %v1644_v33 }
  0x4c   :  { %549 = vmatpush.bf16.xpose.msrb.mxu0 %v1632_v36 }
  0x4d   :  { %578 = vmatpush.bf16.xpose.msrb.mxu1 %v1636_v39 }
  0x54   :  { %550 = vmatpush.bf16.xpose.msrb.mxu0 %v1624_v43 }
  0x55   :  { %579 = vmatpush.bf16.xpose.msrb.mxu1 %v1628_v45 }
  0x5c   :  { %677 = vmatpush.bf16.msra.mxu0 %v2193_v60 }
  0x5d   :  { %706 = vmatpush.bf16.msra.mxu1 %v2195_v62  ;;  %v374_v62 = vld [vmem:[%s3012_s8] sm:$0x3] }
  0x60   :  { %678 = vmatpush.bf16.msra.mxu0 %v2219_v5  ;;  %v375_v5 = vunpack.c.l.bf16 %v374_v62 }
  0x61   :  { %707 = vmatpush.bf16.msra.mxu1 %v2222_v6 }
  0x62   :  { %v377_v18 = vperm.slane %v375_v5, 0  ;;  %v378_v23 = vperm.slane %v375_v5, 2 }
  0x64   :  { %679 = vmatpush.bf16.msra.mxu0 %v2232_v10  ;;  %v2375_v32 = vperm.slane %v377_v18, 0 }
  0x65   :  { %708 = vmatpush.bf16.msra.mxu1 %v2252_v16  ;;  %v2362_v16 = vperm.slane %v184_v3, 0 }
  0x68   :  { %680 = vmatpush.bf16.msra.mxu0 %v2254_v17  ;;  %v2364_v17 = vperm.slane %v353_v4, 1 }
  0x69   :  { %709 = vmatpush.bf16.msra.mxu1 %v1660_v22 }
  0x6c   :  { %681 = vmatpush.bf16.msra.mxu0 %v1648_v24 }
  0x6d   :  { %710 = vmatpush.bf16.msra.mxu1 %v1652_v29 }
  0x70   :  { %682 = vmatpush.bf16.msra.mxu0 %v1640_v30 }
  0x71   :  { %711 = vmatpush.bf16.msra.mxu1 %v1644_v33 }
  0x74   :  { %683 = vmatpush.bf16.msra.mxu0 %v1632_v36 }
  0x75   :  { %712 = vmatpush.bf16.msra.mxu1 %v1636_v39  ;;  %v2381_v39 = vperm.slane %v378_v23, 0 }
  0x78   :  { %v2335_v51 = vpop.permute.xlu0 %1847  ;;  %684 = vmatpush.bf16.msra.mxu0 %v1624_v43  ;;  %v2369_v24 = vpop.permute.xlu1 %1859 }
  0x79   :  { %v1849_v8 = vunpack.i.l.bf16 %v2335_v51  ;;  %713 = vmatpush.bf16.msra.mxu1 %v1628_v45  ;;  %v1850_v26 = vunpack.i.h.bf16 %v2335_v51  ;;  %v1861_v1 = vunpack.i.l.bf16 %v2369_v24 }
  0x7b   :  { %v320_v20 = vmul.f32 %v1849_v8, %v2352_v7  ;;  %v321_v21 = vmul.f32 %v1849_v8, %v2355_v9  ;;  %v322_v49 = vmul.f32 %v1850_v26, %v2352_v7  ;;  %v323_v51 = vmul.f32 %v1850_v26, %v2355_v9 }
  0x89   :  { %v1854_v6 = vpop.permute.xlu0 %1853  ;;  %v1866_v62 = vpop.permute.xlu1 %1865 }
  0x8a   :  { %v1855_v13 = vunpack.i.l.bf16 %v1854_v6  ;;  %v1856_v43 = vunpack.i.h.bf16 %v1854_v6  ;;  %v1867_v5 = vunpack.i.l.bf16 %v1866_v62 }
  0x8c   :  { %v358_v29 = vmul.f32 %v1855_v13, %v2359_v12  ;;  %v359_v33 = vmul.f32 %v1855_v13, %v2364_v17  ;;  %v360_v57 = vmul.f32 %v1856_v43, %v2359_v12 }
  0x98   :  { %v139_v56 = vpop.f32.mrf.mxu0 }
  0x99   :  { %v140_v58 = vadd.f32 %v139_v56, %v2337_v52  ;;  %v158_v59 = vpop.f32.mrf.mxu1 }
  0x9a   :  { %v159_v60 = vadd.f32 %v158_v59, %v2342_v54 }
  0x9c   :  { %v391_v0 = vpack.c.bf16 %v159_v60, %v140_v58  ;;  %v361_v60 = vmul.f32 %v1856_v43, %v2364_v17 }
  0x9e   :  { %395 = vst [vmem:[%s3013_s14] sm:$0xff] %v391_v0  ;;  %v427_v30 = vunpack.c.l.b16 %v391_v0  ;;  %v428_v35 = vunpack.c.h.b16 %v391_v0 }
  0xa0   :  { %v141_v10 = vpop.f32.mrf.mxu0 }
  0xa1   :  { %v142_v14 = vadd.f32 %v141_v10, %v2337_v52  ;;  %v160_v15 = vpop.f32.mrf.mxu1 }
  0xa2   :  { %v161_v19 = vadd.f32 %v160_v15, %v2342_v54  ;;  %v324_v15 = vmul.f32 %v1861_v1, %v2352_v7 }
  0xa3   :  { %v254_v22 = vpop.f32.mrf.mxu2 }
  0xa4   :  { %v392_v25 = vpack.c.bf16 %v161_v19, %v142_v14  ;;  %v255_v27 = vadd.f32 %v254_v22, %v2357_v11  ;;  %v273_v28 = vpop.f32.mrf.mxu3  ;;  %v325_v19 = vmul.f32 %v1861_v1, %v2355_v9  ;;  %v1862_v22 = vunpack.i.h.bf16 %v2369_v24 }
  0xa5   :  { %v274_v31 = vadd.f32 %v273_v28, %v2362_v16 }
  0xa6   :  { %396 = vst [vmem:[%s3013_s14 + $0x8] sm:$0xff] %v392_v25  ;;  %v429_v34 = vunpack.c.l.b16 %v392_v25  ;;  %v430_v36 = vunpack.c.h.b16 %v392_v25  ;;  %v328_v37 = vadd.f32 %v320_v20, %v255_v27  ;;  %v363_v27 = vmul.f32 %v1867_v5, %v2364_v17 }
  0xa7   :  { %v329_v38 = vadd.f32 %v321_v21, %v274_v31 }
  0xa8   :  { %v144_v40 = vpop.f32.mrf.mxu0  ;;  %v435_v41 = vpack.c.b16 %v429_v34, %v427_v30  ;;  %v436_v42 = vpack.c.b16 %v430_v36, %v428_v35  ;;  %v366_v44 = vadd.f32 %v358_v29, %v328_v37  ;;  %v1868_v36 = vunpack.i.h.bf16 %v1866_v62 }
  0xa9   :  { %v145_v45 = vadd.f32 %v144_v40, %v2337_v52  ;;  %v163_v46 = vpop.f32.mrf.mxu1  ;;  %v367_v47 = vadd.f32 %v359_v33, %v329_v38  ;;  %v326_v40 = vmul.f32 %v1862_v22, %v2352_v7 }
  0xaa   :  { %v164_v48 = vadd.f32 %v163_v46, %v2342_v54  ;;  %551 = vmatmul.bf16.vlgmr.msrb.gmra.mxu0 %v435_v41  ;;  %580 = vmatmul.bf16.vlgmr.msrb.gmra.mxu1 %v436_v42  ;;  %v383_v50 = vadd.f32 %v2375_v32, %v366_v44  ;;  %v327_v42 = vmul.f32 %v1862_v22, %v2355_v9 }
  0xab   :  { %v384_v53 = vadd.f32 %v2381_v39, %v367_v47  ;;  %v256_v55 = vpop.f32.mrf.mxu2 }
  0xac   :  { %v393_v56 = vpack.c.bf16 %v164_v48, %v145_v45  ;;  %v257_v58 = vadd.f32 %v256_v55, %v2357_v11  ;;  %v275_v59 = vpop.f32.mrf.mxu3  ;;  %v364_v45 = vmul.f32 %v1868_v36, %v2359_v12  ;;  %v365_v48 = vmul.f32 %v1868_v36, %v2364_v17 }
  0xad   :  { %v276_v61 = vadd.f32 %v275_v59, %v2362_v16  ;;  %v2393_v63 = vpack.c.bf16 %v384_v53, %v383_v50 }
  0xae   :  { %397 = vst [vmem:[%s3013_s14 + $0x10] sm:$0xff] %v393_v56  ;;  %v330_v0 = vadd.f32 %v322_v49, %v257_v58  ;;  %v431_v26 = vunpack.c.l.b16 %v393_v56  ;;  %v432_v30 = vunpack.c.h.b16 %v393_v56 }
  0xaf   :  { %v331_v2 = vadd.f32 %v323_v51, %v276_v61  ;;  %403 = vst [vmem:[%s3014_s15] sm:$0xff] %v2393_v63  ;;  %v448_v17 = vunpack.c.h.b16 %v2393_v63 }
  0xb0   :  { %v146_v3 = vpop.f32.mrf.mxu0  ;;  %v368_v4 = vadd.f32 %v360_v57, %v330_v0 }
  0xb1   :  { %v147_v6 = vadd.f32 %v146_v3, %v2337_v52  ;;  %v165_v8 = vpop.f32.mrf.mxu1  ;;  %v369_v10 = vadd.f32 %v361_v60, %v331_v2  ;;  %v362_v52 = vmul.f32 %v1867_v5, %v2359_v12 }
  0xb2   :  { %v166_v13 = vadd.f32 %v165_v8, %v2342_v54  ;;  %v385_v14 = vadd.f32 %v2375_v32, %v368_v4 }
  0xb3   :  { %v386_v18 = vadd.f32 %v2381_v39, %v369_v10  ;;  %v259_v20 = vpop.f32.mrf.mxu2 }
  0xb4   :  { %v394_v21 = vpack.c.bf16 %v166_v13, %v147_v6  ;;  %v260_v23 = vadd.f32 %v259_v20, %v2357_v11  ;;  %v278_v25 = vpop.f32.mrf.mxu3 }
  0xb5   :  { %v279_v54 = vadd.f32 %v278_v25, %v2362_v16  ;;  %v400_v28 = vpack.c.bf16 %v386_v18, %v385_v14 }
  0xb6   :  { %398 = vst [vmem:[%s3013_s14 + $0x18] sm:$0xff] %v394_v21  ;;  %v433_v29 = vunpack.c.l.b16 %v394_v21  ;;  %v434_v31 = vunpack.c.h.b16 %v394_v21  ;;  %v332_v33 = vadd.f32 %v324_v15, %v260_v23 }
  0xb7   :  { %v333_v24 = vadd.f32 %v325_v19, %v279_v54  ;;  %404 = vst [vmem:[%s3014_s15 + $0x8] sm:$0xff] %v400_v28  ;;  %v449_v56 = vunpack.c.l.b16 %v400_v28  ;;  %v450_v57 = vunpack.c.h.b16 %v400_v28 }
  0xb8   :  { %v437_v34 = vpack.c.b16 %v433_v29, %v431_v26  ;;  %v438_v35 = vpack.c.b16 %v434_v31, %v432_v30  ;;  %v370_v37 = vadd.f32 %v362_v52, %v332_v33 }
  0xb9   :  { %v371_v38 = vadd.f32 %v363_v27, %v333_v24  ;;  %v456_v59 = vpack.c.b16 %v450_v57, %v448_v17 }
  0xba   :  { %556 = vmatmul.bf16.gmra.mxu0 %v437_v34  ;;  %585 = vmatmul.bf16.gmra.mxu1 %v438_v35  ;;  %v387_v41 = vadd.f32 %v2375_v32, %v370_v37 }
  0xbb   :  { %v388_v43 = vadd.f32 %v2381_v39, %v371_v38  ;;  %v261_v44 = vpop.f32.mrf.mxu2 }
  0xbc   :  { %v262_v46 = vadd.f32 %v261_v44, %v2357_v11  ;;  %v280_v47 = vpop.f32.mrf.mxu3  ;;  %v447_v11 = vunpack.c.l.b16 %v2393_v63 }
  0xbd   :  { %v281_v49 = vadd.f32 %v280_v47, %v2362_v16  ;;  %v401_v50 = vpack.c.bf16 %v388_v43, %v387_v41 }
  0xbe   :  { %v334_v51 = vadd.f32 %v326_v40, %v262_v46  ;;  %v455_v58 = vpack.c.b16 %v449_v56, %v447_v11 }
  0xbf   :  { %v335_v53 = vadd.f32 %v327_v42, %v281_v49  ;;  %405 = vst [vmem:[%s3014_s15 + $0x10] sm:$0xff] %v401_v50  ;;  %v451_v60 = vunpack.c.l.b16 %v401_v50 }
  0xc0   :  { %v372_v7 = vadd.f32 %v364_v45, %v334_v51 }
  0xc1   :  { %v373_v9 = vadd.f32 %v365_v48, %v335_v53 }
  0xc2   :  { %v389_v55 = vadd.f32 %v2375_v32, %v372_v7  ;;  %v452_v32 = vunpack.c.h.b16 %v401_v50 }
  0xc3   :  { %v390_v12 = vadd.f32 %v2381_v39, %v373_v9 }
  0xc5   :  { %v402_v16 = vpack.c.bf16 %v390_v12, %v389_v55 }
  0xc7   :  { %406 = vst [vmem:[%s3014_s15 + $0x18] sm:$0xff] %v402_v16  ;;  %v453_v61 = vunpack.c.l.b16 %v402_v16  ;;  %v454_v62 = vunpack.c.h.b16 %v402_v16 }
  0xc9   :  { %v457_v39 = vpack.c.b16 %v453_v61, %v451_v60  ;;  %v458_v0 = vpack.c.b16 %v454_v62, %v452_v32 }
  0xca   :  { %561 = vmatmul.bf16.gmra.mxu0 %v455_v58  ;;  %590 = vmatmul.bf16.gmra.mxu1 %v456_v59 }
  0xda   :  { %566 = vmatmul.bf16.gmra.mxu0 %v457_v39  ;;  %595 = vmatmul.bf16.gmra.mxu1 %v458_v0 }
 0x127   :  { %v552_v1 = vpop.f32.mrf.mxu0  ;;  %v581_v63 = vpop.f32.mrf.mxu1 }
 0x128   :  { %v582_v2 = vadd.f32 %v581_v63, %v552_v1 }
 0x12a   :  { %601 = vmax.xlane.f32.xlu2 %v582_v2 }
 0x12f   :  { %v554_v3 = vpop.f32.mrf.mxu0  ;;  %v583_v4 = vpop.f32.mrf.mxu1 }
 0x130   :  { %v584_v5 = vadd.f32 %v583_v4, %v554_v3 }
 0x132   :  { %603 = vmax.xlane.f32.xlu2 %v584_v5 }
 0x137   :  { %v557_v6 = vpop.f32.mrf.mxu0  ;;  %v586_v8 = vpop.f32.mrf.mxu1 }
 0x138   :  { %v587_v10 = vadd.f32 %v586_v8, %v557_v6 }
 0x13a   :  { %605 = vmax.xlane.f32.xlu1 %v587_v10 }
 0x13f   :  { %v559_v13 = vpop.f32.mrf.mxu0  ;;  %v588_v14 = vpop.f32.mrf.mxu1 }
 0x140   :  { %v589_v15 = vadd.f32 %v588_v14, %v559_v13 }
 0x142   :  { %607 = vmax.xlane.f32.xlu2 %v589_v15 }
 0x147   :  { %v562_v18 = vpop.f32.mrf.mxu0  ;;  %v591_v19 = vpop.f32.mrf.mxu1 }
 0x148   :  { %v592_v20 = vadd.f32 %v591_v19, %v562_v18 }
 0x14a   :  { %609 = vmax.xlane.f32.xlu0 %v592_v20 }
 0x14f   :  { %v564_v21 = vpop.f32.mrf.mxu0  ;;  %v593_v22 = vpop.f32.mrf.mxu1 }
 0x150   :  { %v594_v23 = vadd.f32 %v593_v22, %v564_v21 }
 0x152   :  { %611 = vmax.xlane.f32.xlu2 %v594_v23 }
 0x157   :  { %v567_v25 = vpop.f32.mrf.mxu0  ;;  %v596_v52 = vpop.f32.mrf.mxu1 }
 0x158   :  { %v597_v26 = vadd.f32 %v596_v52, %v567_v25 }
 0x15a   :  { %613 = vmax.xlane.f32.xlu2 %v597_v26 }
 0x15f   :  { %v569_v54 = vpop.f32.mrf.mxu0  ;;  %v598_v27 = vpop.f32.mrf.mxu1 }
 0x160   :  { %v599_v28 = vadd.f32 %v598_v27, %v569_v54 }
 0x162   :  { %615 = vmax.xlane.f32.xlu2 %v599_v28 }
 0x19d   :  { %v602_v29 = vpop.xlane.xlu2 %601 }
 0x19e   :  { %v617_v30 = vsub.f32 %v582_v2, %v602_v29 }
 0x1a0   :  { %v625_v31 = vmul.f32 1.442695, %v617_v30 }
 0x1a2   :  { %1869 = vpow2.f32 %v625_v31 }
 0x1a5   :  { %v604_v33 = vpop.xlane.xlu2 %603 }
 0x1a6   :  { %v618_v24 = vsub.f32 %v584_v5, %v604_v33 }
 0x1a8   :  { %v1870_v34 = vpop.eup %1869  ;;  %v627_v35 = vmul.f32 1.442695, %v618_v24 }
 0x1a9   :  { %641 = vadd.xlane.f32.xlu2 %v1870_v34 }
 0x1aa   :  { %1871 = vpow2.f32 %v627_v35 }
 0x1ad   :  { %v606_v36 = vpop.xlane.xlu1 %605 }
 0x1ae   :  { %v619_v37 = vsub.f32 %v587_v10, %v606_v36 }
 0x1b0   :  { %v1872_v38 = vpop.eup %1871  ;;  %v629_v40 = vmul.f32 1.442695, %v619_v37 }
 0x1b1   :  { %643 = vadd.xlane.f32.xlu2 %v1872_v38 }
 0x1b2   :  { %1873 = vpow2.f32 %v629_v40 }
 0x1b5   :  { %v608_v41 = vpop.xlane.xlu2 %607 }
 0x1b6   :  { %v620_v42 = vsub.f32 %v589_v15, %v608_v41 }
 0x1b8   :  { %v1874_v43 = vpop.eup %1873  ;;  %v631_v44 = vmul.f32 1.442695, %v620_v42 }
 0x1b9   :  { %645 = vadd.xlane.f32.xlu1 %v1874_v43 }
 0x1ba   :  { %1875 = vpow2.f32 %v631_v44 }
 0x1bd   :  { %v610_v45 = vpop.xlane.xlu0 %609 }
 0x1be   :  { %v621_v46 = vsub.f32 %v592_v20, %v610_v45 }
 0x1c0   :  { %v1876_v47 = vpop.eup %1875  ;;  %v633_v48 = vmul.f32 1.442695, %v621_v46 }
 0x1c1   :  { %647 = vadd.xlane.f32.xlu2 %v1876_v47 }
 0x1c2   :  { %1877 = vpow2.f32 %v633_v48 }
 0x1c5   :  { %v612_v49 = vpop.xlane.xlu2 %611 }
 0x1c6   :  { %v622_v50 = vsub.f32 %v594_v23, %v612_v49 }
 0x1c8   :  { %v1878_v51 = vpop.eup %1877  ;;  %v635_v53 = vmul.f32 1.442695, %v622_v50  ;;  %v1985_v50 = vmov 256.0  }
 0x1c9   :  { %649 = vadd.xlane.f32.xlu0 %v1878_v51 }
 0x1ca   :  { %1879 = vpow2.f32 %v635_v53 }
 0x1cd   :  { %v614_v7 = vpop.xlane.xlu2 %613 }
 0x1ce   :  { %v623_v9 = vsub.f32 %v597_v26, %v614_v7 }
 0x1d0   :  { %v1880_v55 = vpop.eup %1879  ;;  %v637_v12 = vmul.f32 1.442695, %v623_v9 }
 0x1d1   :  { %651 = vadd.xlane.f32.xlu1 %v1880_v55 }
 0x1d2   :  { %1881 = vpow2.f32 %v637_v12 }
 0x1d5   :  { %v616_v11 = vpop.xlane.xlu2 %615 }
 0x1d6   :  { %v624_v56 = vsub.f32 %v599_v28, %v616_v11 }
 0x1d8   :  { %v1882_v17 = vpop.eup %1881  ;;  %v639_v57 = vmul.f32 1.442695, %v624_v56 }
 0x1d9   :  { %653 = vadd.xlane.f32.xlu2 %v1882_v17 }
 0x1da   :  { %1883 = vpow2.f32 %v639_v57 }
 0x1e0   :  { %v1884_v16 = vpop.eup %1883 }
 0x1e1   :  { %655 = vadd.xlane.f32.xlu0 %v1884_v16 }
 0x21c   :  { %v642_v58 = vpop.xlane.xlu2 %641 }
 0x21d   :  { %1885 = vrcp.f32 %v642_v58 }
 0x223   :  { %v1886_v60 = vpop.eup %1885 }
 0x224   :  { %v644_v59 = vpop.xlane.xlu2 %643  ;;  %v665_v32 = vmul.f32 %v1886_v60, %v1870_v34 }
 0x225   :  { %1887 = vrcp.f32 %v644_v59 }
 0x22b   :  { %v1888_v61 = vpop.eup %1887 }
 0x22c   :  { %v666_v62 = vmul.f32 %v1888_v61, %v1872_v38  ;;  %v646_v0 = vpop.xlane.xlu1 %645 }
 0x22d   :  { %1889 = vrcp.f32 %v646_v0 }
 0x22e   :  { %v673_v39 = vpack.c.bf16 %v666_v62, %v665_v32 }
 0x230   :  { %685 = vmatmul.bf16.vlgmr.msra.gmra.mxu0 %v673_v39  ;;  %714 = vmatmul.bf16.vlgmr.msra.gmra.mxu1 %v673_v39 }
 0x233   :  { %v1890_v63 = vpop.eup %1889 }
 0x234   :  { %v648_v1 = vpop.xlane.xlu2 %647  ;;  %v667_v3 = vmul.f32 %v1890_v63, %v1874_v43 }
 0x235   :  { %1891 = vrcp.f32 %v648_v1 }
 0x23b   :  { %v1892_v2 = vpop.eup %1891 }
 0x23c   :  { %v668_v4 = vmul.f32 %v1892_v2, %v1876_v47  ;;  %v650_v6 = vpop.xlane.xlu0 %649 }
 0x23d   :  { %1893 = vrcp.f32 %v650_v6 }
 0x23e   :  { %v674_v5 = vpack.c.bf16 %v668_v4, %v667_v3 }
 0x240   :  { %690 = vmatmul.bf16.vlgmr.msrb.gmra.mxu2 %v674_v5  ;;  %719 = vmatmul.bf16.vlgmr.msrb.gmra.mxu3 %v674_v5 }
 0x243   :  { %v1894_v10 = vpop.eup %1893 }
 0x244   :  { %v652_v8 = vpop.xlane.xlu1 %651  ;;  %v669_v14 = vmul.f32 %v1894_v10, %v1878_v51 }
 0x245   :  { %1895 = vrcp.f32 %v652_v8 }
 0x24b   :  { %v1896_v13 = vpop.eup %1895 }
 0x24c   :  { %v670_v15 = vmul.f32 %v1896_v13, %v1880_v55  ;;  %v654_v19 = vpop.xlane.xlu2 %653 }
 0x24d   :  { %1897 = vrcp.f32 %v654_v19 }
 0x24e   :  { %v675_v18 = vpack.c.bf16 %v670_v15, %v669_v14 }
 0x250   :  { %695 = vmatmul.bf16.gmra.mxu2 %v675_v18  ;;  %724 = vmatmul.bf16.gmra.mxu3 %v675_v18 }
 0x253   :  { %v1898_v21 = vpop.eup %1897 }
 0x254   :  { %v656_v20 = vpop.xlane.xlu0 %655  ;;  %v671_v23 = vmul.f32 %v1898_v21, %v1882_v17 }
 0x255   :  { %1899 = vrcp.f32 %v656_v20 }
 0x256   :  { %1901 = vrcp.f32 %v1985_v50 }
 0x25b   :  { %v1900_v22 = vpop.eup %1899 }
 0x25c   :  { %v672_v25 = vmul.f32 %v1900_v22, %v1884_v16  ;;  %v1902_v51 = vpop.eup %1901 }
 0x25d   :  { %v764_v53 = vmul.f32 256.0, %v1902_v51  ;;  %vm768_vm1 = vweird.f32 %v1902_v51 }
 0x25e   :  { %v676_v52 = vpack.c.bf16 %v672_v25, %v671_v23 }
 0x25f   :  { %v765_v7 = vsub.f32 1.0, %v764_v53 }
 0x260   :  { %700 = vmatmul.bf16.gmra.mxu2 %v676_v52  ;;  %729 = vmatmul.bf16.gmra.mxu3 %v676_v52 }
 0x261   :  { %v766_v9 = vmul.f32 %v1902_v51, %v765_v7 }
 0x263   :  { %v767_v55 = vadd.f32 %v1902_v51, %v766_v9 }
 0x265   :  { %v2456_v12 = vsel %vm768_vm1, %v1902_v51, %v767_v55  ;;  %v1807_v55 = vld [vmem:[%s3015_s12 + $0x30] sm:$0xff] }
 0x2ad   :  { %v686_v26 = vpop.f32.mrf.mxu0  ;;  %v715_v54 = vpop.f32.mrf.mxu1 }
 0x2ae   :  { %v739_v27 = vadd.f32 %v715_v54, %v686_v26 }
 0x2b0   :  { %740 = vadd.xlane.f32.xlu1 %v739_v27 }
 0x2b5   :  { %v688_v28 = vpop.f32.mrf.mxu0  ;;  %v717_v29 = vpop.f32.mrf.mxu1 }
 0x2b6   :  { %v742_v30 = vadd.f32 %v717_v29, %v688_v28 }
 0x2b8   :  { %743 = vadd.xlane.f32.xlu2 %v742_v30 }
 0x2c3   :  { %v691_v31 = vpop.f32.mrf.mxu2  ;;  %v720_v33 = vpop.f32.mrf.mxu3 }
 0x2c4   :  { %v745_v24 = vadd.f32 %v720_v33, %v691_v31 }
 0x2c6   :  { %746 = vadd.xlane.f32.xlu0 %v745_v24 }
 0x2cb   :  { %v693_v34 = vpop.f32.mrf.mxu2  ;;  %v722_v35 = vpop.f32.mrf.mxu3 }
 0x2cc   :  { %v748_v36 = vadd.f32 %v722_v35, %v693_v34 }
 0x2ce   :  { %749 = vadd.xlane.f32.xlu1 %v748_v36 }
 0x2d3   :  { %v696_v37 = vpop.f32.mrf.mxu2  ;;  %v725_v38 = vpop.f32.mrf.mxu3 }
 0x2d4   :  { %v751_v40 = vadd.f32 %v725_v38, %v696_v37 }
 0x2d6   :  { %752 = vadd.xlane.f32.xlu2 %v751_v40 }
 0x2db   :  { %v2438_v41 = vpop.f32.mrf.mxu2  ;;  %v2440_v42 = vpop.f32.mrf.mxu3 }
 0x2dc   :  { %v754_v43 = vadd.f32 %v2440_v42, %v2438_v41 }
 0x2de   :  { %755 = vadd.xlane.f32.xlu0 %v754_v43 }
 0x2e3   :  { %v2444_v44 = vpop.f32.mrf.mxu2  ;;  %v2446_v45 = vpop.f32.mrf.mxu3 }
 0x2e4   :  { %v757_v46 = vadd.f32 %v2446_v45, %v2444_v44 }
 0x2e6   :  { %758 = vadd.xlane.f32.xlu1 %v757_v46 }
 0x2eb   :  { %v2450_v47 = vpop.f32.mrf.mxu2  ;;  %v2452_v48 = vpop.f32.mrf.mxu3 }
 0x2ec   :  { %v760_v49 = vadd.f32 %v2452_v48, %v2450_v47 }
 0x2ee   :  { %761 = vadd.xlane.f32.xlu2 %v760_v49 }
 0x323   :  { %v741_v11 = vpop.xlane.xlu1 %740 }
 0x324   :  { %v770_v56 = vmul.f32 %v2456_v12, %v741_v11  ;;  %v1815_v11 = vld [vmem:[%s3015_s12 + $0x70] sm:$0xff] }
 0x326   :  { %v2459_v17 = vsub.f32 %v686_v26, %v770_v56  ;;  %v2461_v57 = vsub.f32 %v715_v54, %v770_v56 }
 0x328   :  { %v794_v16 = vmul.f32 %v2459_v17, %v2459_v17  ;;  %v795_v58 = vmul.f32 %v2461_v57, %v2461_v57 }
 0x32a   :  { %v810_v59 = vadd.f32 %v795_v58, %v794_v16  ;;  %v735_v16 = vld [vmem:[%s3016_s10] sm:$0x3] }
 0x32b   :  { %v744_v60 = vpop.xlane.xlu2 %743 }
 0x32c   :  { %v771_v61 = vmul.f32 %v2456_v12, %v744_v60  ;;  %811 = vadd.xlane.f32.xlu0 %v810_v59  ;;  %v737_v60 = vld [vmem:[%s3017_s11] sm:$0x3] }
 0x32e   :  { %v2468_v32 = vsub.f32 %v688_v28, %v771_v61  ;;  %v2470_v62 = vsub.f32 %v717_v29, %v771_v61 }
 0x330   :  { %v796_v39 = vmul.f32 %v2468_v32, %v2468_v32  ;;  %v797_v0 = vmul.f32 %v2470_v62, %v2470_v62 }
 0x332   :  { %v813_v1 = vadd.f32 %v797_v0, %v796_v39  ;;  %v1806_v39 = vld [vmem:[%s3015_s12 + $0x28] sm:$0xff] }
 0x333   :  { %v1814_v0 = vld [vmem:[%s3015_s12 + $0x68] sm:$0xff] }
 0x334   :  { %814 = vadd.xlane.f32.xlu1 %v813_v1  ;;  %v736_v1 = vunpack.c.l.bf16 %v735_v16 }
 0x339   :  { %v747_v63 = vpop.xlane.xlu0 %746 }
 0x33a   :  { %v772_v2 = vmul.f32 %v2456_v12, %v747_v63 }
 0x33c   :  { %v2477_v3 = vsub.f32 %v691_v31, %v772_v2  ;;  %v2479_v4 = vsub.f32 %v720_v33, %v772_v2  ;;  %v738_v2 = vunpack.c.l.bf16 %v737_v60  ;;  %v1801_v60 = vld [vmem:[%s3015_s12] sm:$0xff] }
 0x33e   :  { %v798_v5 = vmul.f32 %v2477_v3, %v2477_v3  ;;  %v799_v6 = vmul.f32 %v2479_v4, %v2479_v4 }
 0x340   :  { %v816_v8 = vadd.f32 %v799_v6, %v798_v5  ;;  %v1805_v6 = vld [vmem:[%s3015_s12 + $0x20] sm:$0xff] }
 0x341   :  { %v750_v10 = vpop.xlane.xlu1 %749 }
 0x342   :  { %v773_v13 = vmul.f32 %v2456_v12, %v750_v10  ;;  %817 = vadd.xlane.f32.xlu2 %v816_v8  ;;  %v1813_v8 = vld [vmem:[%s3015_s12 + $0x60] sm:$0xff]  ;;  %v947_v10 = vperm.slane %v736_v1, 0 }
 0x344   :  { %v2486_v14 = vsub.f32 %v693_v34, %v773_v13  ;;  %v2488_v15 = vsub.f32 %v722_v35, %v773_v13  ;;  %v948_v13 = vperm.slane %v736_v1, 2 }
 0x346   :  { %v800_v18 = vmul.f32 %v2486_v14, %v2486_v14  ;;  %v801_v19 = vmul.f32 %v2488_v15, %v2488_v15 }
 0x348   :  { %v819_v20 = vadd.f32 %v801_v19, %v800_v18  ;;  %v970_v19 = vperm.slane %v738_v2, 0 }
 0x349   :  { %v753_v21 = vpop.xlane.xlu2 %752 }
 0x34a   :  { %v774_v22 = vmul.f32 %v2456_v12, %v753_v21  ;;  %820 = vadd.xlane.f32.xlu0 %v819_v20  ;;  %v971_v21 = vperm.slane %v738_v2, 2 }
 0x34c   :  { %v2495_v23 = vsub.f32 %v696_v37, %v774_v22  ;;  %v2497_v25 = vsub.f32 %v725_v38, %v774_v22 }
 0x34e   :  { %v802_v52 = vmul.f32 %v2495_v23, %v2495_v23  ;;  %v803_v26 = vmul.f32 %v2497_v25, %v2497_v25 }
 0x350   :  { %v822_v54 = vadd.f32 %v803_v26, %v802_v52  ;;  %v1804_v26 = vld [vmem:[%s3015_s12 + $0x18] sm:$0xff] }
 0x351   :  { %v756_v27 = vpop.xlane.xlu0 %755 }
 0x352   :  { %v775_v28 = vmul.f32 %v2456_v12, %v756_v27  ;;  %823 = vadd.xlane.f32.xlu1 %v822_v54  ;;  %v1812_v54 = vld [vmem:[%s3015_s12 + $0x58] sm:$0xff]  ;;  %v2574_v27 = vperm.slane %v947_v10, 0 }
 0x354   :  { %v2505_v29 = vsub.f32 %v2438_v41, %v775_v28  ;;  %v2508_v30 = vsub.f32 %v2440_v42, %v775_v28  ;;  %v2576_v28 = vperm.slane %v948_v13, 0 }
 0x356   :  { %v804_v31 = vmul.f32 %v2505_v29, %v2505_v29  ;;  %v805_v33 = vmul.f32 %v2508_v30, %v2508_v30 }
 0x358   :  { %v825_v24 = vadd.f32 %v805_v33, %v804_v31 }
 0x359   :  { %v759_v34 = vpop.xlane.xlu1 %758 }
 0x35a   :  { %v776_v35 = vmul.f32 %v2456_v12, %v759_v34  ;;  %826 = vadd.xlane.f32.xlu2 %v825_v24  ;;  %v2578_v34 = vperm.slane %v970_v19, 0 }
 0x35c   :  { %v2516_v36 = vsub.f32 %v2444_v44, %v776_v35  ;;  %v2519_v37 = vsub.f32 %v2446_v45, %v776_v35 }
 0x35e   :  { %v806_v38 = vmul.f32 %v2516_v36, %v2516_v36  ;;  %v807_v40 = vmul.f32 %v2519_v37, %v2519_v37 }
 0x360   :  { %v828_v41 = vadd.f32 %v807_v40, %v806_v38 }
 0x361   :  { %v762_v42 = vpop.xlane.xlu2 %761 }
 0x362   :  { %v777_v43 = vmul.f32 %v2456_v12, %v762_v42  ;;  %829 = vadd.xlane.f32.xlu0 %v828_v41  ;;  %v2583_v41 = vperm.slane %v971_v21, 0 }
 0x364   :  { %v2527_v46 = vsub.f32 %v2450_v47, %v777_v43  ;;  %v2530_v44 = vsub.f32 %v2452_v48, %v777_v43  ;;  %v1808_v47 = vld [vmem:[%s3015_s12 + $0x38] sm:$0xff]  ;;  %v1803_v43 = vld [vmem:[%s3015_s12 + $0x10] sm:$0xff] }
 0x365   :  { %v1816_v48 = vld [vmem:[%s3015_s12 + $0x78] sm:$0xff]  ;;  %1451 = vmatpush.bf16.msra.mxu2 %v1808_v47  ;;  %v1802_v47 = vld [vmem:[%s3015_s12 + $0x8] sm:$0xff] }
 0x366   :  { %v808_v45 = vmul.f32 %v2527_v46, %v2527_v46  ;;  %v809_v49 = vmul.f32 %v2530_v44, %v2530_v44  ;;  %1480 = vmatpush.bf16.msra.mxu3 %v1816_v48  ;;  %v1810_v48 = vld [vmem:[%s3015_s12 + $0x48] sm:$0xff] }
 0x368   :  { %v831_v50 = vadd.f32 %v809_v49, %v808_v45  ;;  %v1811_v45 = vld [vmem:[%s3015_s12 + $0x50] sm:$0xff] }
 0x369   :  { %1452 = vmatpush.bf16.msra.mxu2 %v1807_v55 }
 0x36a   :  { %832 = vadd.xlane.f32.xlu1 %v831_v50  ;;  %1481 = vmatpush.bf16.msra.mxu3 %v1815_v11 }
 0x36d   :  { %1453 = vmatpush.bf16.msra.mxu2 %v1806_v39 }
 0x36e   :  { %1482 = vmatpush.bf16.msra.mxu3 %v1814_v0 }
 0x371   :  { %1454 = vmatpush.bf16.msra.mxu2 %v1805_v6 }
 0x372   :  { %1483 = vmatpush.bf16.msra.mxu3 %v1813_v8 }
 0x375   :  { %1455 = vmatpush.bf16.msra.mxu2 %v1804_v26 }
 0x376   :  { %1484 = vmatpush.bf16.msra.mxu3 %v1812_v54 }
 0x379   :  { %1456 = vmatpush.bf16.msra.mxu2 %v1803_v43 }
 0x37a   :  { %1485 = vmatpush.bf16.msra.mxu3 %v1811_v45 }
 0x37d   :  { %1457 = vmatpush.bf16.msra.mxu2 %v1802_v47 }
 0x37e   :  { %1486 = vmatpush.bf16.msra.mxu3 %v1810_v48 }
 0x381   :  { %1458 = vmatpush.bf16.msra.mxu2 %v1801_v60 }
 0x39f   :  { %v812_v51 = vpop.xlane.xlu0 %811 }
 0x3a0   :  { %v834_v53 = vmul.f32 %v812_v51, %v2456_v12 }
 0x3a2   :  { %v842_v7 = vadd.f32 1e-05, %v834_v53 }
 0x3a4   :  { %1903 = vrsqrt.f32 %v842_v7  ;;  %vm856_vm3 = vweird.f32 %v842_v7 }
 0x3a7   :  { %v815_v9 = vpop.xlane.xlu1 %814 }
 0x3a8   :  { %v835_v56 = vmul.f32 %v815_v9, %v2456_v12 }
 0x3aa   :  { %v1904_v58 = vpop.eup %1903  ;;  %v843_v59 = vadd.f32 1e-05, %v835_v56 }
 0x3ab   :  { %v851_v61 = vmul.f32 %v1904_v58, %v842_v7  ;;  %vm857_vm2 = vweird.f32 %v1904_v58 }
 0x3ac   :  { %1905 = vrsqrt.f32 %v843_v59  ;;  %vm858_vm4 = vmor %vm856_vm3, %vm857_vm2  ;;  %vm866_vm6 = vweird.f32 %v843_v59 }
 0x3ad   :  { %v852_v63 = vmul.f32 %v1904_v58, %v851_v61  ;;  %v1809_v61 = vld [vmem:[%s3015_s12 + $0x40] sm:$0xff] }
 0x3ae   :  { %1487 = vmatpush.bf16.msra.mxu3 %v1809_v61 }
 0x3af   :  { %v853_v5 = vmul.f32 0.5, %v852_v63 }
 0x3b1   :  { %v854_v18 = vsub.f32 1.5, %v853_v5 }
 0x3b2   :  { %v1906_v20 = vpop.eup %1905 }
 0x3b3   :  { %v855_v22 = vmul.f32 %v1904_v58, %v854_v18  ;;  %v861_v52 = vmul.f32 %v1906_v20, %v843_v59  ;;  %vm867_vm5 = vweird.f32 %v1906_v20 }
 0x3b4   :  { %vm868_vm7 = vmor %vm866_vm6, %vm867_vm5 }
 0x3b5   :  { %v859_v31 = vsel %vm858_vm4, %v1904_v58, %v855_v22  ;;  %v862_v33 = vmul.f32 %v1906_v20, %v861_v52  ;;  %v818_v24 = vpop.xlane.xlu2 %817 }
 0x3b6   :  { %v930_v35 = vmul.f32 %v859_v31, %v2459_v17  ;;  %v931_v38 = vmul.f32 %v859_v31, %v2461_v57  ;;  %v836_v40 = vmul.f32 %v818_v24, %v2456_v12 }
 0x3b7   :  { %v863_v42 = vmul.f32 0.5, %v862_v33 }
 0x3b8   :  { %v953_v49 = vmul.f32 %v2574_v27, %v930_v35  ;;  %v954_v50 = vmul.f32 %v2576_v28, %v931_v38  ;;  %v844_v17 = vadd.f32 1e-05, %v836_v40 }
 0x3b9   :  { %v864_v51 = vsub.f32 1.5, %v863_v42 }
 0x3ba   :  { %1907 = vrsqrt.f32 %v844_v17  ;;  %v2594_v57 = vadd.f32 %v2578_v34, %v953_v49  ;;  %v2597_v53 = vadd.f32 %v2583_v41, %v954_v50  ;;  %vm876_vm9 = vweird.f32 %v844_v17 }
 0x3bb   :  { %v865_v7 = vmul.f32 %v1906_v20, %v864_v51 }
 0x3bc   :  { %v1685_v9 = vmul.f32 -1.442695, %v2594_v57  ;;  %v1686_v55 = vmul.f32 -1.442695, %v2597_v53 }
 0x3bd   :  { %v869_v11 = vsel %vm868_vm7, %v1906_v20, %v865_v7  ;;  %v821_v56 = vpop.xlane.xlu0 %820 }
 0x3be   :  { %v932_v16 = vmul.f32 %v869_v11, %v2468_v32  ;;  %v933_v58 = vmul.f32 %v869_v11, %v2470_v62  ;;  %v837_v59 = vmul.f32 %v821_v56, %v2456_v12  ;;  %1909 = vpow2.f32 %v1685_v9 }
 0x3bf   :  { %1911 = vpow2.f32 %v1686_v55 }
 0x3c0   :  { %v1908_v39 = vpop.eup %1907  ;;  %v955_v0 = vmul.f32 %v2574_v27, %v932_v16  ;;  %v956_v1 = vmul.f32 %v2576_v28, %v933_v58  ;;  %v845_v32 = vadd.f32 1e-05, %v837_v59 }
 0x3c1   :  { %v871_v63 = vmul.f32 %v1908_v39, %v844_v17  ;;  %vm877_vm8 = vweird.f32 %v1908_v39 }
 0x3c2   :  { %1913 = vrsqrt.f32 %v845_v32  ;;  %v2619_v62 = vadd.f32 %v2578_v34, %v955_v0  ;;  %v2622_v2 = vadd.f32 %v2583_v41, %v956_v1  ;;  %vm878_vm10 = vmor %vm876_vm9, %vm877_vm8  ;;  %vm886_vm11 = vweird.f32 %v845_v32 }
 0x3c3   :  { %v872_v5 = vmul.f32 %v1908_v39, %v871_v63 }
 0x3c4   :  { %v1910_v6 = vpop.eup %1909  ;;  %v1687_v8 = vmul.f32 -1.442695, %v2619_v62  ;;  %v1688_v10 = vmul.f32 -1.442695, %v2622_v2 }
 0x3c5   :  { %v1912_v13 = vpop.eup %1911  ;;  %v873_v18 = vmul.f32 0.5, %v872_v5  ;;  %v824_v19 = vpop.xlane.xlu1 %823  ;;  %v2626_v20 = vadd.f32 1.0, %v1910_v6 }
 0x3c6   :  { %v838_v21 = vmul.f32 %v824_v19, %v2456_v12  ;;  %1915 = vpow2.f32 %v1687_v8  ;;  %v2630_v52 = vadd.f32 1.0, %v1912_v13 }
 0x3c7   :  { %v874_v22 = vsub.f32 1.5, %v873_v18  ;;  %1917 = vrcp.f32 %v2626_v20  ;;  %v1065_v24 = vand.u32 2147483647, %v2626_v20  ;;  %v1067_v38 = vand.u32 2147483648, %v2626_v20 }
 0x3c8   :  { %v1914_v26 = vpop.eup %1913  ;;  %v2632_v54 = vadd.f32 1e-05, %v838_v21  ;;  %1919 = vpow2.f32 %v1688_v10  ;;  %vm1061_vm12 = vweird.f32 %v2626_v20  ;;  %v1082_v17 = vand.u32 2147483648, %v2630_v52 }
 0x3c9   :  { %v875_v31 = vmul.f32 %v1908_v39, %v874_v22  ;;  %v881_v33 = vmul.f32 %v1914_v26, %v845_v32  ;;  %vm887_vm13 = vweird.f32 %v1914_v26  ;;  %vm2644_vm14 = vcmp.eq.f32.partialorder %v1065_v24, 8.507059e+37 }
 0x3ca   :  { %1921 = vrsqrt.f32 %v2632_v54  ;;  %v1068_v55 = vor.u32 1.1754944e-38, %v1067_v38  ;;  %v1080_v60 = vand.u32 2147483647, %v2630_v52  ;;  %v2661_v1 = vor.u32 1.1754944e-38, %v1082_v17  ;;  %vm888_vm15 = vmor %vm886_vm11, %vm887_vm13 }
 0x3cb   :  { %v882_v35 = vmul.f32 %v1914_v26, %v881_v33  ;;  %1923 = vrcp.f32 %v2630_v52  ;;  %v879_v42 = vsel %vm878_vm10, %v1908_v39, %v875_v31  ;;  %vm1076_vm1 = vweird.f32 %v2630_v52 }
 0x3cc   :  { %v1916_v40 = vpop.eup %1915  ;;  %v934_v11 = vmul.f32 %v879_v42, %v2477_v3  ;;  %v2664_v63 = vmul.f32 %v879_v42, %v2479_v4  ;;  %vm896_vm6 = vweird.f32 %v2632_v54  ;;  %vm2701_vm10 = vcmp.eq.f32.partialorder %v1080_v60, 8.507059e+37 }
 0x3cd   :  { %v1918_v43 = vpop.eup %1917  ;;  %v883_v45 = vmul.f32 0.5, %v882_v35  ;;  %v827_v49 = vpop.xlane.xlu2 %826  ;;  %v2638_v50 = vadd.f32 1.0, %v1916_v40 }
 0x3ce   :  { %v1920_v51 = vpop.eup %1919  ;;  %v839_v7 = vmul.f32 %v827_v49, %v2456_v12  ;;  %v1057_v47 = vmul.f32 %v1918_v43, %v2626_v20  ;;  %vm1062_vm0 = vweird.f32 %v1918_v43  ;;  %v957_v4 = vmul.f32 %v2574_v27, %v934_v11 }
 0x3cf   :  { %v884_v9 = vsub.f32 1.5, %v883_v45  ;;  %1925 = vrcp.f32 %v2638_v50  ;;  %v2654_v59 = vadd.f32 1.0, %v1920_v51  ;;  %v1095_v5 = vand.u32 2147483647, %v2638_v50  ;;  %vm1063_vm4 = vmor %vm1061_vm12, %vm1062_vm0 }
 0x3d0   :  { %v2650_v56 = vpop.eup %1921  ;;  %v2652_v16 = vadd.f32 1e-05, %v839_v7  ;;  %v1058_v58 = vsub.f32 1.0, %v1057_v47  ;;  %vm1091_vm2 = vweird.f32 %v2638_v50  ;;  %v1097_v32 = vand.u32 2147483648, %v2638_v50 }
 0x3d1   :  { %v2657_v61 = vpop.eup %1923  ;;  %v885_v39 = vmul.f32 %v1914_v26, %v884_v9  ;;  %v891_v0 = vmul.f32 %v2650_v56, %v2632_v54  ;;  %vm897_vm3 = vweird.f32 %v2650_v56  ;;  %vm2685_vm5 = vcmp.eq.f32.partialorder %v1095_v5, 8.507059e+37 }
 0x3d2   :  { %1927 = vrsqrt.f32 %v2652_v16  ;;  %v1059_v3 = vmul.f32 %v1918_v43, %v1058_v58  ;;  %v1072_v10 = vmul.f32 %v2657_v61, %v2630_v52  ;;  %v1112_v45 = vand.u32 2147483648, %v2654_v59 }
 0x3d3   :  { %v889_v6 = vsel %vm888_vm15, %v1914_v26, %v885_v39  ;;  %v892_v8 = vmul.f32 %v2650_v56, %v891_v0  ;;  %1929 = vrcp.f32 %v2654_v59  ;;  %v1110_v26 = vand.u32 2147483647, %v2654_v59 }
 0x3d4   :  { %v1060_v13 = vadd.f32 %v1918_v43, %v1059_v3  ;;  %v1073_v22 = vsub.f32 1.0, %v1072_v10  ;;  %v936_v38 = vmul.f32 %v889_v6, %v2486_v14  ;;  %vm906_vm7 = vweird.f32 %v2652_v16 }
 0x3d5   :  { %v1926_v18 = vpop.eup %1925  ;;  %v893_v19 = vmul.f32 0.5, %v892_v8  ;;  %v830_v21 = vpop.xlane.xlu0 %829  ;;  %v1098_v51 = vor.u32 1.1754944e-38, %v1097_v32  ;;  %vm1077_vm8 = vweird.f32 %v2657_v61  ;;  %vm1106_vm11 = vweird.f32 %v2654_v59 }
 0x3d6   :  { %v840_v31 = vmul.f32 %v830_v21, %v2456_v12  ;;  %v1064_v33 = vsel %vm1063_vm4, %v1918_v43, %v1060_v13  ;;  %v1087_v24 = vmul.f32 %v1926_v18, %v2638_v50  ;;  %v1074_v42 = vmul.f32 %v2657_v61, %v1073_v22  ;;  %vm2712_vm12 = vmor %vm1076_vm1, %vm1077_vm8 }
 0x3d7   :  { %v894_v40 = vsub.f32 1.5, %v893_v19  ;;  %v1069_v20 = vsel %vm2644_vm14, %v1068_v55, %v1064_v33  ;;  %vm1092_vm9 = vweird.f32 %v1926_v18  ;;  %v959_v11 = vmul.f32 %v2574_v27, %v936_v38  ;;  %vm898_vm1 = vmor %vm896_vm6, %vm897_vm3 }
 0x3d8   :  { %v1928_v49 = vpop.eup %1927  ;;  %v2696_v43 = vadd.f32 1e-05, %v840_v31  ;;  %v1088_v17 = vsub.f32 1.0, %v1087_v24  ;;  %v1075_v7 = vadd.f32 %v2657_v61, %v1074_v42  ;;  %v1296_v55 = vmul.f32 %v1069_v20, %v2594_v57  ;;  %vm1093_vm15 = vmor %vm1091_vm2, %vm1092_vm9 }
 0x3d9   :  { %v901_v14 = vmul.f32 %v1928_v49, %v2652_v16  ;;  %v1930_v48 = vpop.eup %1929  ;;  %v895_v58 = vmul.f32 %v2650_v56, %v894_v40  ;;  %vm2717_vm13 = vcmp.eq.f32.partialorder %v1110_v26, 8.507059e+37  ;;  %v1113_v5 = vor.u32 1.1754944e-38, %v1112_v45 }
 0x3da   :  { %1931 = vrsqrt.f32 %v2696_v43  ;;  %v1089_v9 = vmul.f32 %v1926_v18, %v1088_v17  ;;  %v1102_v0 = vmul.f32 %v1930_v48, %v2654_v59  ;;  %vm907_vm14 = vweird.f32 %v1928_v49 }
 0x3db   :  { %v902_v39 = vmul.f32 %v1928_v49, %v901_v14  ;;  %v1079_v8 = vsel %vm2712_vm12, %v2657_v61, %v1075_v7  ;;  %v2725_v10 = vadd.f32 %v2578_v34, %v957_v4  ;;  %vm1107_vm0 = vweird.f32 %v1930_v48  ;;  %vm908_vm2 = vmor %vm906_vm7, %vm907_vm14 }
 0x3dc   :  { %v1090_v57 = vadd.f32 %v1926_v18, %v1089_v9  ;;  %v1103_v32 = vsub.f32 1.0, %v1102_v0  ;;  %v2731_v19 = vadd.f32 %v2578_v34, %v959_v11  ;;  %v937_v61 = vmul.f32 %v889_v6, %v2488_v15  ;;  %vm1108_vm3 = vmor %vm1106_vm11, %vm1107_vm0 }
 0x3dd   :  { %v903_v52 = vmul.f32 0.5, %v902_v39  ;;  %v833_v13 = vpop.xlane.xlu1 %832  ;;  %v1689_v26 = vmul.f32 -1.442695, %v2725_v10  ;;  %v958_v15 = vmul.f32 %v2576_v28, %v2664_v63  ;;  %v899_v6 = vsel %vm898_vm1, %v2650_v56, %v895_v58 }
 0x3de   :  { %v841_v21 = vmul.f32 %v833_v13, %v2456_v12  ;;  %v1094_v22 = vsel %vm1093_vm15, %v1926_v18, %v1090_v57  ;;  %v1104_v33 = vmul.f32 %v1930_v48, %v1103_v32  ;;  %v1691_v50 = vmul.f32 -1.442695, %v2731_v19 }
 0x3df   :  { %v904_v4 = vsub.f32 1.5, %v903_v52  ;;  %v1099_v31 = vsel %vm2685_vm5, %v1098_v51, %v1094_v22  ;;  %1933 = vpow2.f32 %v1689_v26  ;;  %v960_v56 = vmul.f32 %v2576_v28, %v937_v61 }
 0x3e0   :  { %v2739_v24 = vpop.eup %1931  ;;  %v2745_v12 = vadd.f32 1e-05, %v841_v21  ;;  %v1298_v18 = vmul.f32 %v1099_v31, %v2619_v62  ;;  %v1105_v54 = vadd.f32 %v1930_v48, %v1104_v33  ;;  %v1084_v62 = vsel %vm2701_vm10, %v2661_v1, %v1079_v8 }
 0x3e1   :  { %v905_v35 = vmul.f32 %v1928_v49, %v904_v4  ;;  %v911_v38 = vmul.f32 %v2739_v24, %v2696_v43  ;;  %v2768_v45 = vadd.f32 %v2583_v41, %v958_v15  ;;  %v2771_v1 = vadd.f32 %v2583_v41, %v960_v56 }
 0x3e2   :  { %1935 = vrsqrt.f32 %v2745_v12  ;;  %v1312_v40 = vpack.c.bf16 %v1298_v18, %v1296_v55  ;;  %v1109_v20 = vsel %vm1108_vm3, %v1930_v48, %v1105_v54  ;;  %v938_v59 = vmul.f32 %v899_v6, %v2495_v23 }
 0x3e3   :  { %v909_v63 = vsel %vm908_vm2, %v1928_v49, %v905_v35  ;;  %v912_v16 = vmul.f32 %v2739_v24, %v911_v38  ;;  %1937 = vpow2.f32 %v1691_v50  ;;  %v1114_v42 = vsel %vm2717_vm13, %v1113_v5, %v1109_v20 }
 0x3e4   :  { %1459 = vmatmul.bf16.vlgmr.msra.gmra.mxu2 %v1312_v40  ;;  %v1297_v51 = vmul.f32 %v1084_v62, %v2597_v53  ;;  %v1299_v49 = vmul.f32 %v1114_v42, %v2622_v2  ;;  %v940_v14 = vmul.f32 %v909_v63, %v2505_v29  ;;  %v1690_v47 = vmul.f32 -1.442695, %v2768_v45 }
 0x3e5   :  { %v913_v17 = vmul.f32 0.5, %v912_v16  ;;  %v1934_v7 = vpop.eup %1933  ;;  %v961_v48 = vmul.f32 %v2574_v27, %v938_v59  ;;  %v939_v9 = vmul.f32 %v899_v6, %v2497_v25  ;;  %v1692_v58 = vmul.f32 -1.442695, %v2771_v1 }
 0x3e6   :  { %v1313_v55 = vpack.c.bf16 %v1299_v49, %v1297_v51  ;;  %v2780_v11 = vadd.f32 1.0, %v1934_v7  ;;  %v963_v23 = vmul.f32 %v2574_v27, %v940_v14  ;;  %1939 = vpow2.f32 %v1690_v47 }
 0x3e7   :  { %v914_v53 = vsub.f32 1.5, %v913_v17  ;;  %v2790_v25 = vadd.f32 %v2578_v34, %v961_v48  ;;  %v941_v0 = vmul.f32 %v909_v63, %v2508_v30  ;;  %v962_v3 = vmul.f32 %v2576_v28, %v939_v9 }
 0x3e8   :  { %v2784_v39 = vpop.eup %1935  ;;  %1488 = vmatmul.bf16.vlgmr.msra.gmra.mxu3 %v1313_v55  ;;  %1941 = vrcp.f32 %v2780_v11  ;;  %v2798_v57 = vadd.f32 %v2578_v34, %v963_v23  ;;  %vm917_vm4 = vweird.f32 %v2739_v24  ;;  %vm916_vm5 = vweird.f32 %v2696_v43 }
 0x3e9   :  { %v1938_v2 = vpop.eup %1937  ;;  %v921_v29 = vmul.f32 %v2784_v39, %v2745_v12  ;;  %1943 = vpow2.f32 %v1692_v58  ;;  %v915_v8 = vmul.f32 %v2739_v24, %v914_v53  ;;  %v1125_v13 = vand.u32 2147483647, %v2780_v11  ;;  %vm918_vm7 = vmor %vm916_vm5, %vm917_vm4 }
 0x3ea   :  { %v2792_v60 = vadd.f32 1.0, %v1938_v2  ;;  %v1693_v30 = vmul.f32 -1.442695, %v2790_v25  ;;  %vm926_vm6 = vweird.f32 %v2745_v12  ;;  %v1695_v21 = vmul.f32 -1.442695, %v2798_v57 }
 0x3eb   :  { %v922_v5 = vmul.f32 %v2784_v39, %v921_v29  ;;  %v964_v22 = vmul.f32 %v2576_v28, %v941_v0  ;;  %v2810_v26 = vadd.f32 %v2583_v41, %v962_v3  ;;  %vm927_vm8 = vweird.f32 %v2784_v39 }
 0x3ec   :  { %1945 = vrcp.f32 %v2792_v60  ;;  %v1940_v32 = vpop.eup %1939  ;;  %vm1121_vm9 = vweird.f32 %v2780_v11  ;;  %v1127_v43 = vand.u32 2147483648, %v2780_v11  ;;  %v2818_v31 = vsel %vm918_vm7, %v2739_v24, %v915_v8  ;;  %vm928_vm13 = vmor %vm926_vm6, %vm927_vm8 }
 0x3ed   :  { %v923_v52 = vmul.f32 0.5, %v922_v5  ;;  %v2815_v4 = vadd.f32 1.0, %v1940_v32  ;;  %1947 = vpow2.f32 %v1693_v30  ;;  %vm2821_vm10 = vcmp.eq.f32.partialorder %v1125_v13, 8.507059e+37 }
 0x3ee   :  { %v1942_v61 = vpop.eup %1941  ;;  %v1155_v6 = vand.u32 2147483647, %v2792_v60  ;;  %v1157_v35 = vand.u32 2147483648, %v2792_v60  ;;  %v1694_v38 = vmul.f32 -1.442695, %v2810_v26  ;;  %v2832_v62 = vadd.f32 %v2583_v41, %v964_v22 }
 0x3ef   :  { %v924_v33 = vsub.f32 1.5, %v923_v52  ;;  %v1117_v50 = vmul.f32 %v1942_v61, %v2780_v11  ;;  %v1944_v18 = vpop.eup %1943  ;;  %1949 = vrcp.f32 %v2815_v4  ;;  %v1128_v56 = vor.u32 1.1754944e-38, %v1127_v43 }
 0x3f0   :  { %v2829_v40 = vadd.f32 1.0, %v1944_v18  ;;  %1951 = vpow2.f32 %v1695_v21  ;;  %vm1151_vm11 = vweird.f32 %v2792_v60  ;;  %v942_v16 = vmul.f32 %v2818_v31, %v2516_v36 }
 0x3f1   :  { %v1118_v24 = vsub.f32 1.0, %v1117_v50  ;;  %v925_v20 = vmul.f32 %v2784_v39, %v924_v33  ;;  %vm1122_vm12 = vweird.f32 %v1942_v61  ;;  %v1140_v17 = vand.u32 2147483647, %v2815_v4 }
 0x3f2   :  { %v1946_v54 = vpop.eup %1945  ;;  %1953 = vrcp.f32 %v2829_v40  ;;  %v1142_v51 = vand.u32 2147483648, %v2815_v4  ;;  %vm2846_vm14 = vcmp.eq.f32.partialorder %v1155_v6, 8.507059e+37  ;;  %v1158_v7 = vor.u32 1.1754944e-38, %v1157_v35  ;;  %vm2853_vm15 = vmor %vm1121_vm9, %vm1122_vm12 }
 0x3f3   :  { %v1147_v63 = vmul.f32 %v1946_v54, %v2792_v60  ;;  %v1119_v42 = vmul.f32 %v1942_v61, %v1118_v24  ;;  %1955 = vpow2.f32 %v1694_v38  ;;  %v1948_v49 = vpop.eup %1947  ;;  %v1696_v47 = vmul.f32 -1.442695, %v2832_v62 }
 0x3f4   :  { %vm1152_vm0 = vweird.f32 %v1946_v54  ;;  %vm1136_vm1 = vweird.f32 %v2815_v4  ;;  %v2858_v12 = vadd.f32 1.0, %v1948_v49  ;;  %v2861_v23 = vsel %vm928_vm13, %v2784_v39, %v925_v20 }
 0x3f5   :  { %v1148_v59 = vsub.f32 1.0, %v1147_v63  ;;  %v1120_v14 = vadd.f32 %v1942_v61, %v1119_v42  ;;  %v1950_v48 = vpop.eup %1949  ;;  %1957 = vpow2.f32 %v1696_v47  ;;  %vm2866_vm2 = vcmp.eq.f32.partialorder %v1140_v17, 8.507059e+37  ;;  %vm1153_vm3 = vmor %vm1151_vm11, %vm1152_vm0 }
 0x3f6   :  { %v1952_v58 = vpop.eup %1951  ;;  %v1132_v2 = vmul.f32 %v1950_v48, %v2815_v4  ;;  %v1143_v0 = vor.u32 1.1754944e-38, %v1142_v51  ;;  %1959 = vrcp.f32 %v2858_v12  ;;  %vm1166_vm4 = vweird.f32 %v2829_v40 }
 0x3f7   :  { %v1149_v55 = vmul.f32 %v1946_v54, %v1148_v59  ;;  %v1124_v53 = vsel %vm2853_vm15, %v1942_v61, %v1120_v14  ;;  %v2870_v3 = vadd.f32 1.0, %v1952_v58  ;;  %v1170_v52 = vand.u32 2147483647, %v2829_v40 }
 0x3f8   :  { %v1954_v5 = vpop.eup %1953  ;;  %v1129_v39 = vsel %vm2821_vm10, %v1128_v56, %v1124_v53  ;;  %v1133_v8 = vsub.f32 1.0, %v1132_v2  ;;  %v1172_v21 = vand.u32 2147483648, %v2829_v40  ;;  %v944_v22 = vmul.f32 %v2861_v23, %v2527_v46 }
 0x3f9   :  { %v1150_v11 = vadd.f32 %v1946_v54, %v1149_v55  ;;  %v1956_v13 = vpop.eup %1955  ;;  %v1162_v32 = vmul.f32 %v1954_v5, %v2829_v40  ;;  %vm1137_vm5 = vweird.f32 %v1950_v48  ;;  %1961 = vrcp.f32 %v2870_v3 }
 0x3fa   :  { %v1134_v43 = vmul.f32 %v1950_v48, %v1133_v8  ;;  %v1300_v60 = vmul.f32 %v1129_v39, %v2725_v10  ;;  %v1185_v18 = vand.u32 2147483647, %v2858_v12  ;;  %vm2890_vm6 = vcmp.eq.f32.partialorder %v1170_v52, 8.507059e+37  ;;  %vm1138_vm7 = vmor %vm1136_vm1, %vm1137_vm5 }
 0x3fb   :  { %v1154_v30 = vsel %vm1153_vm3, %v1946_v54, %v1150_v11  ;;  %v1163_v50 = vsub.f32 1.0, %v1162_v32  ;;  %v1958_v15 = vpop.eup %1957  ;;  %v2894_v46 = vadd.f32 1.0, %v1956_v13  ;;  %v965_v38 = vmul.f32 %v2574_v27, %v942_v16 }
 0x3fc   :  { %v1159_v61 = vsel %vm2846_vm14, %v1158_v7, %v1154_v30  ;;  %v1135_v6 = vadd.f32 %v1950_v48, %v1134_v43  ;;  %v1960_v54 = vpop.eup %1959  ;;  %vm1167_vm8 = vweird.f32 %v1954_v5  ;;  %v1173_v63 = vor.u32 1.1754944e-38, %v1172_v21 }
 0x3fd   :  { %v1302_v33 = vmul.f32 %v1159_v61, %v2731_v19  ;;  %v1164_v10 = vmul.f32 %v1954_v5, %v1163_v50  ;;  %v1187_v19 = vand.u32 2147483648, %v2858_v12  ;;  %v1177_v20 = vmul.f32 %v1960_v54, %v2858_v12  ;;  %vm1168_vm11 = vmor %vm1166_vm4, %vm1167_vm8 }
 0x3fe   :  { %v1139_v56 = vsel %vm1138_vm7, %v1950_v48, %v1135_v6  ;;  %v2901_v42 = vadd.f32 1.0, %v1958_v15  ;;  %vm1181_vm9 = vweird.f32 %v2858_v12  ;;  %vm2904_vm10 = vcmp.eq.f32.partialorder %v1185_v18, 8.507059e+37 }
 0x3ff   :  { %v1314_v24 = vpack.c.bf16 %v1302_v33, %v1300_v60  ;;  %v1165_v59 = vadd.f32 %v1954_v5, %v1164_v10  ;;  %1963 = vrcp.f32 %v2894_v46  ;;  %v1962_v4 = vpop.eup %1961  ;;  %v1144_v17 = vsel %vm2866_vm2, %v1143_v0, %v1139_v56 }
 0x400   :  { %v1178_v51 = vsub.f32 1.0, %v1177_v20  ;;  %v1215_v49 = vand.u32 2147483647, %v2870_v3  ;;  %v1217_v14 = vand.u32 2147483648, %v2870_v3  ;;  %v1188_v7 = vor.u32 1.1754944e-38, %v1187_v19 }
 0x401   :  { %1464 = vmatmul.bf16.gmra.mxu2 %v1314_v24  ;;  %v1169_v36 = vsel %vm1168_vm11, %v1954_v5, %v1165_v59  ;;  %v1207_v47 = vmul.f32 %v1962_v4, %v2870_v3  ;;  %v967_v48 = vmul.f32 %v2574_v27, %v944_v22  ;;  %vm1182_vm12 = vweird.f32 %v1960_v54 }
 0x402   :  { %v1174_v9 = vsel %vm2890_vm6, %v1173_v63, %v1169_v36  ;;  %v1179_v55 = vmul.f32 %v1960_v54, %v1178_v51  ;;  %1965 = vrcp.f32 %v2901_v42  ;;  %v1301_v40 = vmul.f32 %v1144_v17, %v2768_v45  ;;  %vm1183_vm15 = vmor %vm1181_vm9, %vm1182_vm12 }
 0x403   :  { %v1303_v58 = vmul.f32 %v1174_v9, %v2771_v1  ;;  %v1208_v53 = vsub.f32 1.0, %v1207_v47  ;;  %vm1211_vm13 = vweird.f32 %v2870_v3  ;;  %vm2923_vm14 = vcmp.eq.f32.partialorder %v1215_v49, 8.507059e+37 }
 0x404   :  { %v1180_v2 = vadd.f32 %v1960_v54, %v1179_v55  ;;  %v1218_v27 = vor.u32 1.1754944e-38, %v1217_v14  ;;  %v2928_v29 = vadd.f32 %v2578_v34, %v965_v38  ;;  %vm1212_vm0 = vweird.f32 %v1962_v4 }
 0x405   :  { %v1964_v0 = vpop.eup %1963  ;;  %v1315_v5 = vpack.c.bf16 %v1303_v58, %v1301_v40  ;;  %v1209_v45 = vmul.f32 %v1962_v4, %v1208_v53  ;;  %v2933_v1 = vadd.f32 %v2578_v34, %v967_v48  ;;  %vm1196_vm1 = vweird.f32 %v2894_v46  ;;  %vm1213_vm2 = vmor %vm1211_vm13, %vm1212_vm0 }
 0x406   :  { %v1184_v39 = vsel %vm1183_vm15, %v1960_v54, %v1180_v2  ;;  %v1192_v8 = vmul.f32 %v1964_v0, %v2894_v46  ;;  %v943_v52 = vmul.f32 %v2818_v31, %v2519_v37  ;;  %v1200_v30 = vand.u32 2147483647, %v2894_v46 }
 0x407   :  { %1493 = vmatmul.bf16.gmra.mxu3 %v1315_v5  ;;  %v1210_v13 = vadd.f32 %v1962_v4, %v1209_v45  ;;  %v1202_v12 = vand.u32 2147483648, %v2894_v46  ;;  %v1697_v32 = vmul.f32 -1.442695, %v2928_v29  ;;  %v1189_v34 = vsel %vm2904_vm10, %v1188_v7, %v1184_v39 }
 0x408   :  { %v1966_v21 = vpop.eup %1965  ;;  %v1193_v22 = vsub.f32 1.0, %v1192_v8  ;;  %v1699_v61 = vmul.f32 -1.442695, %v2933_v1  ;;  %v945_v37 = vmul.f32 %v2861_v23, %v2530_v44  ;;  %vm1197_vm3 = vweird.f32 %v1964_v0 }
 0x409   :  { %v1214_v31 = vsel %vm1213_vm2, %v1962_v4, %v1210_v13  ;;  %v1222_v43 = vmul.f32 %v1966_v21, %v2901_v42  ;;  %1967 = vpow2.f32 %v1697_v32  ;;  %v966_v50 = vmul.f32 %v2576_v28, %v943_v52  ;;  %vm1198_vm4 = vmor %vm1196_vm1, %vm1197_vm3 }
 0x40a   :  { %v1219_v60 = vsel %vm2923_vm14, %v1218_v27, %v1214_v31  ;;  %v1194_v33 = vmul.f32 %v1964_v0, %v1193_v22  ;;  %1969 = vpow2.f32 %v1699_v61  ;;  %v1304_v3 = vmul.f32 %v1189_v34, %v2790_v25 }
 0x40b   :  { %v1306_v18 = vmul.f32 %v1219_v60, %v2798_v57  ;;  %v1223_v15 = vsub.f32 1.0, %v1222_v43  ;;  %v968_v6 = vmul.f32 %v2576_v28, %v945_v37  ;;  %v1230_v23 = vand.u32 2147483647, %v2901_v42 }
 0x40c   :  { %v1195_v44 = vadd.f32 %v1964_v0, %v1194_v33  ;;  %v1232_v35 = vand.u32 2147483648, %v2901_v42  ;;  %v2959_v38 = vadd.f32 %v2583_v41, %v966_v50  ;;  %vm1227_vm5 = vweird.f32 %v1966_v21 }
 0x40d   :  { %v1316_v54 = vpack.c.bf16 %v1306_v18, %v1304_v3  ;;  %v1224_v24 = vmul.f32 %v1966_v21, %v1223_v15  ;;  %v2965_v25 = vadd.f32 %v2583_v41, %v968_v6  ;;  %v1203_v28 = vor.u32 1.1754944e-38, %v1202_v12 }
 0x40e   :  { %v1199_v57 = vsel %vm1198_vm4, %v1964_v0, %v1195_v44  ;;  %v1698_v10 = vmul.f32 -1.442695, %v2959_v38  ;;  %vm1201_vm6 = vcmp.eq.f32.partialorder %v1200_v30, 8.507059e+37  ;;  %vm1226_vm7 = vweird.f32 %v2901_v42 }
 0x40f   :  { %v1968_v19 = vpop.eup %1967  ;;  %v1225_v56 = vadd.f32 %v1966_v21, %v1224_v24  ;;  %v1700_v63 = vmul.f32 -1.442695, %v2965_v25  ;;  %v1204_v46 = vsel %vm1201_vm6, %v1203_v28, %v1199_v57  ;;  %vm1228_vm8 = vmor %vm1226_vm7, %vm1227_vm5  ;;  %v1233_v59 = vor.u32 1.1754944e-38, %v1232_v35 }
 0x410   :  { %v1970_v20 = vpop.eup %1969  ;;  %v1052_v16 = vadd.f32 1.0, %v1968_v19  ;;  %1971 = vpow2.f32 %v1698_v10  ;;  %vm1231_vm9 = vcmp.eq.f32.partialorder %v1230_v23, 8.507059e+37  ;;  %v1305_v51 = vmul.f32 %v1204_v46, %v2810_v26 }
 0x411   :  { %1469 = vmatmul.bf16.gmra.mxu2 %v1316_v54  ;;  %v1229_v41 = vsel %vm1228_vm8, %v1966_v21, %v1225_v56  ;;  %v1054_v4 = vadd.f32 1.0, %v1970_v20  ;;  %1973 = vpow2.f32 %v1700_v63  ;;  %v1352_v56 = vld [vmem:[%s3018_s13] sm:$0x1] }
 0x412   :  { %v1234_v17 = vsel %vm1231_vm9, %v1233_v59, %v1229_v41  ;;  %1975 = vrcp.f32 %v1052_v16  ;;  %v1245_v53 = vand.u32 2147483647, %v1052_v16  ;;  %v1247_v2 = vand.u32 2147483648, %v1052_v16 }
 0x413   :  { %v1307_v49 = vmul.f32 %v1234_v17, %v2832_v62  ;;  %1977 = vrcp.f32 %v1054_v4  ;;  %v1275_v62 = vand.u32 2147483647, %v1054_v4  ;;  %v1277_v27 = vand.u32 2147483648, %v1054_v4 }
 0x414   :  { %vm1241_vm12 = vweird.f32 %v1052_v16  ;;  %v1248_v39 = vor.u32 1.1754944e-38, %v1247_v2  ;;  %vm1271_vm14 = vweird.f32 %v1054_v4  ;;  %vm1246_vm15 = vcmp.eq.f32.partialorder %v1245_v53, 8.507059e+37 }
 0x415   :  { %v1317_v42 = vpack.c.bf16 %v1307_v49, %v1305_v51  ;;  %vm1276_vm1 = vcmp.eq.f32.partialorder %v1275_v62, 8.507059e+37  ;;  %v1278_v12 = vor.u32 1.1754944e-38, %v1277_v27  ;;  %v1353_v63 = vunpack.c.l.bf16 %v1352_v56 }
 0x416   :  { %v1972_v14 = vpop.eup %1971 }
 0x417   :  { %v1974_v36 = vpop.eup %1973  ;;  %1498 = vmatmul.bf16.gmra.mxu3 %v1317_v42  ;;  %v1053_v7 = vadd.f32 1.0, %v1972_v14  ;;  %v1354_v20 = vperm.slane %v1353_v63, 0 }
 0x418   :  { %v1976_v47 = vpop.eup %1975  ;;  %v1055_v48 = vadd.f32 1.0, %v1974_v36 }
 0x419   :  { %v1978_v9 = vpop.eup %1977  ;;  %v1237_v55 = vmul.f32 %v1976_v47, %v1052_v16  ;;  %1979 = vrcp.f32 %v1053_v7  ;;  %vm1242_vm10 = vweird.f32 %v1976_v47  ;;  %v1260_v37 = vand.u32 2147483647, %v1053_v7 }
 0x41a   :  { %v1267_v40 = vmul.f32 %v1978_v9, %v1054_v4  ;;  %1981 = vrcp.f32 %v1055_v48  ;;  %vm1272_vm11 = vweird.f32 %v1978_v9  ;;  %vm1243_vm13 = vmor %vm1241_vm12, %vm1242_vm10  ;;  %v1262_v31 = vand.u32 2147483648, %v1053_v7 }
 0x41b   :  { %v1238_v58 = vsub.f32 1.0, %v1237_v55  ;;  %vm1273_vm0 = vmor %vm1271_vm14, %vm1272_vm11  ;;  %vm1256_vm3 = vweird.f32 %v1053_v7  ;;  %v1290_v3 = vand.u32 2147483647, %v1055_v48  ;;  %v1292_v18 = vand.u32 2147483648, %v1055_v48 }
 0x41c   :  { %v1268_v11 = vsub.f32 1.0, %v1267_v40  ;;  %v1263_v23 = vor.u32 1.1754944e-38, %v1262_v31  ;;  %vm1261_vm6 = vcmp.eq.f32.partialorder %v1260_v37, 8.507059e+37  ;;  %vm1286_vm7 = vweird.f32 %v1055_v48 }
 0x41d   :  { %v1239_v26 = vmul.f32 %v1976_v47, %v1238_v58  ;;  %vm1291_vm9 = vcmp.eq.f32.partialorder %v1290_v3, 8.507059e+37 }
 0x41e   :  { %v1269_v0 = vmul.f32 %v1978_v9, %v1268_v11 }
 0x41f   :  { %v1980_v5 = vpop.eup %1979  ;;  %v1240_v45 = vadd.f32 %v1976_v47, %v1239_v26 }
 0x420   :  { %v1270_v8 = vadd.f32 %v1978_v9, %v1269_v0  ;;  %v1252_v52 = vmul.f32 %v1980_v5, %v1053_v7  ;;  %v1982_v13 = vpop.eup %1981  ;;  %vm1257_vm2 = vweird.f32 %v1980_v5 }
 0x421   :  { %v1244_v30 = vsel %vm1243_vm13, %v1976_v47, %v1240_v45  ;;  %v1282_v22 = vmul.f32 %v1982_v13, %v1055_v48  ;;  %vm1287_vm4 = vweird.f32 %v1982_v13  ;;  %vm1258_vm5 = vmor %vm1256_vm3, %vm1257_vm2 }
 0x422   :  { %v1249_v32 = vsel %vm1246_vm15, %v1248_v39, %v1244_v30  ;;  %v1274_v21 = vsel %vm1273_vm0, %v1978_v9, %v1270_v8  ;;  %v1253_v34 = vsub.f32 1.0, %v1252_v52  ;;  %vm1288_vm8 = vmor %vm1286_vm7, %vm1287_vm4 }
 0x423   :  { %v1279_v61 = vsel %vm1276_vm1, %v1278_v12, %v1274_v21  ;;  %v1308_v43 = vmul.f32 %v1249_v32, %v2928_v29  ;;  %v1283_v50 = vsub.f32 1.0, %v1282_v22  ;;  %v1293_v29 = vor.u32 1.1754944e-38, %v1292_v18 }
 0x424   :  { %v1310_v60 = vmul.f32 %v1279_v61, %v2933_v1  ;;  %v1254_v33 = vmul.f32 %v1980_v5, %v1253_v34 }
 0x425   :  { %v1284_v44 = vmul.f32 %v1982_v13, %v1283_v50 }
 0x426   :  { %v1318_v15 = vpack.c.bf16 %v1310_v60, %v1308_v43  ;;  %v1255_v6 = vadd.f32 %v1980_v5, %v1254_v33 }
 0x427   :  { %v1285_v54 = vadd.f32 %v1982_v13, %v1284_v44 }
 0x428   :  { %1474 = vmatmul.bf16.gmra.mxu2 %v1318_v15  ;;  %v1259_v35 = vsel %vm1258_vm5, %v1980_v5, %v1255_v6 }
 0x429   :  { %v1264_v24 = vsel %vm1261_vm6, %v1263_v23, %v1259_v35  ;;  %v1289_v1 = vsel %vm1288_vm8, %v1982_v13, %v1285_v54 }
 0x42a   :  { %v1294_v57 = vsel %vm1291_vm9, %v1293_v29, %v1289_v1  ;;  %v1309_v28 = vmul.f32 %v1264_v24, %v2959_v38 }
 0x42b   :  { %v1311_v10 = vmul.f32 %v1294_v57, %v2965_v25 }
 0x42d   :  { %v1319_v19 = vpack.c.bf16 %v1311_v10, %v1309_v28 }
 0x42f   :  { %1503 = vmatmul.bf16.gmra.mxu3 %v1319_v19 }
 0x467   :  { %v1460_v46 = vpop.f32.mrf.mxu2 }
 0x468   :  { %v1461_v59 = vadd.f32 %v1460_v46, %v1354_v20 }
 0x46b   :  { %v1489_v16 = vpop.f32.mrf.mxu3 }
 0x46c   :  { %v1490_v41 = vadd.f32 %v1489_v16, %v1461_v59 }
 0x46e   :  { %1509 = vst [vmem:[%s3019_s16] sm:$0xff] %v1490_v41 }
 0x46f   :  { %v1462_v4 = vpop.f32.mrf.mxu2 }
 0x470   :  { %v1463_v38 = vadd.f32 %v1462_v4, %v1354_v20 }
 0x473   :  { %v1491_v17 = vpop.f32.mrf.mxu3 }
 0x474   :  { %v1492_v25 = vadd.f32 %v1491_v17, %v1463_v38 }
 0x476   :  { %1510 = vst [vmem:[%s3019_s16 + $0x8] sm:$0xff] %v1492_v25 }
 0x484   :  { %v1465_v51 = vpop.f32.mrf.mxu2 }
 0x485   :  { %v1466_v49 = vadd.f32 %v1465_v51, %v1354_v20 }
 0x48a   :  { %v1494_v42 = vpop.f32.mrf.mxu3 }
 0x48b   :  { %v1495_v36 = vadd.f32 %v1494_v42, %v1466_v49 }
 0x48c   :  { %v1467_v14 = vpop.f32.mrf.mxu2 }
 0x48d   :  { %1511 = vst [vmem:[%s3019_s16 + $0x10] sm:$0xff] %v1495_v36  ;;  %v1468_v7 = vadd.f32 %v1467_v14, %v1354_v20 }
 0x492   :  { %v1496_v47 = vpop.f32.mrf.mxu3 }
 0x493   :  { %v1497_v9 = vadd.f32 %v1496_v47, %v1468_v7 }
 0x494   :  { %v1470_v48 = vpop.f32.mrf.mxu2 }
 0x495   :  { %1512 = vst [vmem:[%s3019_s16 + $0x18] sm:$0xff] %v1497_v9  ;;  %v1471_v55 = vadd.f32 %v1470_v48, %v1354_v20 }
 0x49a   :  { %v1499_v40 = vpop.f32.mrf.mxu3 }
 0x49b   :  { %v1500_v58 = vadd.f32 %v1499_v40, %v1471_v55 }
 0x49c   :  { %v1472_v53 = vpop.f32.mrf.mxu2 }
 0x49d   :  { %1513 = vst [vmem:[%s3020_s17] sm:$0xff] %v1500_v58  ;;  %v1473_v2 = vadd.f32 %v1472_v53, %v1354_v20 }
 0x4a2   :  { %v1501_v11 = vpop.f32.mrf.mxu3 }
 0x4a3   :  { %v1502_v26 = vadd.f32 %v1501_v11, %v1473_v2 }
 0x4a5   :  { %1514 = vst [vmem:[%s3020_s17 + $0x8] sm:$0xff] %v1502_v26 }
 0x4ab   :  { %v1475_v62 = vpop.f32.mrf.mxu2 }
 0x4ac   :  { %v1476_v27 = vadd.f32 %v1475_v62, %v1354_v20 }
 0x4b2   :  { %v1504_v0 = vpop.f32.mrf.mxu3 }
 0x4b3   :  { %v1505_v5 = vadd.f32 %v1504_v0, %v1476_v27  ;;  %v1477_v45 = vpop.f32.mrf.mxu2 }
 0x4b4   :  { %v1478_v39 = vadd.f32 %v1477_v45, %v1354_v20 }
 0x4b5   :  { %1515 = vst [vmem:[%s3020_s17 + $0x10] sm:$0xff] %v1505_v5 }
 0x4ba   :  { %v1506_v8 = vpop.f32.mrf.mxu3 }
 0x4bb   :  { %v1507_v52 = vadd.f32 %v1506_v8, %v1478_v39 }
 0x4bd   :  { %1516 = vst [vmem:[%s3020_s17 + $0x18] sm:$0xff] %v1507_v52 }

// kernel: cued_speech_transformer_forward.3
= control target key start
LH: loop header
LB: loop body
LE: loop exit
PB: predicated region body
PF: predicated region fallthrough
CT: control target
= control target key end

     0   :  { %vm813_vm12 = vcmask 7168   ;;  %s2379_s3 = inlined_call_operand.vmem [shape: bf16[128,256], index: 3, kind: input, shape index: {}]   ;;  %s2380_s0 = inlined_call_operand.vmem [shape: bf16[8,128], index: 0, kind: input, shape index: {}]   ;;  %s2381_s4 = inlined_call_operand.vmem [shape: bf16[1,256], index: 4, kind: input, shape index: {}]   ;;  %s2382_s8 = inlined_call_operand.vmem [shape: bf16[256,256], index: 8, kind: input, shape index: {}]   ;;  %s2383_s7 = inlined_call_operand.vmem [shape: bf16[256,256], index: 7, kind: input, shape index: {}]   ;;  %s2384_s2 = inlined_call_operand.vmem [shape: bf16[8,256], index: 2, kind: input, shape index: {}]   ;;  %s2385_s1 = inlined_call_operand.vmem [shape: bf16[8,256], index: 1, kind: input, shape index: {}]   ;;  %s2386_s10 = inlined_call_operand.vmem [shape: bf16[256,128], index: 10, kind: input, shape index: {}]   ;;  %s2387_s9 = inlined_call_operand.vmem [shape: bf16[1,256], index: 9, kind: input, shape index: {}]   ;;  %s2388_s5 = inlined_call_operand.vmem [shape: bf16[1,256], index: 5, kind: input, shape index: {}]   ;;  %s2389_s6 = inlined_call_operand.vmem [shape: bf16[1,256], index: 6, kind: input, shape index: {}]   ;;  %s2390_s11 = inlined_call_operand.vmem [shape: bf16[1,128], index: 11, kind: input, shape index: {}]   ;;  %s2391_s14 = inlined_call_operand.vmem [shape: f32[8,128], index: 14, kind: output, shape index: {2}]   ;;  %s2392_s13 = inlined_call_operand.vmem [shape: f32[8,128], index: 13, kind: output, shape index: {1}]   ;;  %s2393_s12 = inlined_call_operand.vmem [shape: f32[8,256], index: 12, kind: output, shape index: {0}]   ;;  %s2394_s15 = inlined_call_operand.vmem [shape: f32[8,1], index: 15, kind: output, shape index: {3}]   ;;  %s2395_s16 = inlined_call_operand.vmem [shape: f32[8,1], index: 16, kind: output, shape index: {4}]  }
   0x1   :  { %2397 = sst [smem:[#allocation8_spill]] %s2379_s3  ;;  %v50_v48 = vld [vmem:[%s2380_s0] sm:$0xf]  ;;  %v1223_v61 = vld [vmem:[%s2382_s8 + $0x70] sm:$0xf] }
   0x2   :  { %s2398_s23 = sld [smem:[#allocation8_spill]]  ;;  %v67_v49 = vld [vmem:[%s2381_s4] sm:$0x3]  ;;  %v1548_v62 = vld [vmem:[%s2382_s8 + $0x74] sm:$0xf0] }
   0x3   :  { %v68_v50 = vunpack.c.l.bf16 %v67_v49  ;;  %v1224_v63 = vor.u32 %v1548_v62, %v1223_v61  ;;  %v1541_v49 = vld [vmem:[%s2382_s8 + $0x44] sm:$0xf]  ;;  %v1538_v62 = vld [vmem:[%s2382_s8 + $0x24] sm:$0xf0] }
   0x5   :  { %v70_v51 = vperm.slane %v68_v50, 0  ;;  %v71_v52 = vperm.slane %v68_v50, 2  ;;  %529 = vmatpush.bf16.msra.mxu2 %v1224_v63 }
   0x7   :  { %v74_v53 = vperm.slane %v70_v51, 0  ;;  %v75_v54 = vperm.slane %v71_v52, 0  ;;  %v1201_v52 = vld [vmem:[%s2382_s8 + $0x48] sm:$0xf0] }
   0x8   :  { %v1157_v0 = vld [vmem:[%s2398_s23 + $0x70] sm:$0xf]  ;;  %v1500_v1 = vld [vmem:[%s2398_s23 + $0x74] sm:$0xf0]  ;;  %v1499_v2 = vld [vmem:[%s2398_s23 + $0x74] sm:$0xf] }
   0x9   :  { %v1158_v3 = vor.u32 %v1500_v1, %v1157_v0  ;;  %v1159_v4 = vld [vmem:[%s2398_s23 + $0x78] sm:$0xf0]  ;;  %v1149_v5 = vld [vmem:[%s2398_s23 + $0x60] sm:$0xf]  ;;  %v1498_v6 = vld [vmem:[%s2398_s23 + $0x64] sm:$0xf0] }
   0xa   :  { %v1162_v7 = vor.u32 %v1499_v2, %v1159_v4  ;;  %v1497_v8 = vld [vmem:[%s2398_s23 + $0x64] sm:$0xf]  ;;  %v1151_v9 = vld [vmem:[%s2398_s23 + $0x68] sm:$0xf0]  ;;  %v1150_v10 = vor.u32 %v1498_v6, %v1149_v5  ;;  %v1141_v12 = vld [vmem:[%s2398_s23 + $0x50] sm:$0xf] }
   0xb   :  { %156 = vmatpush.bf16.msra.mxu0 %v1158_v3  ;;  %v1154_v11 = vor.u32 %v1497_v8, %v1151_v9  ;;  %v1496_v13 = vld [vmem:[%s2398_s23 + $0x54] sm:$0xf0]  ;;  %v1495_v14 = vld [vmem:[%s2398_s23 + $0x54] sm:$0xf]  ;;  %v1143_v15 = vld [vmem:[%s2398_s23 + $0x58] sm:$0xf0] }
   0xc   :  { %169 = vmatpush.bf16.msra.mxu1 %v1162_v7  ;;  %v1142_v16 = vor.u32 %v1496_v13, %v1141_v12  ;;  %v1146_v17 = vor.u32 %v1495_v14, %v1143_v15  ;;  %v1133_v18 = vld [vmem:[%s2398_s23 + $0x40] sm:$0xf]  ;;  %v1494_v19 = vld [vmem:[%s2398_s23 + $0x44] sm:$0xf0]  ;;  %v1493_v20 = vld [vmem:[%s2398_s23 + $0x44] sm:$0xf] }
   0xd   :  { %v1135_v21 = vld [vmem:[%s2398_s23 + $0x48] sm:$0xf0]  ;;  %v1134_v22 = vor.u32 %v1494_v19, %v1133_v18  ;;  %v1125_v24 = vld [vmem:[%s2398_s23 + $0x30] sm:$0xf]  ;;  %v1492_v25 = vld [vmem:[%s2398_s23 + $0x34] sm:$0xf0] }
   0xe   :  { %v1138_v23 = vor.u32 %v1493_v20, %v1135_v21  ;;  %v1491_v26 = vld [vmem:[%s2398_s23 + $0x34] sm:$0xf]  ;;  %v1127_v27 = vld [vmem:[%s2398_s23 + $0x38] sm:$0xf0]  ;;  %v1126_v28 = vor.u32 %v1492_v25, %v1125_v24  ;;  %v1117_v30 = vld [vmem:[%s2398_s23 + $0x20] sm:$0xf] }
   0xf   :  { %157 = vmatpush.bf16.msra.mxu0 %v1150_v10  ;;  %v1130_v29 = vor.u32 %v1491_v26, %v1127_v27  ;;  %v1490_v31 = vld [vmem:[%s2398_s23 + $0x24] sm:$0xf0]  ;;  %v1489_v32 = vld [vmem:[%s2398_s23 + $0x24] sm:$0xf]  ;;  %v1119_v33 = vld [vmem:[%s2398_s23 + $0x28] sm:$0xf0] }
  0x10   :  { %170 = vmatpush.bf16.msra.mxu1 %v1154_v11  ;;  %v1118_v34 = vor.u32 %v1490_v31, %v1117_v30  ;;  %v1122_v35 = vor.u32 %v1489_v32, %v1119_v33  ;;  %v1109_v36 = vld [vmem:[%s2398_s23 + $0x10] sm:$0xf]  ;;  %v1488_v37 = vld [vmem:[%s2398_s23 + $0x14] sm:$0xf0]  ;;  %v1487_v38 = vld [vmem:[%s2398_s23 + $0x14] sm:$0xf] }
  0x11   :  { %v1111_v39 = vld [vmem:[%s2398_s23 + $0x18] sm:$0xf0]  ;;  %v1110_v40 = vor.u32 %v1488_v37, %v1109_v36  ;;  %v1101_v42 = vld [vmem:[%s2398_s23] sm:$0xf]  ;;  %v1486_v43 = vld [vmem:[%s2398_s23 + $0x4] sm:$0xf0] }
  0x12   :  { %v1114_v41 = vor.u32 %v1487_v38, %v1111_v39  ;;  %v1485_v44 = vld [vmem:[%s2398_s23 + $0x4] sm:$0xf]  ;;  %v1103_v45 = vld [vmem:[%s2398_s23 + $0x8] sm:$0xf0]  ;;  %v1102_v46 = vor.u32 %v1486_v43, %v1101_v42  ;;  %v1287_v0 = vld [vmem:[%s2382_s8 + $0xf0] sm:$0xf] }
  0x13   :  { %158 = vmatpush.bf16.msra.mxu0 %v1142_v16  ;;  %v1106_v47 = vor.u32 %v1485_v44, %v1103_v45  ;;  %v1564_v1 = vld [vmem:[%s2382_s8 + $0xf4] sm:$0xf0]  ;;  %v1215_v2 = vld [vmem:[%s2382_s8 + $0x60] sm:$0xf]  ;;  %v1546_v4 = vld [vmem:[%s2382_s8 + $0x64] sm:$0xf0] }
  0x14   :  { %171 = vmatpush.bf16.msra.mxu1 %v1146_v17  ;;  %v1288_v3 = vor.u32 %v1564_v1, %v1287_v0  ;;  %v1279_v5 = vld [vmem:[%s2382_s8 + $0xe0] sm:$0xf]  ;;  %v1562_v6 = vld [vmem:[%s2382_s8 + $0xe4] sm:$0xf0]  ;;  %v1216_v7 = vor.u32 %v1546_v4, %v1215_v2  ;;  %v1547_v8 = vld [vmem:[%s2382_s8 + $0x74] sm:$0xf] }
  0x15   :  { %v1225_v9 = vld [vmem:[%s2382_s8 + $0x78] sm:$0xf0]  ;;  %v1207_v10 = vld [vmem:[%s2382_s8 + $0x50] sm:$0xf]  ;;  %v1280_v12 = vor.u32 %v1562_v6, %v1279_v5  ;;  %v1544_v14 = vld [vmem:[%s2382_s8 + $0x54] sm:$0xf0] }
  0x16   :  { %542 = vmatpush.bf16.msra.mxu3 %v1288_v3  ;;  %v1228_v13 = vor.u32 %v1547_v8, %v1225_v9  ;;  %v1563_v15 = vld [vmem:[%s2382_s8 + $0xf4] sm:$0xf]  ;;  %v1289_v16 = vld [vmem:[%s2382_s8 + $0xf8] sm:$0xf0]  ;;  %v1271_v19 = vld [vmem:[%s2382_s8 + $0xd0] sm:$0xf]  ;;  %530 = vmatpush.bf16.msra.mxu2 %v1216_v7  ;;  %v1208_v25 = vor.u32 %v1544_v14, %v1207_v10 }
  0x17   :  { %159 = vmatpush.bf16.msra.mxu0 %v1134_v22  ;;  %v1292_v18 = vor.u32 %v1563_v15, %v1289_v16  ;;  %v1560_v20 = vld [vmem:[%s2382_s8 + $0xd4] sm:$0xf0]  ;;  %v1545_v21 = vld [vmem:[%s2382_s8 + $0x64] sm:$0xf]  ;;  %v1217_v22 = vld [vmem:[%s2382_s8 + $0x68] sm:$0xf0] }
  0x18   :  { %172 = vmatpush.bf16.msra.mxu1 %v1138_v23  ;;  %v1199_v23 = vld [vmem:[%s2382_s8 + $0x40] sm:$0xf]  ;;  %v1220_v26 = vor.u32 %v1545_v21, %v1217_v22  ;;  %v1542_v27 = vld [vmem:[%s2382_s8 + $0x44] sm:$0xf0]  ;;  %v1272_v32 = vor.u32 %v1560_v20, %v1271_v19  ;;  %v1543_v37 = vld [vmem:[%s2382_s8 + $0x54] sm:$0xf] }
  0x19   :  { %v1209_v38 = vld [vmem:[%s2382_s8 + $0x58] sm:$0xf0]  ;;  %v1200_v39 = vor.u32 %v1542_v27, %v1199_v23  ;;  %v1191_v43 = vld [vmem:[%s2382_s8 + $0x30] sm:$0xf]  ;;  %v1540_v44 = vld [vmem:[%s2382_s8 + $0x34] sm:$0xf0] }
  0x1a   :  { %543 = vmatpush.bf16.msra.mxu3 %v1280_v12  ;;  %531 = vmatpush.bf16.msra.mxu2 %v1208_v25  ;;  %v1212_v42 = vor.u32 %v1543_v37, %v1209_v38  ;;  %v1273_v45 = vld [vmem:[%s2382_s8 + $0xd8] sm:$0xf0]  ;;  %v1539_v0 = vld [vmem:[%s2382_s8 + $0x34] sm:$0xf]  ;;  %v1247_v4 = vld [vmem:[%s2382_s8 + $0xa0] sm:$0xf] }
  0x1b   :  { %160 = vmatpush.bf16.msra.mxu0 %v1126_v28  ;;  %v1561_v28 = vld [vmem:[%s2382_s8 + $0xe4] sm:$0xf]  ;;  %v1193_v1 = vld [vmem:[%s2382_s8 + $0x38] sm:$0xf0]  ;;  %v1554_v5 = vld [vmem:[%s2382_s8 + $0xa4] sm:$0xf0] }
  0x1c   :  { %173 = vmatpush.bf16.msra.mxu1 %v1130_v29  ;;  %v1281_v29 = vld [vmem:[%s2382_s8 + $0xe8] sm:$0xf0]  ;;  %v1555_v6 = vld [vmem:[%s2382_s8 + $0xb4] sm:$0xf]  ;;  %v1196_v10 = vor.u32 %v1539_v0, %v1193_v1  ;;  %v1257_v12 = vld [vmem:[%s2382_s8 + $0xb8] sm:$0xf0]  ;;  %v1248_v21 = vor.u32 %v1554_v5, %v1247_v4 }
  0x1d   :  { %v1284_v33 = vor.u32 %v1561_v28, %v1281_v29  ;;  %v1536_v15 = vld [vmem:[%s2382_s8 + $0x14] sm:$0xf0]  ;;  %v1260_v16 = vor.u32 %v1555_v6, %v1257_v12  ;;  %v1239_v22 = vld [vmem:[%s2382_s8 + $0x90] sm:$0xf]  ;;  %v1185_v23 = vld [vmem:[%s2382_s8 + $0x28] sm:$0xf0] }
  0x1e   :  { %544 = vmatpush.bf16.msra.mxu3 %v1272_v32  ;;  %532 = vmatpush.bf16.msra.mxu2 %v1200_v39  ;;  %v1552_v25 = vld [vmem:[%s2382_s8 + $0x94] sm:$0xf0]  ;;  %v1249_v27 = vld [vmem:[%s2382_s8 + $0xa8] sm:$0xf0]  ;;  %v1535_v38 = vld [vmem:[%s2382_s8 + $0x14] sm:$0xf] }
  0x1f   :  { %161 = vmatpush.bf16.msra.mxu0 %v1118_v34  ;;  %v1263_v34 = vld [vmem:[%s2382_s8 + $0xc0] sm:$0xf]  ;;  %v1177_v39 = vld [vmem:[%s2382_s8 + $0x18] sm:$0xf0]  ;;  %v1169_v0 = vld [vmem:[%s2382_s8 + $0x8] sm:$0xf0] }
  0x20   :  { %174 = vmatpush.bf16.msra.mxu1 %v1122_v35  ;;  %v1558_v35 = vld [vmem:[%s2382_s8 + $0xc4] sm:$0xf0]  ;;  %v1549_v4 = vld [vmem:[%s2382_s8 + $0x84] sm:$0xf]  ;;  %v1233_v5 = vld [vmem:[%s2382_s8 + $0x88] sm:$0xf0] }
  0x21   :  { %v1335_v19 = vld [vmem:[%s2383_s7 + $0x50] sm:$0xf] }
  0x23   :  { %162 = vmatpush.bf16.msra.mxu0 %v1110_v40  ;;  %v1559_v40 = vld [vmem:[%s2382_s8 + $0xd4] sm:$0xf] }
  0x24   :  { %175 = vmatpush.bf16.msra.mxu1 %v1114_v41  ;;  %v1264_v41 = vor.u32 %v1558_v35, %v1263_v34 }
  0x26   :  { %545 = vmatpush.bf16.msra.mxu3 %v1264_v41 }
  0x27   :  { %163 = vmatpush.bf16.msra.mxu0 %v1102_v46  ;;  %v1276_v46 = vor.u32 %v1559_v40, %v1273_v45  ;;  %v329_v45 = vld [vmem:[%s2384_s2] sm:$0xff] }
  0x28   :  { %176 = vmatpush.bf16.msra.mxu1 %v1106_v47  ;;  %v1255_v47 = vld [vmem:[%s2382_s8 + $0xb0] sm:$0xf] }
  0x2a   :  { %164 = vmatmul.bf16.vlgmr.msra.gmra.mxu0 %v50_v48 }
  0x2b   :  { %177 = vmatmul.bf16.vlgmr.msra.gmra.mxu1 %v50_v48  ;;  %555 = vmatpush.bf16.msrb.mxu0 %v1228_v13  ;;  %v1556_v48 = vld [vmem:[%s2382_s8 + $0xb4] sm:$0xf0] }
  0x2c   :  { %568 = vmatpush.bf16.msrb.mxu1 %v1292_v18  ;;  %v1256_v61 = vor.u32 %v1556_v48, %v1255_v47  ;;  %v1516_v47 = vld [vmem:[%s2383_s7 + $0x74] sm:$0xf0]  ;;  %v1231_v48 = vld [vmem:[%s2382_s8 + $0x80] sm:$0xf] }
  0x2e   :  { %546 = vmatpush.bf16.msra.mxu3 %v1256_v61 }
  0x2f   :  { %556 = vmatpush.bf16.msrb.mxu0 %v1220_v26  ;;  %v1553_v26 = vld [vmem:[%s2382_s8 + $0xa4] sm:$0xf] }
  0x30   :  { %569 = vmatpush.bf16.msrb.mxu1 %v1284_v33  ;;  %v1167_v33 = vld [vmem:[%s2382_s8] sm:$0xf]  ;;  %v1252_v37 = vor.u32 %v1553_v26, %v1249_v27 }
  0x32   :  { %547 = vmatpush.bf16.msra.mxu3 %v1248_v21  ;;  %v1513_v21 = vld [vmem:[%s2383_s7 + $0x64] sm:$0xf] }
  0x33   :  { %557 = vmatpush.bf16.msrb.mxu0 %v1212_v42  ;;  %v1240_v42 = vor.u32 %v1552_v25, %v1239_v22  ;;  %v1345_v22 = vld [vmem:[%s2383_s7 + $0x68] sm:$0xf0] }
  0x34   :  { %570 = vmatpush.bf16.msrb.mxu1 %v1276_v46  ;;  %v1409_v25 = vld [vmem:[%s2383_s7 + $0xe8] sm:$0xf0] }
  0x36   :  { %548 = vmatpush.bf16.msra.mxu3 %v1240_v42  ;;  %v1526_v42 = vld [vmem:[%s2383_s7 + $0xc4] sm:$0xf0] }
  0xa7   :  { %v165_v55 = vpop.f32.mrf.mxu0 }
  0xa8   :  { %v1808_v56 = vadd.f32 %v165_v55, %v74_v53  ;;  %v178_v57 = vpop.f32.mrf.mxu1  ;;  %v1192_v53 = vor.u32 %v1540_v44, %v1191_v43  ;;  %v1183_v55 = vld [vmem:[%s2382_s8 + $0x20] sm:$0xf]  ;;  %v1351_v43 = vld [vmem:[%s2383_s7 + $0x70] sm:$0xf]  ;;  %v1551_v44 = vld [vmem:[%s2382_s8 + $0x94] sm:$0xf] }
  0xa9   :  { %v1810_v58 = vadd.f32 %v178_v57, %v75_v54  ;;  %v1204_v54 = vor.u32 %v1541_v49, %v1201_v52  ;;  %v1557_v57 = vld [vmem:[%s2382_s8 + $0xc4] sm:$0xf]  ;;  %v1184_v14 = vor.u32 %v1538_v62, %v1183_v55  ;;  %v1241_v49 = vld [vmem:[%s2382_s8 + $0x98] sm:$0xf0]  ;;  %v1415_v55 = vld [vmem:[%s2383_s7 + $0xf0] sm:$0xf] }
  0xaa   :  { %v1163_v59 = vmul.f32 -1.442695, %v1808_v56  ;;  %533 = vmatpush.bf16.msra.mxu2 %v1192_v53  ;;  %v1550_v53 = vld [vmem:[%s2382_s8 + $0x84] sm:$0xf0]  ;;  %v1244_v61 = vor.u32 %v1551_v44, %v1241_v49  ;;  %v1343_v62 = vld [vmem:[%s2383_s7 + $0x60] sm:$0xf] }
  0xab   :  { %v1164_v60 = vmul.f32 -1.442695, %v1810_v58  ;;  %558 = vmatpush.bf16.msrb.mxu0 %v1204_v54  ;;  %v1180_v54 = vor.u32 %v1535_v38, %v1177_v39  ;;  %v1232_v6 = vor.u32 %v1550_v53, %v1231_v48  ;;  %v1527_v38 = vld [vmem:[%s2383_s7 + $0xd4] sm:$0xf]  ;;  %v1401_v39 = vld [vmem:[%s2383_s7 + $0xd8] sm:$0xf0] }
  0xac   :  { %1587 = vpow2.f32 %v1163_v59  ;;  %v1265_v59 = vld [vmem:[%s2382_s8 + $0xc8] sm:$0xf0]  ;;  %v1508_v49 = vld [vmem:[%s2383_s7 + $0x34] sm:$0xf0]  ;;  %v1383_v53 = vld [vmem:[%s2383_s7 + $0xb0] sm:$0xf] }
  0xad   :  { %1589 = vpow2.f32 %v1164_v60  ;;  %v1268_v63 = vor.u32 %v1557_v57, %v1265_v59  ;;  %v1532_v57 = vld [vmem:[%s2383_s7 + $0xf4] sm:$0xf0]  ;;  %549 = vmatpush.bf16.msra.mxu3 %v1232_v6  ;;  %v1329_v48 = vld [vmem:[%s2383_s7 + $0x48] sm:$0xf0] }
  0xae   :  { %534 = vmatpush.bf16.msra.mxu2 %v1184_v14  ;;  %v1416_v12 = vor.u32 %v1532_v57, %v1415_v55  ;;  %v1407_v14 = vld [vmem:[%s2383_s7 + $0xe0] sm:$0xf] }
  0xaf   :  { %v167_v11 = vpop.f32.mrf.mxu0  ;;  %571 = vmatpush.bf16.msrb.mxu1 %v1268_v63  ;;  %559 = vmatpush.bf16.msrb.mxu0 %v1196_v10  ;;  %v1533_v63 = vld [vmem:[%s2382_s8 + $0x4] sm:$0xf]  ;;  %v364_v10 = vunpack.c.h.b16 %v329_v45 }
  0xb0   :  { %v180_v17 = vpop.f32.mrf.mxu1  ;;  %v1175_v11 = vld [vmem:[%s2382_s8 + $0x10] sm:$0xf] }
  0xb1   :  { %v1537_v17 = vld [vmem:[%s2382_s8 + $0x24] sm:$0xf]  ;;  %v1176_v35 = vor.u32 %v1536_v15, %v1175_v11  ;;  %v1530_v15 = vld [vmem:[%s2383_s7 + $0xe4] sm:$0xf0]  ;;  %v366_v27 = vpack.c.b16 %v364_v10, %v364_v10  ;;  %761 = vmatpush.bf16.msrb.mxu3 %v1416_v12  ;;  %v1367_v12 = vld [vmem:[%s2383_s7 + $0x90] sm:$0xf] }
  0xb2   :  { %v1588_v24 = vpop.eup %1587  ;;  %v1188_v32 = vor.u32 %v1537_v17, %v1185_v23  ;;  %v1236_v17 = vor.u32 %v1549_v4, %v1233_v5  ;;  %v1512_v23 = vld [vmem:[%s2383_s7 + $0x54] sm:$0xf0]  ;;  %v1375_v4 = vld [vmem:[%s2383_s7 + $0xa0] sm:$0xf]  ;;  %v1522_v5 = vld [vmem:[%s2383_s7 + $0xa4] sm:$0xf0] }
  0xb3   :  { %v1590_v30 = vpop.eup %1589  ;;  %v1880_v31 = vadd.f32 1.0, %v1588_v24  ;;  %572 = vmatpush.bf16.msrb.mxu1 %v1260_v16  ;;  %535 = vmatpush.bf16.msra.mxu2 %v1176_v35  ;;  %v1511_v35 = vld [vmem:[%s2383_s7 + $0x54] sm:$0xf]  ;;  %v1376_v10 = vor.u32 %v1522_v5, %v1375_v4 }
  0xb4   :  { %v1888_v36 = vadd.f32 1.0, %v1590_v30  ;;  %560 = vmatpush.bf16.msrb.mxu0 %v1188_v32  ;;  %v1528_v30 = vld [vmem:[%s2383_s7 + $0xd4] sm:$0xf0]  ;;  %v1336_v32 = vor.u32 %v1512_v23, %v1335_v19  ;;  %550 = vmatmul.bf16.vlgmr.msra.gmra.mxu3 %v366_v27  ;;  %v1502_v19 = vld [vmem:[%s2383_s7 + $0x4] sm:$0xf0]  ;;  %v296_v23 = vld [vmem:[%s2385_s1] sm:$0xff] }
  0xb5   :  { %1591 = vrcp.f32 %v1880_v31  ;;  %v199_v50 = vand.u32 2147483647, %v1880_v31  ;;  %vm195_vm0 = vweird.f32 %v1880_v31  ;;  %v201_v7 = vand.u32 2147483648, %v1880_v31 }
  0xb6   :  { %1593 = vrcp.f32 %v1888_v36  ;;  %v214_v51 = vand.u32 2147483647, %v1888_v36  ;;  %v216_v9 = vand.u32 2147483648, %v1888_v36  ;;  %vm210_vm5 = vweird.f32 %v1888_v36 }
  0xb7   :  { %vm1984_vm4 = vcmp.eq.f32.partialorder %v199_v50, 8.507059e+37  ;;  %v202_v28 = vor.u32 1.1754944e-38, %v201_v7  ;;  %573 = vmatpush.bf16.msrb.mxu1 %v1252_v37  ;;  %v1531_v7 = vld [vmem:[%s2383_s7 + $0xf4] sm:$0xf]  ;;  %v1510_v37 = vld [vmem:[%s2383_s7 + $0x44] sm:$0xf0] }
  0xb8   :  { %vm2012_vm7 = vcmp.eq.f32.partialorder %v214_v51, 8.507059e+37  ;;  %v217_v41 = vor.u32 1.1754944e-38, %v216_v9  ;;  %v363_v9 = vunpack.c.l.b16 %v329_v45  ;;  %561 = vmatpush.bf16.msrb.mxu0 %v1180_v54  ;;  %v1319_v45 = vld [vmem:[%s2383_s7 + $0x30] sm:$0xf]  ;;  %v1524_v54 = vld [vmem:[%s2383_s7 + $0xb4] sm:$0xf0] }
  0xb9   :  { %v1320_v57 = vor.u32 %v1508_v49, %v1319_v45 }
  0xba   :  { %v365_v26 = vpack.c.b16 %v363_v9, %v363_v9  ;;  %v1504_v9 = vld [vmem:[%s2383_s7 + $0x14] sm:$0xf0] }
  0xbb   :  { %v1933_v60 = vpop.eup %1591  ;;  %574 = vmatpush.bf16.msrb.mxu1 %v1244_v61 }
  0xbc   :  { %v1944_v2 = vpop.eup %1593  ;;  %v191_v3 = vmul.f32 %v1933_v60, %v1880_v31  ;;  %vm196_vm1 = vweird.f32 %v1933_v60  ;;  %v1348_v31 = vor.u32 %v1513_v21, %v1345_v22  ;;  %v1377_v22 = vld [vmem:[%s2383_s7 + $0xa8] sm:$0xf0] }
  0xbd   :  { %v206_v8 = vmul.f32 %v1944_v2, %v1888_v36  ;;  %vm211_vm2 = vweird.f32 %v1944_v2  ;;  %vm1980_vm3 = vmor %vm195_vm0, %vm196_vm1  ;;  %v1534_v36 = vld [vmem:[%s2382_s8 + $0x4] sm:$0xf0] }
  0xbe   :  { %v192_v13 = vsub.f32 1.0, %v191_v3  ;;  %vm2008_vm6 = vmor %vm210_vm5, %vm211_vm2  ;;  %v1168_v52 = vor.u32 %v1534_v36, %v1167_v33  ;;  %v1353_v3 = vld [vmem:[%s2383_s7 + $0x78] sm:$0xf0]  ;;  %v1327_v33 = vld [vmem:[%s2383_s7 + $0x40] sm:$0xf] }
  0xbf   :  { %v207_v20 = vsub.f32 1.0, %v206_v8  ;;  %v1417_v8 = vld [vmem:[%s2383_s7 + $0xf8] sm:$0xf0]  ;;  %575 = vmatpush.bf16.msrb.mxu1 %v1236_v17  ;;  %v1328_v44 = vor.u32 %v1510_v37, %v1327_v33  ;;  %v1519_v33 = vld [vmem:[%s2383_s7 + $0x94] sm:$0xf] }
  0xc0   :  { %v193_v24 = vmul.f32 %v1933_v60, %v192_v13  ;;  %v1172_v13 = vor.u32 %v1533_v63, %v1169_v0  ;;  %536 = vmatpush.bf16.msra.mxu2 %v1168_v52  ;;  %v1337_v36 = vld [vmem:[%s2383_s7 + $0x58] sm:$0xf0]  ;;  %v1506_v0 = vld [vmem:[%s2383_s7 + $0x24] sm:$0xf0] }
  0xc1   :  { %v208_v29 = vmul.f32 %v1944_v2, %v207_v20  ;;  %v1420_v20 = vor.u32 %v1531_v7, %v1417_v8  ;;  %v1321_v63 = vld [vmem:[%s2383_s7 + $0x38] sm:$0xf0]  ;;  %v1303_v8 = vld [vmem:[%s2383_s7 + $0x10] sm:$0xf] }
  0xc2   :  { %v194_v34 = vadd.f32 %v1933_v60, %v193_v24  ;;  %v1529_v24 = vld [vmem:[%s2383_s7 + $0xe4] sm:$0xf]  ;;  %562 = vmatpush.bf16.msrb.mxu0 %v1172_v13  ;;  %576 = vmatmul.bf16.vlgmr.msrb.gmra.mxu1 %v366_v27  ;;  %v1520_v13 = vld [vmem:[%s2383_s7 + $0x94] sm:$0xf0]  ;;  %v1503_v27 = vld [vmem:[%s2383_s7 + $0x14] sm:$0xf] }
  0xc3   :  { %v209_v40 = vadd.f32 %v1944_v2, %v208_v29  ;;  %v1399_v29 = vld [vmem:[%s2383_s7 + $0xd0] sm:$0xf]  ;;  %787 = vmatpush.bf16.msra.mxu1 %v1420_v20  ;;  %537 = vmatmul.bf16.vlgmr.msra.gmra.mxu2 %v365_v26  ;;  %v1521_v20 = vld [vmem:[%s2383_s7 + $0xa4] sm:$0xf] }
  0xc4   :  { %v198_v46 = vsel %vm1980_vm3, %v1933_v60, %v194_v34  ;;  %v1412_v34 = vor.u32 %v1529_v24, %v1409_v25  ;;  %v1380_v24 = vor.u32 %v1521_v20, %v1377_v22  ;;  %v1359_v25 = vld [vmem:[%s2383_s7 + $0x80] sm:$0xf] }
  0xc5   :  { %v203_v50 = vsel %vm1984_vm4, %v202_v28, %v198_v46  ;;  %v213_v51 = vsel %vm2008_vm6, %v1944_v2, %v209_v40  ;;  %v1352_v2 = vor.u32 %v1516_v47, %v1351_v43  ;;  %v1408_v28 = vor.u32 %v1530_v15, %v1407_v14  ;;  %563 = vmatmul.bf16.vlgmr.msrb.gmra.mxu0 %v365_v26  ;;  %v1509_v47 = vld [vmem:[%s2383_s7 + $0x44] sm:$0xf]  ;;  %v1518_v26 = vld [vmem:[%s2383_s7 + $0x84] sm:$0xf0] }
  0xc6   :  { %v218_v59 = vsel %vm2012_vm7, %v217_v41, %v213_v51  ;;  %v2068_v60 = vmul.f32 %v203_v50, %v1808_v56  ;;  %v1515_v56 = vld [vmem:[%s2383_s7 + $0x74] sm:$0xf]  ;;  %v1400_v40 = vor.u32 %v1528_v30, %v1399_v29  ;;  %v1391_v41 = vld [vmem:[%s2383_s7 + $0xc0] sm:$0xf]  ;;  %v1340_v43 = vor.u32 %v1511_v35, %v1337_v36  ;;  %v1525_v50 = vld [vmem:[%s2383_s7 + $0xc4] sm:$0xf] }
  0xc7   :  { %v2083_v1 = vmul.f32 %v218_v59, %v1810_v58  ;;  %v1514_v58 = vld [vmem:[%s2383_s7 + $0x64] sm:$0xf0]  ;;  %v1356_v16 = vor.u32 %v1515_v56, %v1353_v3  ;;  %748 = vmatpush.bf16.msrb.mxu2 %v1352_v2  ;;  %762 = vmatpush.bf16.msrb.mxu3 %v1408_v28  ;;  %v1404_v46 = vor.u32 %v1527_v38, %v1401_v39  ;;  %v1393_v51 = vld [vmem:[%s2383_s7 + $0xc8] sm:$0xf0]  ;;  %v1311_v59 = vld [vmem:[%s2383_s7 + $0x20] sm:$0xf]  ;;  %v582_v28 = vunpack.c.l.b16 %v296_v23 }
  0xc8   :  { %v1344_v18 = vor.u32 %v1514_v58, %v1343_v62  ;;  %788 = vmatpush.bf16.msra.mxu1 %v1412_v34  ;;  %v1392_v52 = vor.u32 %v1526_v42, %v1391_v41  ;;  %v1332_v55 = vor.u32 %v1509_v47, %v1329_v48  ;;  %v1396_v61 = vor.u32 %v1525_v50, %v1393_v51  ;;  %v1507_v62 = vld [vmem:[%s2383_s7 + $0x34] sm:$0xf]  ;;  %v1385_v2 = vld [vmem:[%s2383_s7 + $0xb8] sm:$0xf0]  ;;  %v1505_v14 = vld [vmem:[%s2383_s7 + $0x24] sm:$0xf] }
  0xc9   :  { %v226_v11 = vadd.f32 %v2083_v1, %v2068_v60  ;;  %774 = vmatpush.bf16.msra.mxu0 %v1356_v16  ;;  %v1523_v56 = vld [vmem:[%s2383_s7 + $0xb4] sm:$0xf]  ;;  %v1384_v3 = vor.u32 %v1524_v54, %v1383_v53  ;;  %v1324_v6 = vor.u32 %v1507_v62, %v1321_v63  ;;  %v1312_v58 = vor.u32 %v1506_v0, %v1311_v59  ;;  %v1313_v16 = vld [vmem:[%s2383_s7 + $0x28] sm:$0xf0]  ;;  %v1369_v34 = vld [vmem:[%s2383_s7 + $0x98] sm:$0xf0] }
  0xca   :  { %v1388_v7 = vor.u32 %v1523_v56, %v1385_v2  ;;  %v1368_v15 = vor.u32 %v1520_v13, %v1367_v12  ;;  %v1316_v17 = vor.u32 %v1505_v14, %v1313_v16  ;;  %v583_v29 = vunpack.c.h.b16 %v296_v23  ;;  %v1501_v39 = vld [vmem:[%s2383_s7 + $0x4] sm:$0xf]  ;;  %v1580_v47 = vld [vmem:[%s2386_s10 + $0x78] sm:$0xff]  ;;  %v1571_v51 = vld [vmem:[%s2386_s10 + $0x30] sm:$0xff] }
  0xcb   :  { %227 = vadd.xlane.f32.xlu0 %v226_v11  ;;  %749 = vmatpush.bf16.msrb.mxu2 %v1344_v18  ;;  %v1304_v11 = vor.u32 %v1504_v9, %v1303_v8  ;;  %v1295_v18 = vld [vmem:[%s2383_s7] sm:$0xf]  ;;  %v1617_v30 = vmov 256.0   ;;  %v584_v36 = vpack.c.b16 %v582_v28, %v582_v28  ;;  %v1372_v37 = vor.u32 %v1519_v33, %v1369_v34  ;;  %v1517_v42 = vld [vmem:[%s2383_s7 + $0x84] sm:$0xf]  ;;  %v1578_v9 = vld [vmem:[%s2386_s10 + $0x68] sm:$0xff] }
  0xcc   :  { %763 = vmatpush.bf16.msrb.mxu3 %v1400_v40  ;;  %789 = vmatpush.bf16.msra.mxu1 %v1404_v46  ;;  %v1296_v21 = vor.u32 %v1502_v19, %v1295_v18  ;;  %1595 = vrcp.f32 %v1617_v30  ;;  %v585_v38 = vpack.c.b16 %v583_v29, %v583_v29  ;;  %v1297_v40 = vld [vmem:[%s2383_s7 + $0x8] sm:$0xf0]  ;;  %v1568_v12 = vld [vmem:[%s2386_s10 + $0x18] sm:$0xff]  ;;  %v800_v14 = vld [vmem:[%s2387_s9] sm:$0x3] }
  0xcd   :  { %775 = vmatpush.bf16.msra.mxu0 %v1348_v31  ;;  %v1360_v31 = vor.u32 %v1518_v26, %v1359_v25  ;;  %v1300_v41 = vor.u32 %v1501_v39, %v1297_v40  ;;  %v1576_v13 = vld [vmem:[%s2386_s10 + $0x58] sm:$0xff]  ;;  %v1575_v18 = vld [vmem:[%s2386_s10 + $0x50] sm:$0xff]  ;;  %v1566_v30 = vld [vmem:[%s2386_s10 + $0x8] sm:$0xff] }
  0xcf   :  { %750 = vmatpush.bf16.msrb.mxu2 %v1336_v32  ;;  %v1305_v32 = vld [vmem:[%s2383_s7 + $0x18] sm:$0xf0] }
  0xd0   :  { %764 = vmatpush.bf16.msrb.mxu3 %v1392_v52  ;;  %790 = vmatpush.bf16.msra.mxu1 %v1396_v61  ;;  %v1308_v35 = vor.u32 %v1503_v27, %v1305_v32  ;;  %v1579_v52 = vld [vmem:[%s2386_s10 + $0x70] sm:$0xff] }
  0xd1   :  { %776 = vmatpush.bf16.msra.mxu0 %v1340_v43  ;;  %v1361_v43 = vld [vmem:[%s2383_s7 + $0x88] sm:$0xf0] }
  0xd2   :  { %v1596_v45 = vpop.eup %1595  ;;  %v1364_v46 = vor.u32 %v1517_v42, %v1361_v43 }
  0xd3   :  { %751 = vmatpush.bf16.msrb.mxu2 %v1328_v44  ;;  %v1572_v44 = vld [vmem:[%s2386_s10 + $0x38] sm:$0xff]  ;;  %v230_v48 = vmul.f32 256.0, %v1596_v45  ;;  %vm234_vm8 = vweird.f32 %v1596_v45 }
  0xd4   :  { %765 = vmatpush.bf16.msrb.mxu3 %v1384_v3  ;;  %791 = vmatpush.bf16.msra.mxu1 %v1388_v7 }
  0xd5   :  { %777 = vmatpush.bf16.msra.mxu0 %v1332_v55  ;;  %v231_v49 = vsub.f32 1.0, %v230_v48  ;;  %v222_v48 = vld [vmem:[%s2388_s5] sm:$0x3] }
  0xd7   :  { %752 = vmatpush.bf16.msrb.mxu2 %v1320_v57  ;;  %v232_v50 = vmul.f32 %v1596_v45, %v231_v49 }
  0xd8   :  { %766 = vmatpush.bf16.msrb.mxu3 %v1376_v10  ;;  %792 = vmatpush.bf16.msra.mxu1 %v1380_v24  ;;  %v1569_v10 = vld [vmem:[%s2386_s10 + $0x20] sm:$0xff] }
  0xd9   :  { %778 = vmatpush.bf16.msra.mxu0 %v1324_v6  ;;  %v233_v53 = vadd.f32 %v1596_v45, %v232_v50 }
  0xdb   :  { %753 = vmatpush.bf16.msrb.mxu2 %v1312_v58  ;;  %v2282_v54 = vsel %vm234_vm8, %v1596_v45, %v233_v53 }
  0xdc   :  { %767 = vmatpush.bf16.msrb.mxu3 %v1368_v15  ;;  %793 = vmatpush.bf16.msra.mxu1 %v1372_v37  ;;  %v801_v15 = vunpack.c.l.bf16 %v800_v14 }
  0xdd   :  { %779 = vmatpush.bf16.msra.mxu0 %v1316_v17  ;;  %v1567_v17 = vld [vmem:[%s2386_s10 + $0x10] sm:$0xff] }
  0xde   :  { %v804_v22 = vperm.slane %v801_v15, 2 }
  0xdf   :  { %754 = vmatpush.bf16.msrb.mxu2 %v1304_v11  ;;  %v1577_v11 = vld [vmem:[%s2386_s10 + $0x60] sm:$0xff] }
  0xe0   :  { %768 = vmatpush.bf16.msrb.mxu3 %v1360_v31  ;;  %794 = vmatpush.bf16.msra.mxu1 %v1364_v46  ;;  %v808_v28 = vperm.slane %v804_v22, 0  ;;  %v1574_v31 = vld [vmem:[%s2386_s10 + $0x48] sm:$0xff] }
  0xe1   :  { %780 = vmatpush.bf16.msra.mxu0 %v1308_v35  ;;  %v1565_v35 = vld [vmem:[%s2386_s10] sm:$0xff] }
  0xe3   :  { %755 = vmatpush.bf16.msrb.mxu2 %v1296_v21  ;;  %769 = vmatmul.bf16.vlgmr.msrb.gmra.mxu3 %v585_v38  ;;  %v803_v21 = vperm.slane %v801_v15, 0 }
  0xe4   :  { %970 = vmatpush.bf16.msra.mxu3 %v1580_v47  ;;  %1004 = vmatpush.bf16.msrb.mxu1 %v1580_v47 }
  0xe5   :  { %781 = vmatpush.bf16.msra.mxu0 %v1300_v41  ;;  %795 = vmatmul.bf16.vlgmr.msra.gmra.mxu1 %v585_v38  ;;  %v807_v26 = vperm.slane %v803_v21, 0 }
  0xe6   :  { %756 = vmatmul.bf16.vlgmr.msrb.gmra.mxu2 %v584_v36 }
  0xe7   :  { %957 = vmatpush.bf16.msra.mxu2 %v1572_v44 }
  0xe8   :  { %782 = vmatmul.bf16.vlgmr.msra.gmra.mxu0 %v584_v36  ;;  %1005 = vmatpush.bf16.msrb.mxu1 %v1579_v52  ;;  %v1573_v36 = vld [vmem:[%s2386_s10 + $0x40] sm:$0xff] }
  0xe9   :  { %991 = vmatpush.bf16.msrb.mxu0 %v1572_v44  ;;  %971 = vmatpush.bf16.msra.mxu3 %v1579_v52  ;;  %v223_v52 = vunpack.c.l.bf16 %v222_v48 }
  0xeb   :  { %958 = vmatpush.bf16.msra.mxu2 %v1571_v51 }
  0xec   :  { %1006 = vmatpush.bf16.msrb.mxu1 %v1578_v9 }
  0xed   :  { %992 = vmatpush.bf16.msrb.mxu0 %v1571_v51  ;;  %972 = vmatpush.bf16.msra.mxu3 %v1578_v9  ;;  %v224_v51 = vld [vmem:[%s2389_s6] sm:$0x3] }
  0xf0   :  { %1007 = vmatpush.bf16.msrb.mxu1 %v1577_v11 }
  0xf1   :  { %973 = vmatpush.bf16.msra.mxu3 %v1577_v11 }
  0xf4   :  { %1008 = vmatpush.bf16.msrb.mxu1 %v1576_v13 }
  0xf5   :  { %974 = vmatpush.bf16.msra.mxu3 %v1576_v13 }
  0xf8   :  { %1009 = vmatpush.bf16.msrb.mxu1 %v1575_v18 }
  0xf9   :  { %975 = vmatpush.bf16.msra.mxu3 %v1575_v18 }
  0xfc   :  { %1010 = vmatpush.bf16.msrb.mxu1 %v1574_v31 }
  0xfd   :  { %976 = vmatpush.bf16.msra.mxu3 %v1574_v31 }
 0x100   :  { %1011 = vmatpush.bf16.msrb.mxu1 %v1573_v36 }
 0x101   :  { %977 = vmatpush.bf16.msra.mxu3 %v1573_v36 }
 0x137   :  { %v551_v5 = vpop.f32.mrf.mxu3 }
 0x13e   :  { %v228_v55 = vpop.xlane.xlu0 %227 }
 0x13f   :  { %v236_v57 = vmul.f32 %v2282_v54, %v228_v55  ;;  %v577_v2 = vpop.f32.mrf.mxu1  ;;  %v553_v8 = vpop.f32.mrf.mxu3  ;;  %v225_v55 = vunpack.c.l.bf16 %v224_v51 }
 0x141   :  { %v2286_v59 = vsub.f32 %v2068_v60, %v236_v57  ;;  %v2289_v61 = vsub.f32 %v2083_v1, %v236_v57  ;;  %v1570_v1 = vld [vmem:[%s2386_s10 + $0x28] sm:$0xff] }
 0x142   :  { %v564_v56 = vpop.f32.mrf.mxu0  ;;  %993 = vmatpush.bf16.msrb.mxu0 %v1570_v1  ;;  %959 = vmatpush.bf16.msra.mxu2 %v1570_v1 }
 0x143   :  { %v239_v62 = vmul.f32 %v2286_v59, %v2286_v59  ;;  %v240_v63 = vmul.f32 %v2289_v61, %v2289_v61  ;;  %v578_v3 = vadd.f32 %v577_v2, %v564_v56  ;;  %v269_v56 = vperm.slane %v225_v55, 2 }
 0x145   :  { %v241_v0 = vadd.f32 %v240_v63, %v239_v62  ;;  %v259_v62 = vperm.slane %v223_v52, 0  ;;  %v260_v63 = vperm.slane %v223_v52, 2 }
 0x146   :  { %v538_v4 = vpop.f32.mrf.mxu2  ;;  %994 = vmatpush.bf16.msrb.mxu0 %v1569_v10  ;;  %960 = vmatpush.bf16.msra.mxu2 %v1569_v10 }
 0x147   :  { %242 = vadd.xlane.f32.xlu0 %v241_v0  ;;  %v552_v6 = vadd.f32 %v551_v5, %v538_v4  ;;  %v579_v60 = vpop.f32.mrf.mxu1  ;;  %v264_v4 = vperm.slane %v260_v63, 0 }
 0x14a   :  { %v566_v58 = vpop.f32.mrf.mxu0  ;;  %995 = vmatpush.bf16.msrb.mxu0 %v1568_v12  ;;  %961 = vmatpush.bf16.msra.mxu2 %v1568_v12 }
 0x14e   :  { %v540_v7 = vpop.f32.mrf.mxu2  ;;  %996 = vmatpush.bf16.msrb.mxu0 %v1567_v17  ;;  %962 = vmatpush.bf16.msra.mxu2 %v1567_v17 }
 0x14f   :  { %v273_v7 = vperm.slane %v269_v56, 0 }
 0x152   :  { %997 = vmatpush.bf16.msrb.mxu0 %v1566_v30  ;;  %963 = vmatpush.bf16.msra.mxu2 %v1566_v30 }
 0x156   :  { %998 = vmatpush.bf16.msrb.mxu0 %v1565_v35  ;;  %964 = vmatpush.bf16.msra.mxu2 %v1565_v35 }
 0x162   :  { %v796_v27 = vpop.f32.mrf.mxu1 }
 0x165   :  { %v783_v20 = vpop.f32.mrf.mxu0 }
 0x166   :  { %v784_v23 = vadd.f32 %v783_v20, %v578_v3  ;;  %v770_v24 = vpop.f32.mrf.mxu3  ;;  %v263_v3 = vperm.slane %v259_v62, 0 }
 0x168   :  { %v797_v29 = vadd.f32 %v796_v27, %v784_v23 }
 0x169   :  { %v757_v16 = vpop.f32.mrf.mxu2 }
 0x16a   :  { %v758_v19 = vadd.f32 %v757_v16, %v552_v6  ;;  %v810_v33 = vadd.f32 %v808_v28, %v797_v29  ;;  %v798_v42 = vpop.f32.mrf.mxu1 }
 0x16c   :  { %v771_v25 = vadd.f32 %v770_v24, %v758_v19 }
 0x16d   :  { %v785_v38 = vpop.f32.mrf.mxu0 }
 0x16e   :  { %v809_v32 = vadd.f32 %v807_v26, %v771_v25  ;;  %v772_v41 = vpop.f32.mrf.mxu3  ;;  %v1618_v38 = vmov -1e+30  }
 0x16f   :  { %814 = vst.msk [vmem:[#allocation4] sm:$0xff] %vm813_vm12, %v1618_v38 }
 0x170   :  { %v811_v34 = vpack.c.bf16 %v810_v33, %v809_v32  ;;  %815 = vst.msk [vmem:[#allocation6] sm:$0xff] %vm813_vm12, %v1618_v38 }
 0x171   :  { %v759_v37 = vpop.f32.mrf.mxu2 }
 0x172   :  { %v985_v39 = vunpack.c.l.b16 %v811_v34  ;;  %v986_v40 = vunpack.c.h.b16 %v811_v34 }
 0x174   :  { %v987_v43 = vpack.c.b16 %v985_v39, %v985_v39  ;;  %v988_v44 = vpack.c.b16 %v986_v40, %v986_v40  ;;  %v1619_v39 = vmov 0   ;;  %v1620_v40 = vmov 0.0  }
 0x175   :  { %1585 = vset.pattern.permute.xlu2 %v1619_v39  ;;  %1586 = vset.pattern.permute.xlu0 %v1619_v39  ;;  %816 = vst.msk [vmem:[#allocation5] sm:$0xff] %vm813_vm12, %v1620_v40 }
 0x176   :  { %999 = vmatmul.bf16.vlgmr.msrb.gmra.mxu0 %v987_v43  ;;  %1012 = vmatmul.bf16.vlgmr.msrb.gmra.mxu1 %v988_v44  ;;  %817 = vst.msk [vmem:[#allocation7] sm:$0xff] %vm813_vm12, %v1620_v40  ;;  %v1019_v44 = vld [vmem:[#allocation4] sm:$0xff] }
 0x1ba   :  { %v243_v45 = vpop.xlane.xlu0 %242 }
 0x1bb   :  { %v244_v46 = vmul.f32 %v243_v45, %v2282_v54  ;;  %v268_v54 = vperm.slane %v225_v55, 0 }
 0x1bd   :  { %v245_v47 = vadd.f32 1e-05, %v244_v46  ;;  %v272_v60 = vperm.slane %v268_v54, 0 }
 0x1bf   :  { %1597 = vrsqrt.f32 %v245_v47  ;;  %vm252_vm10 = vweird.f32 %v245_v47 }
 0x1c5   :  { %v1598_v49 = vpop.eup %1597 }
 0x1c6   :  { %v247_v50 = vmul.f32 %v1598_v49, %v245_v47  ;;  %vm253_vm9 = vweird.f32 %v1598_v49 }
 0x1c7   :  { %vm254_vm11 = vmor %vm252_vm10, %vm253_vm9 }
 0x1c8   :  { %v248_v53 = vmul.f32 %v1598_v49, %v247_v50  ;;  %v1042_v50 = vld [vmem:[#allocation6] sm:$0xff] }
 0x1ca   :  { %v249_v57 = vmul.f32 0.5, %v248_v53 }
 0x1cc   :  { %v250_v0 = vsub.f32 1.5, %v249_v57 }
 0x1ce   :  { %v251_v2 = vmul.f32 %v1598_v49, %v250_v0 }
 0x1d0   :  { %v255_v5 = vsel %vm254_vm11, %v1598_v49, %v251_v2 }
 0x1d1   :  { %v256_v6 = vmul.f32 %v255_v5, %v2286_v59  ;;  %v257_v58 = vmul.f32 %v255_v5, %v2289_v61  ;;  %v850_v59 = vld [vmem:[%s2390_s11] sm:$0x1] }
 0x1d2   :  { %v851_v61 = vunpack.c.l.bf16 %v850_v59 }
 0x1d3   :  { %v265_v8 = vmul.f32 %v263_v3, %v256_v6  ;;  %v266_v1 = vmul.f32 %v264_v4, %v257_v58  ;;  %v1023_v6 = vld [vmem:[#allocation5] sm:$0xff] }
 0x1d4   :  { %v853_v19 = vperm.slane %v851_v61, 0 }
 0x1d5   :  { %v274_v9 = vadd.f32 %v272_v60, %v265_v8  ;;  %v275_v10 = vadd.f32 %v273_v7, %v266_v1  ;;  %v1046_v1 = vld [vmem:[#allocation7] sm:$0xff] }
 0x1d7   :  { %v276_v11 = vmax.f32 %v274_v9, %v275_v10  ;;  %v294_v12 = vpack.c.bf16 %v275_v10, %v274_v9 }
 0x1d9   :  { %277 = vmax.xlane.f32.xlu0 %v276_v11  ;;  %v855_v13 = vunpack.c.l.b16 %v294_v12  ;;  %v856_v14 = vunpack.c.h.b16 %v294_v12 }
 0x1db   :  { %v857_v15 = vpack.c.b16 %v855_v13, %v855_v13  ;;  %v858_v16 = vpack.c.b16 %v856_v14, %v856_v14 }
 0x1dd   :  { %965 = vmatmul.bf16.vlgmr.msra.gmra.mxu2 %v857_v15  ;;  %978 = vmatmul.bf16.vlgmr.msra.gmra.mxu3 %v858_v16 }
 0x1f3   :  { %v1000_v17 = vpop.f32.mrf.mxu0  ;;  %v1013_v18 = vpop.f32.mrf.mxu1 }
 0x1f4   :  { %v1001_v20 = vadd.f32 %v1000_v17, %v853_v19 }
 0x1f6   :  { %v2346_v21 = vadd.f32 %v1013_v18, %v1001_v20 }
 0x1f8   :  { %1018 = vst [vmem:[%s2391_s14] sm:$0xff] %v2346_v21 }
 0x1fb   :  { %v1002_v22 = vpop.f32.mrf.mxu0  ;;  %v1015_v23 = vpop.f32.mrf.mxu1 }
 0x24c   :  { %v278_v24 = vpop.xlane.xlu0 %277 }
 0x24d   :  { %v279_v25 = vsub.f32 %v274_v9, %v278_v24  ;;  %v280_v26 = vsub.f32 %v275_v10, %v278_v24 }
 0x24f   :  { %v281_v27 = vmul.f32 1.442695, %v279_v25  ;;  %v283_v28 = vmul.f32 1.442695, %v280_v26 }
 0x251   :  { %1599 = vpow2.f32 %v281_v27 }
 0x252   :  { %1601 = vpow2.f32 %v283_v28 }
 0x257   :  { %v1600_v29 = vpop.eup %1599 }
 0x258   :  { %v1602_v30 = vpop.eup %1601 }
 0x259   :  { %v285_v31 = vadd.f32 %v1602_v30, %v1600_v29 }
 0x25b   :  { %286 = vadd.xlane.f32.xlu0 %v285_v31 }
 0x260   :  { %v966_v32 = vpop.f32.mrf.mxu2  ;;  %v979_v33 = vpop.f32.mrf.mxu3 }
 0x261   :  { %v967_v34 = vadd.f32 %v966_v32, %v853_v19 }
 0x263   :  { %v980_v35 = vadd.f32 %v979_v33, %v967_v34 }
 0x265   :  { %1017 = vst [vmem:[%s2392_s13] sm:$0xff] %v980_v35  ;;  %1020 = vmax.xlane.f32.xlu1 %v980_v35 }
 0x268   :  { %v968_v36 = vpop.f32.mrf.mxu2  ;;  %v981_v37 = vpop.f32.mrf.mxu3 }
 0x26d   :  { %1043 = vmax.xlane.f32.xlu1 %v2346_v21 }
 0x2ce   :  { %v287_v41 = vpop.xlane.xlu0 %286 }
 0x2cf   :  { %1603 = vlog2.f32 %v287_v41 }
 0x2d5   :  { %v1604_v42 = vpop.eup %1603 }
 0x2d6   :  { %v289_v43 = vmul.f32 0.6931472, %v1604_v42 }
 0x2d8   :  { %v290_v45 = vsub.f32 %v279_v25, %v289_v43  ;;  %v291_v46 = vsub.f32 %v280_v26, %v289_v43  ;;  %v1021_v47 = vpop.xlane.xlu1 %1020 }
 0x2d9   :  { %v1022_v48 = vmax.f32 %v1019_v44, %v1021_v47 }
 0x2da   :  { %292 = vst [vmem:[%s2393_s12] sm:$0xff] %v290_v45 }
 0x2db   :  { %293 = vst [vmem:[%s2393_s12 + $0x8] sm:$0xff] %v291_v46  ;;  %v1024_v49 = vsub.f32 %v1019_v44, %v1022_v48  ;;  %1030 = vperm.xlu2 %1585, %v1022_v48  }
 0x2dc   :  { %1041 = vst.msk [vmem:[#allocation4] sm:$0xff] %vm813_vm12, %v1022_v48 }
 0x2dd   :  { %v1025_v3 = vmul.f32 1.442695, %v1024_v49 }
 0x2e0   :  { %v1044_v51 = vpop.xlane.xlu1 %1043 }
 0x2e1   :  { %v1045_v52 = vmax.f32 %v1042_v50, %v1044_v51 }
 0x2e3   :  { %v1047_v53 = vsub.f32 %v1042_v50, %v1045_v52  ;;  %1063 = vst.msk [vmem:[#allocation6] sm:$0xff] %vm813_vm12, %v1045_v52  ;;  %1053 = vperm.xlu2 %1585, %v1045_v52   ;;  %v1067_v16 = vld [vmem:[#allocation4] sm:$0xff] }
 0x2e5   :  { %v1048_v4 = vmul.f32 1.442695, %v1047_v53 }
 0x2ea   :  { %v1073_v18 = vld [vmem:[#allocation6] sm:$0xff] }
 0x335   :  { %v1031_v55 = vpop.permute.xlu2 %1030 }
 0x336   :  { %v1033_v57 = vsub.f32 %v980_v35, %v1031_v55 }
 0x338   :  { %v1034_v62 = vmul.f32 1.442695, %v1033_v57 }
 0x33a   :  { %1605 = vpow2.f32 %v1034_v62 }
 0x33d   :  { %v1054_v63 = vpop.permute.xlu2 %1053 }
 0x33e   :  { %v1056_v0 = vsub.f32 %v2346_v21, %v1054_v63 }
 0x340   :  { %v1606_v54 = vpop.eup %1605  ;;  %v1057_v56 = vmul.f32 1.442695, %v1056_v0 }
 0x341   :  { %1036 = vadd.xlane.f32.xlu1 %v1606_v54 }
 0x342   :  { %1607 = vpow2.f32 %v1057_v56 }
 0x343   :  { %1609 = vpow2.f32 %v1025_v3 }
 0x344   :  { %1611 = vpow2.f32 %v1048_v4 }
 0x348   :  { %v1608_v2 = vpop.eup %1607 }
 0x349   :  { %1059 = vadd.xlane.f32.xlu2 %v1608_v2  ;;  %v1610_v5 = vpop.eup %1609 }
 0x34a   :  { %v1027_v58 = vmul.f32 %v1610_v5, %v1023_v6  ;;  %v1612_v8 = vpop.eup %1611 }
 0x34b   :  { %v1050_v9 = vmul.f32 %v1612_v8, %v1046_v1 }
 0x3b4   :  { %v1037_v60 = vpop.xlane.xlu1 %1036 }
 0x3b5   :  { %v1038_v7 = vadd.f32 %v1037_v60, %v1027_v58 }
 0x3b7   :  { %1040 = vst.msk [vmem:[#allocation5] sm:$0xff] %vm813_vm12, %v1038_v7 }
 0x3bc   :  { %v1060_v10 = vpop.xlane.xlu2 %1059 }
 0x3bd   :  { %v1061_v11 = vadd.f32 %v1060_v10, %v1050_v9 }
 0x3be   :  { %v1068_v12 = vld [vmem:[#allocation5] sm:$0xff] }
 0x3bf   :  { %1613 = vlog2.f32 %v1068_v12  ;;  %1062 = vst.msk [vmem:[#allocation7] sm:$0xff] %vm813_vm12, %v1061_v11 }
 0x3c5   :  { %v1614_v13 = vpop.eup %1613 }
 0x3c6   :  { %v1070_v14 = vmul.f32 0.6931472, %v1614_v13  ;;  %v1074_v15 = vld [vmem:[#allocation7] sm:$0xff] }
 0x3c7   :  { %1615 = vlog2.f32 %v1074_v15 }
 0x3c8   :  { %v1071_v59 = vadd.f32 %v1070_v14, %v1067_v16 }
 0x3ca   :  { %1072 = vst.msk [vmem:[%s2394_s15] sm:$0xff] %vm813_vm12, %v1071_v59 }
 0x3cd   :  { %v1616_v61 = vpop.eup %1615 }
 0x3ce   :  { %v1076_v17 = vmul.f32 0.6931472, %v1616_v61 }
 0x3d0   :  { %v1077_v19 = vadd.f32 %v1076_v17, %v1073_v18 }
 0x3d2   :  { %1078 = vst.msk [vmem:[%s2395_s16] sm:$0xff] %vm813_vm12, %v1077_v19 }

</bundles_post_ra>
